<compile_context>
chip_gen: v7x
topology: tpu7x:2x2x1
jax: 0.10.0
libtpu: 0.0.40
codegen_flags: <defaults>
</compile_context>

<pallas_src>
import math

import jax
import jax.numpy as jnp
from jax import lax
from jax.experimental import pallas as pl
from jax.experimental.pallas import tpu as pltpu

SHIFT_SIZE = 5
PAD = SHIFT_SIZE // 2            # 2
HALO = PAD + 1                   # 3 H-rows: +-PAD for shift#1, +-1 for dwconv
MXU_DTYPE = jnp.bfloat16         # matmul operand dtype (accumulation is f32)


def _chunk_bounds(C):
    """torch.chunk(x, SHIFT_SIZE, dim=channel) boundaries + per-chunk shift."""
    chunk = -(-C // SHIFT_SIZE)                       # ceil, as torch.chunk
    shifts = list(range(-PAD, PAD + 1))
    bounds, c0, i = [], 0, 0
    while c0 < C:
        c1 = min(c0 + chunk, C)
        bounds.append((c0, c1, shifts[i]))
        c0, i = c1, i + 1
    return bounds


# ----------------------------- in-kernel math --------------------------------

def _erf(x):
    """Abramowitz & Stegun 7.1.26 rational erf approximation."""
    a1, a2, a3, a4, a5 = (0.254829592, -0.284496736, 1.421413741,
                          -1.453152027, 1.061405429)
    p = 0.3275911
    s = jnp.where(x >= 0.0, 1.0, -1.0)
    z = jnp.abs(x)
    # Reciprocal on the EUP slot (same unit as exp, which has slack).
    t = pl.reciprocal(1.0 + p * z, approx=True)
    poly = ((((a5 * t + a4) * t + a3) * t + a2) * t + a1) * t
    return s * (1.0 - poly * jnp.exp(-z * z))


def _gelu_exact(x):
    # nn.GELU() default (erf-based) gelu.
    return 0.5 * x * (1.0 + _erf(x * 0.7071067811865476))


# ------------------------------ fused kernel ---------------------------------

def _make_kernel(H, W, C, Ch, Hs, shifts_in, shifts_hid):
    L = Hs * W                    # tokens in one output stripe
    Le = (Hs + 2) * W             # stripe + 1-row dwconv halo (fc1 domain)
    L0X = HALO * W                # top halo rows of the xpad scratch
    n_stripes = H // Hs
    pow2_W = (W & (W - 1)) == 0

    def kernel(x_ref, w1s_ref, b1_ref, dww_ref, dwb_ref, w2s_ref, b2_ref,
               o_ref, xpad_ref):
        f32 = jnp.float32
        stripe = pl.program_id(1)
        r0 = stripe * Hs                         # first image row of stripe

        # ---- refresh the H-padded (bf16) copy of x once per batch ----------
        # Halo-only zeroing: just the two HALO*W row bands are stored as zeros;
        # the interior is overwritten with the image (no full-buffer memset).
        @pl.when(stripe == 0)
        def _():
            zeros_halo = jnp.zeros((L0X, C), xpad_ref.dtype)
            xpad_ref[0:L0X, :] = zeros_halo
            xpad_ref[L0X + H * W:L0X + H * W + L0X, :] = zeros_halo
            xpad_ref[L0X:L0X + H * W, :] = x_ref[...].astype(xpad_ref.dtype)

        # ---- masks: (L,1)/(Le,1), computed once, broadcast over channels ----
        tok = lax.broadcasted_iota(jnp.int32, (L, 1), 0)
        w_idx = jnp.bitwise_and(tok, W - 1) if pow2_W else lax.rem(tok, W)
        needed = {1, -1} | {s for s in shifts_hid if s != 0}
        m_w = {s: (w_idx >= s) if s > 0 else (w_idx <= W - 1 + s)
               for s in needed}

        ext_tok = lax.broadcasted_iota(jnp.int32, (Le, 1), 0)
        first = stripe == 0
        last = stripe == n_stripes - 1
        row_valid = jnp.logical_not(
            jnp.logical_or(jnp.logical_and(first, ext_tok < W),
                           jnp.logical_and(last, ext_tok >= Le - W)))

        # ---- shift #1 folded into fc1 (sum of per-chunk bf16 dots) ----------
        # Weight copy `si` has the rows outside its channel chunk zeroed (done
        # once in the wrapper), so no channel select is needed here.  The
        # zero fill of the H-shift comes from xpad's zero halo rows, and every
        # slab read is W-row (>= sublane-tile) aligned.
        h = None
        for si, s in enumerate(shifts_in):
            start = pl.multiple_of(L0X + (r0 - 1 - s) * W, W)
            xa = xpad_ref[pl.ds(start, Le), :]                 # bf16 (Le, C)
            p = jnp.dot(xa, w1s_ref[si], preferred_element_type=f32)
            h = p if h is None else h + p
        # Rows outside the image must be zero for the dwconv's H zero-padding.
        h = jnp.where(row_valid, h + b1_ref[...].astype(f32), 0.0)

        # ---- depthwise 3x3 conv + bias + exact GELU --------------------------
        # 3 aligned row slabs of the live h; +-1 column taps via XLU rolls with
        # the precomputed column masks (wrap-around rows are always masked).
        dww = dww_ref[...].astype(f32)                         # (9, Ch) hoisted
        acc = None
        for kh in range(3):
            slab = h[kh * W:kh * W + L, :]                     # (L, Ch), aligned
            left = jnp.where(m_w[1], pltpu.roll(slab, 1, axis=0), 0.0)
            right = jnp.where(m_w[-1], pltpu.roll(slab, L - 1, axis=0), 0.0)
            for kw, tap in ((0, left), (1, slab), (2, right)):
                term = tap * dww[3 * kh + kw:3 * kh + kw + 1, :]
                acc = term if acc is None else acc + term
        acc = acc + dwb_ref[...].astype(f32)
        a = _gelu_exact(acc)
        # nn.Dropout(p=0.0) is the identity -> omitted.

        # ---- shift #2 folded into fc2 (roll + column mask per chunk) ---------
        out = None
        for si, s in enumerate(shifts_hid):
            v = a if s == 0 else jnp.where(
                m_w[s], pltpu.roll(a, s % L, axis=0), 0.0)
            p = jnp.dot(v.astype(MXU_DTYPE), w2s_ref[si],
                        preferred_element_type=f32)
            out = p if out is None else out + p
        out = out + b2_ref[...].astype(f32)
        o_ref[...] = out.astype(o_ref.dtype)

    return kernel


def _pick_stripe_rows(H, W, target=8):
    """Largest divisor of H <= target whose stripe token count is 8-aligned."""
    for hs in range(min(target, H), 0, -1):
        if H % hs == 0 and (hs * W) % 8 == 0:
            return hs
    return H


def shiftmlp_forward(x, params, H, W, *, stripe_rows=8):
    """x: (B, N, C) with N = H*W (row-major h*W + w).  Returns (B, N, C_out)."""
    B, N, C = x.shape
    assert N == H * W
    Ch = params["fc1_w"].shape[1]
    Cout = params["fc2_w"].shape[1]
    # The PyTorch module reshapes the fc1 output with the *input* C, so it
    # implicitly requires hidden_features == in_features.
    assert Ch == C, "shiftmlp reference requires hidden_features == in_features"

    Hs = _pick_stripe_rows(H, W, stripe_rows)
    n_stripes = H // Hs
    L = Hs * W

    in_bounds = _chunk_bounds(C)
    hid_bounds = _chunk_bounds(Ch)
    shifts_in = tuple(s for _, _, s in in_bounds)
    shifts_hid = tuple(s for _, _, s in hid_bounds)

    def masked_stack(w, bounds):
        """One weight copy per chunk with rows outside the chunk zeroed."""
        k_idx = jnp.arange(w.shape[0])[:, None]
        return jnp.stack([jnp.where((k_idx >= c0) & (k_idx < c1), w, 0.0)
                          for c0, c1, _ in bounds]).astype(MXU_DTYPE)

    w1_stack = masked_stack(params["fc1_w"], in_bounds)      # (n1, C, Ch) bf16
    w2_stack = masked_stack(params["fc2_w"], hid_bounds)     # (n2, Ch, Cout)
    dw_w = params["dw_w"].reshape(9, Ch)

    kernel = _make_kernel(H, W, C, Ch, Hs, shifts_in, shifts_hid)

    return pl.pallas_call(
        kernel,
        out_shape=jax.ShapeDtypeStruct((B, N, Cout), x.dtype),
        grid_spec=pltpu.PrefetchScalarGridSpec(
            num_scalar_prefetch=0,
            grid=(B, n_stripes),
            in_specs=[
                # x: per-batch block, DMA'd only when the batch index changes.
                pl.BlockSpec((None, N, C), lambda b, i: (b, 0, 0)),
                pl.BlockSpec(w1_stack.shape, lambda b, i: (0, 0, 0)),
                pl.BlockSpec((1, Ch), lambda b, i: (0, 0)),
                pl.BlockSpec((9, Ch), lambda b, i: (0, 0)),
                pl.BlockSpec((1, Ch), lambda b, i: (0, 0)),
                pl.BlockSpec(w2_stack.shape, lambda b, i: (0, 0, 0)),
                pl.BlockSpec((1, Cout), lambda b, i: (0, 0)),
            ],
            out_specs=pl.BlockSpec((None, L, Cout), lambda b, i: (b, i, 0)),
            scratch_shapes=[
                # H-padded image copy (bf16), HALO rows of zeros on each side.
                pltpu.VMEM((N + 2 * HALO * W, C), MXU_DTYPE),
            ],
        ),
        compiler_params=pltpu.CompilerParams(
            dimension_semantics=("parallel", "arbitrary"),
            # Ample on v5e/v6e (128 MiB physical); safely under v7x's 64 MiB.
            vmem_limit_bytes=48 * 1024 * 1024,
        ),
    )(x, w1_stack, params["fc1_b"].reshape(1, Ch), dw_w,
      params["dw_b"].reshape(1, Ch), w2_stack, params["fc2_b"].reshape(1, Cout))


# --------------------------- pure-JAX reference ------------------------------

def _shift_zero(xc, s, axis):
    """out[i] = xc[i - s] along `axis`, zero-filled (|s| <= PAD)."""
    if s == 0:
        return xc
    Lax = xc.shape[axis]
    zshape = list(xc.shape)
    zshape[axis] = abs(s)
    z = jnp.zeros(zshape, xc.dtype)
    if s > 0:
        kept = lax.slice_in_dim(xc, 0, Lax - s, axis=axis)
        return jnp.concatenate([z, kept], axis=axis)
    kept = lax.slice_in_dim(xc, -s, Lax, axis=axis)
    return jnp.concatenate([kept, z], axis=axis)


def _shift_chunks(x_nhwc, axis):
    """pad -> torch.chunk along C -> roll chunk i -> cat -> narrow back."""
    C = x_nhwc.shape[3]
    pieces = []
    for c0, c1, s in _chunk_bounds(C):
        xc = lax.slice_in_dim(x_nhwc, c0, c1, axis=3)
        pieces.append(_shift_zero(xc, s, axis))
    return jnp.concatenate(pieces, axis=3)


def shiftmlp_reference(x, params, H, W):
    B, N, C = x.shape
    Ch = params["fc1_w"].shape[1]
    xn = x.reshape(B, H, W, C)
    xs = _shift_chunks(xn, axis=1)
    h = xs.reshape(B * N, C) @ params["fc1_w"] + params["fc1_b"]
    h = h.reshape(B, H, W, Ch)
    hp = jnp.pad(h, ((0, 0), (1, 1), (1, 1), (0, 0)))
    acc = jnp.zeros_like(h)
    w = params["dw_w"]                              # (3, 3, Ch)
    for kh in range(3):
        for kw in range(3):
            acc = acc + hp[:, kh:kh + H, kw:kw + W, :] * w[kh, kw]
    acc = acc + params["dw_b"]
    a = jax.nn.gelu(acc, approximate=False)
    xs2 = _shift_chunks(a, axis=2)
    out = xs2.reshape(B * N, Ch) @ params["fc2_w"] + params["fc2_b"]
    return out.reshape(B, N, -1)


# --------------------------------- main ---------------------------------------

if __name__ == "__main__":
    B, H, W = 2, 16, 16
    C = 20                      # in_features = hidden_features = out_features
    N = H * W
    key = jax.random.PRNGKey(0)
    kx, k1, k2, k3, k4, k5 = jax.random.split(key, 6)

    x = jax.random.normal(kx, (B, N, C), jnp.float32)

    # Deterministic synthetic parameters (shapes per shiftmlp.__init__).
    params = {
        "fc1_w": 0.02 * jax.random.normal(k1, (C, C), jnp.float32),
        "fc1_b": 0.01 * jax.random.normal(k4, (C,), jnp.float32),
        "dw_w": math.sqrt(2.0 / 9.0)
                * jax.random.normal(k2, (3, 3, C), jnp.float32),
        "dw_b": 0.01 * jax.random.normal(k5, (C,), jnp.float32),
        "fc2_w": 0.02 * jax.random.normal(k3, (C, C), jnp.float32),
        "fc2_b": jnp.zeros((C,), jnp.float32),
    }

    out = jax.block_until_ready(shiftmlp_forward(x, params, H, W))
    ref = jax.block_until_ready(shiftmlp_reference(x, params, H, W))

    err = float(jnp.max(jnp.abs(out - ref)))
    assert out.shape == (B, N, C), out.shape
    # Tolerance covers bf16 MXU operands + rational-erf GELU vs f32 reference.
    assert err < 3e-3, f"max abs err {err}"

    print("KERNEL_OK")
</pallas_src>

<mosaic_0001>
module attributes {stable_mosaic.version = 11 : i64} {
  func.func @kernel(%arg0: i32, %arg1: i32, %arg2: memref<1x256x20xf32, #tpu.memory_space<vmem>>, %arg3: memref<5x20x20xbf16, #tpu.memory_space<vmem>>, %arg4: memref<1x20xf32, #tpu.memory_space<vmem>>, %arg5: memref<9x20xf32, #tpu.memory_space<vmem>>, %arg6: memref<1x20xf32, #tpu.memory_space<vmem>>, %arg7: memref<5x20x20xbf16, #tpu.memory_space<vmem>>, %arg8: memref<1x20xf32, #tpu.memory_space<vmem>>, %arg9: memref<1x128x20xf32, #tpu.memory_space<vmem>>, %arg10: memref<352x20xbf16, #tpu.memory_space<vmem>>) attributes {dimension_semantics = [#tpu.dimension_semantics<parallel>, #tpu.dimension_semantics<arbitrary>], iteration_bounds = array<i64: 2, 2>, scalar_prefetch = 0 : i64, scratch_operands = 1 : i64, tpu.core_type = #tpu.core_type<tc>, window_params = [{transform_indices = @transform_0, window_bounds = array<i64: 1, 256, 20>}, {pipeline_mode = #tpu.pipeline_mode<synchronous>, transform_indices = @transform_1, window_bounds = array<i64: 5, 20, 20>}, {pipeline_mode = #tpu.pipeline_mode<synchronous>, transform_indices = @transform_2, window_bounds = array<i64: 1, 20>}, {pipeline_mode = #tpu.pipeline_mode<synchronous>, transform_indices = @transform_3, window_bounds = array<i64: 9, 20>}, {pipeline_mode = #tpu.pipeline_mode<synchronous>, transform_indices = @transform_4, window_bounds = array<i64: 1, 20>}, {pipeline_mode = #tpu.pipeline_mode<synchronous>, transform_indices = @transform_5, window_bounds = array<i64: 5, 20, 20>}, {pipeline_mode = #tpu.pipeline_mode<synchronous>, transform_indices = @transform_6, window_bounds = array<i64: 1, 20>}, {transform_indices = @transform_7, window_bounds = array<i64: 1, 128, 20>}]} {
    %c8_i32 = arith.constant 8 : i32
    %0 = arith.muli %arg1, %c8_i32 : i32
    %c0_i32 = arith.constant 0 : i32
    %1 = arith.cmpi eq, %arg1, %c0_i32 : i32
    %2 = arith.extui %1 : i1 to i32
    %c0_i32_0 = arith.constant 0 : i32
    %3 = arith.cmpi ne, %2, %c0_i32_0 : i32
    scf.if %3 {
      %cst_105 = arith.constant 0.000000e+00 : bf16
      %251 = vector.broadcast %cst_105 : bf16 to vector<48x20xbf16>
      %c0_106 = arith.constant 0 : index
      %c0_107 = arith.constant 0 : index
      %252 = vector.load %arg10[%c0_106, %c0_107] : memref<352x20xbf16, #tpu.memory_space<vmem>>, vector<48x20xbf16>
      tpu.vector_store %arg10[%c0_106, %c0_107], %251 {strides = array<i32>} : memref<352x20xbf16, #tpu.memory_space<vmem>>, vector<48x20xbf16>,
      %c304 = arith.constant 304 : index
      %c0_108 = arith.constant 0 : index
      %253 = vector.load %arg10[%c304, %c0_108] : memref<352x20xbf16, #tpu.memory_space<vmem>>, vector<48x20xbf16>
      tpu.vector_store %arg10[%c304, %c0_108], %251 {strides = array<i32>} : memref<352x20xbf16, #tpu.memory_space<vmem>>, vector<48x20xbf16>,
      %c0_109 = arith.constant 0 : index
      %c0_110 = arith.constant 0 : index
      %c0_111 = arith.constant 0 : index
      %254 = vector.load %arg2[%c0_109, %c0_110, %c0_111] : memref<1x256x20xf32, #tpu.memory_space<vmem>>, vector<1x256x20xf32>
      %255 = vector.shape_cast %254 : vector<1x256x20xf32> to vector<256x20xf32>
      %256 = arith.truncf %255 : vector<256x20xf32> to vector<256x20xbf16>
      %c48 = arith.constant 48 : index
      %c0_112 = arith.constant 0 : index
      %257 = vector.load %arg10[%c48, %c0_112] : memref<352x20xbf16, #tpu.memory_space<vmem>>, vector<256x20xbf16>
      tpu.vector_store %arg10[%c48, %c0_112], %256 {strides = array<i32>} : memref<352x20xbf16, #tpu.memory_space<vmem>>, vector<256x20xbf16>,
    } else {
    }
    %4 = tpu.iota {dimensions = array<i32: 0>} : vector<128x1xi32>
    %c15_i32 = arith.constant 15 : i32
    %5 = vector.broadcast %c15_i32 : i32 to vector<128x1xi32>
    %6 = arith.andi %4, %5 : vector<128x1xi32>
    %c1_i32 = arith.constant 1 : i32
    %7 = vector.broadcast %c1_i32 : i32 to vector<128x1xi32>
    %8 = arith.cmpi sge, %6, %7 : vector<128x1xi32>
    %c2_i32 = arith.constant 2 : i32
    %9 = vector.broadcast %c2_i32 : i32 to vector<128x1xi32>
    %10 = arith.cmpi sge, %6, %9 : vector<128x1xi32>
    %c13_i32 = arith.constant 13 : i32
    %11 = vector.broadcast %c13_i32 : i32 to vector<128x1xi32>
    %12 = arith.cmpi sle, %6, %11 : vector<128x1xi32>
    %c14_i32 = arith.constant 14 : i32
    %13 = vector.broadcast %c14_i32 : i32 to vector<128x1xi32>
    %14 = arith.cmpi sle, %6, %13 : vector<128x1xi32>
    %15 = tpu.iota {dimensions = array<i32: 0>} : vector<160x1xi32>
    %c0_i32_1 = arith.constant 0 : i32
    %16 = arith.cmpi eq, %arg1, %c0_i32_1 : i32
    %c1_i32_2 = arith.constant 1 : i32
    %17 = arith.cmpi eq, %arg1, %c1_i32_2 : i32
    %c16_i32 = arith.constant 16 : i32
    %18 = vector.broadcast %c16_i32 : i32 to vector<160x1xi32>
    %19 = arith.cmpi slt, %15, %18 : vector<160x1xi32>
    %20 = vector.broadcast %16 : i1 to vector<160x1xi1>
    %21 = arith.andi %20, %19 : vector<160x1xi1>
    %c144_i32 = arith.constant 144 : i32
    %22 = vector.broadcast %c144_i32 : i32 to vector<160x1xi32>
    %23 = arith.cmpi sge, %15, %22 : vector<160x1xi32>
    %24 = vector.broadcast %17 : i1 to vector<160x1xi1>
    %25 = arith.andi %24, %23 : vector<160x1xi1>
    %26 = arith.ori %21, %25 : vector<160x1xi1>
    %cst = arith.constant dense<true> : vector<160x1xi1>
    %27 = arith.xori %26, %cst : vector<160x1xi1>
    %c1_i32_3 = arith.constant 1 : i32
    %28 = arith.subi %0, %c1_i32_3 : i32
    %c-2_i32 = arith.constant -2 : i32
    %29 = arith.subi %28, %c-2_i32 : i32
    %c16_i32_4 = arith.constant 16 : i32
    %30 = arith.muli %29, %c16_i32_4 : i32
    %c48_i32 = arith.constant 48 : i32
    %31 = arith.addi %c48_i32, %30 : i32
    %32 = tpu.assume_multiple %31, 16 : i32
    %33 = arith.index_cast %32 : i32 to index
    %c0 = arith.constant 0 : index
    %34 = vector.load %arg10[%33, %c0] : memref<352x20xbf16, #tpu.memory_space<vmem>>, vector<160x20xbf16>
    %c0_5 = arith.constant 0 : index
    %c0_6 = arith.constant 0 : index
    %c0_7 = arith.constant 0 : index
    %35 = vector.load %arg3[%c0_5, %c0_6, %c0_7] : memref<5x20x20xbf16, #tpu.memory_space<vmem>>, vector<1x20x20xbf16>
    %36 = vector.shape_cast %35 : vector<1x20x20xbf16> to vector<20x20xbf16>
    %cst_8 = arith.constant dense<0.000000e+00> : vector<160x20xf32>
    %37 = tpu.matmul %34, %36, %cst_8 {dimension_numbers = #tpu.dot_dimension_numbers<[1], [0], [0], [1], [0, 0, 1, 1], [], []>} : vector<160x20xbf16>, vector<20x20xbf16>, vector<160x20xf32> -> vector<160x20xf32>
    %c1_i32_9 = arith.constant 1 : i32
    %38 = arith.subi %0, %c1_i32_9 : i32
    %c-1_i32 = arith.constant -1 : i32
    %39 = arith.subi %38, %c-1_i32 : i32
    %c16_i32_10 = arith.constant 16 : i32
    %40 = arith.muli %39, %c16_i32_10 : i32
    %c48_i32_11 = arith.constant 48 : i32
    %41 = arith.addi %c48_i32_11, %40 : i32
    %42 = tpu.assume_multiple %41, 16 : i32
    %43 = arith.index_cast %42 : i32 to index
    %c0_12 = arith.constant 0 : index
    %44 = vector.load %arg10[%43, %c0_12] : memref<352x20xbf16, #tpu.memory_space<vmem>>, vector<160x20xbf16>
    %c1 = arith.constant 1 : index
    %c0_13 = arith.constant 0 : index
    %c0_14 = arith.constant 0 : index
    %45 = vector.load %arg3[%c1, %c0_13, %c0_14] : memref<5x20x20xbf16, #tpu.memory_space<vmem>>, vector<1x20x20xbf16>
    %46 = vector.shape_cast %45 : vector<1x20x20xbf16> to vector<20x20xbf16>
    %cst_15 = arith.constant dense<0.000000e+00> : vector<160x20xf32>
    %47 = tpu.matmul %44, %46, %cst_15 {dimension_numbers = #tpu.dot_dimension_numbers<[1], [0], [0], [1], [0, 0, 1, 1], [], []>} : vector<160x20xbf16>, vector<20x20xbf16>, vector<160x20xf32> -> vector<160x20xf32>
    %48 = arith.addf %37, %47 : vector<160x20xf32>
    %c1_i32_16 = arith.constant 1 : i32
    %49 = arith.subi %0, %c1_i32_16 : i32
    %c0_i32_17 = arith.constant 0 : i32
    %50 = arith.subi %49, %c0_i32_17 : i32
    %c16_i32_18 = arith.constant 16 : i32
    %51 = arith.muli %50, %c16_i32_18 : i32
    %c48_i32_19 = arith.constant 48 : i32
    %52 = arith.addi %c48_i32_19, %51 : i32
    %53 = tpu.assume_multiple %52, 16 : i32
    %54 = arith.index_cast %53 : i32 to index
    %c0_20 = arith.constant 0 : index
    %55 = vector.load %arg10[%54, %c0_20] : memref<352x20xbf16, #tpu.memory_space<vmem>>, vector<160x20xbf16>
    %c2 = arith.constant 2 : index
    %c0_21 = arith.constant 0 : index
    %c0_22 = arith.constant 0 : index
    %56 = vector.load %arg3[%c2, %c0_21, %c0_22] : memref<5x20x20xbf16, #tpu.memory_space<vmem>>, vector<1x20x20xbf16>
    %57 = vector.shape_cast %56 : vector<1x20x20xbf16> to vector<20x20xbf16>
    %cst_23 = arith.constant dense<0.000000e+00> : vector<160x20xf32>
    %58 = tpu.matmul %55, %57, %cst_23 {dimension_numbers = #tpu.dot_dimension_numbers<[1], [0], [0], [1], [0, 0, 1, 1], [], []>} : vector<160x20xbf16>, vector<20x20xbf16>, vector<160x20xf32> -> vector<160x20xf32>
    %59 = arith.addf %48, %58 : vector<160x20xf32>
    %c1_i32_24 = arith.constant 1 : i32
    %60 = arith.subi %0, %c1_i32_24 : i32
    %c1_i32_25 = arith.constant 1 : i32
    %61 = arith.subi %60, %c1_i32_25 : i32
    %c16_i32_26 = arith.constant 16 : i32
    %62 = arith.muli %61, %c16_i32_26 : i32
    %c48_i32_27 = arith.constant 48 : i32
    %63 = arith.addi %c48_i32_27, %62 : i32
    %64 = tpu.assume_multiple %63, 16 : i32
    %65 = arith.index_cast %64 : i32 to index
    %c0_28 = arith.constant 0 : index
    %66 = vector.load %arg10[%65, %c0_28] : memref<352x20xbf16, #tpu.memory_space<vmem>>, vector<160x20xbf16>
    %c3 = arith.constant 3 : index
    %c0_29 = arith.constant 0 : index
    %c0_30 = arith.constant 0 : index
    %67 = vector.load %arg3[%c3, %c0_29, %c0_30] : memref<5x20x20xbf16, #tpu.memory_space<vmem>>, vector<1x20x20xbf16>
    %68 = vector.shape_cast %67 : vector<1x20x20xbf16> to vector<20x20xbf16>
    %cst_31 = arith.constant dense<0.000000e+00> : vector<160x20xf32>
    %69 = tpu.matmul %66, %68, %cst_31 {dimension_numbers = #tpu.dot_dimension_numbers<[1], [0], [0], [1], [0, 0, 1, 1], [], []>} : vector<160x20xbf16>, vector<20x20xbf16>, vector<160x20xf32> -> vector<160x20xf32>
    %70 = arith.addf %59, %69 : vector<160x20xf32>
    %c1_i32_32 = arith.constant 1 : i32
    %71 = arith.subi %0, %c1_i32_32 : i32
    %c2_i32_33 = arith.constant 2 : i32
    %72 = arith.subi %71, %c2_i32_33 : i32
    %c16_i32_34 = arith.constant 16 : i32
    %73 = arith.muli %72, %c16_i32_34 : i32
    %c48_i32_35 = arith.constant 48 : i32
    %74 = arith.addi %c48_i32_35, %73 : i32
    %75 = tpu.assume_multiple %74, 16 : i32
    %76 = arith.index_cast %75 : i32 to index
    %c0_36 = arith.constant 0 : index
    %77 = vector.load %arg10[%76, %c0_36] : memref<352x20xbf16, #tpu.memory_space<vmem>>, vector<160x20xbf16>
    %c4 = arith.constant 4 : index
    %c0_37 = arith.constant 0 : index
    %c0_38 = arith.constant 0 : index
    %78 = vector.load %arg3[%c4, %c0_37, %c0_38] : memref<5x20x20xbf16, #tpu.memory_space<vmem>>, vector<1x20x20xbf16>
    %79 = vector.shape_cast %78 : vector<1x20x20xbf16> to vector<20x20xbf16>
    %cst_39 = arith.constant dense<0.000000e+00> : vector<160x20xf32>
    %80 = tpu.matmul %77, %79, %cst_39 {dimension_numbers = #tpu.dot_dimension_numbers<[1], [0], [0], [1], [0, 0, 1, 1], [], []>} : vector<160x20xbf16>, vector<20x20xbf16>, vector<160x20xf32> -> vector<160x20xf32>
    %81 = arith.addf %70, %80 : vector<160x20xf32>
    %c0_40 = arith.constant 0 : index
    %c0_41 = arith.constant 0 : index
    %82 = vector.load %arg4[%c0_40, %c0_41] : memref<1x20xf32, #tpu.memory_space<vmem>>, vector<1x20xf32>
    %83 = vector.broadcast %82 : vector<1x20xf32> to vector<160x20xf32>
    %84 = arith.addf %81, %83 : vector<160x20xf32>
    %cst_42 = arith.constant 0.000000e+00 : f32
    %85 = vector.shape_cast %27 : vector<160x1xi1> to vector<160x1xi1>
    %86 = vector.broadcast %85 : vector<160x1xi1> to vector<160x20xi1>
    %87 = vector.broadcast %cst_42 : f32 to vector<160x20xf32>
    %88 = arith.select %86, %84, %87 : vector<160x20xi1>, vector<160x20xf32>
    %c0_43 = arith.constant 0 : index
    %c0_44 = arith.constant 0 : index
    %89 = vector.load %arg5[%c0_43, %c0_44] : memref<9x20xf32, #tpu.memory_space<vmem>>, vector<9x20xf32>
    %90 = vector.extract_strided_slice %88 {offsets = [0, 0], sizes = [128, 20], strides = [1, 1]} : vector<160x20xf32> to vector<128x20xf32>
    %c1_i32_45 = arith.constant 1 : i32
    %91 = tpu.dynamic_rotate %90 by %c1_i32_45 dim 0 : vector<128x20xf32>, i32 -> vector<128x20xf32>
    %cst_46 = arith.constant 0.000000e+00 : f32
    %92 = vector.shape_cast %8 : vector<128x1xi1> to vector<128x1xi1>
    %93 = vector.broadcast %92 : vector<128x1xi1> to vector<128x20xi1>
    %94 = vector.broadcast %cst_46 : f32 to vector<128x20xf32>
    %95 = arith.select %93, %91, %94 : vector<128x20xi1>, vector<128x20xf32>
    %c127_i32 = arith.constant 127 : i32
    %96 = tpu.dynamic_rotate %90 by %c127_i32 dim 0 : vector<128x20xf32>, i32 -> vector<128x20xf32>
    %cst_47 = arith.constant 0.000000e+00 : f32
    %97 = vector.shape_cast %14 : vector<128x1xi1> to vector<128x1xi1>
    %98 = vector.broadcast %97 : vector<128x1xi1> to vector<128x20xi1>
    %99 = vector.broadcast %cst_47 : f32 to vector<128x20xf32>
    %100 = arith.select %98, %96, %99 : vector<128x20xi1>, vector<128x20xf32>
    %101 = vector.extract_strided_slice %89 {offsets = [0, 0], sizes = [1, 20], strides = [1, 1]} : vector<9x20xf32> to vector<1x20xf32>
    %102 = vector.broadcast %101 : vector<1x20xf32> to vector<128x20xf32>
    %103 = arith.mulf %95, %102 : vector<128x20xf32>
    %104 = vector.extract_strided_slice %89 {offsets = [1, 0], sizes = [1, 20], strides = [1, 1]} : vector<9x20xf32> to vector<1x20xf32>
    %105 = vector.broadcast %104 : vector<1x20xf32> to vector<128x20xf32>
    %106 = arith.mulf %90, %105 : vector<128x20xf32>
    %107 = arith.addf %103, %106 : vector<128x20xf32>
    %108 = vector.extract_strided_slice %89 {offsets = [2, 0], sizes = [1, 20], strides = [1, 1]} : vector<9x20xf32> to vector<1x20xf32>
    %109 = vector.broadcast %108 : vector<1x20xf32> to vector<128x20xf32>
    %110 = arith.mulf %100, %109 : vector<128x20xf32>
    %111 = arith.addf %107, %110 : vector<128x20xf32>
    %112 = vector.extract_strided_slice %88 {offsets = [16, 0], sizes = [128, 20], strides = [1, 1]} : vector<160x20xf32> to vector<128x20xf32>
    %c1_i32_48 = arith.constant 1 : i32
    %113 = tpu.dynamic_rotate %112 by %c1_i32_48 dim 0 : vector<128x20xf32>, i32 -> vector<128x20xf32>
    %cst_49 = arith.constant 0.000000e+00 : f32
    %114 = vector.shape_cast %8 : vector<128x1xi1> to vector<128x1xi1>
    %115 = vector.broadcast %114 : vector<128x1xi1> to vector<128x20xi1>
    %116 = vector.broadcast %cst_49 : f32 to vector<128x20xf32>
    %117 = arith.select %115, %113, %116 : vector<128x20xi1>, vector<128x20xf32>
    %c127_i32_50 = arith.constant 127 : i32
    %118 = tpu.dynamic_rotate %112 by %c127_i32_50 dim 0 : vector<128x20xf32>, i32 -> vector<128x20xf32>
    %cst_51 = arith.constant 0.000000e+00 : f32
    %119 = vector.shape_cast %14 : vector<128x1xi1> to vector<128x1xi1>
    %120 = vector.broadcast %119 : vector<128x1xi1> to vector<128x20xi1>
    %121 = vector.broadcast %cst_51 : f32 to vector<128x20xf32>
    %122 = arith.select %120, %118, %121 : vector<128x20xi1>, vector<128x20xf32>
    %123 = vector.extract_strided_slice %89 {offsets = [3, 0], sizes = [1, 20], strides = [1, 1]} : vector<9x20xf32> to vector<1x20xf32>
    %124 = vector.broadcast %123 : vector<1x20xf32> to vector<128x20xf32>
    %125 = arith.mulf %117, %124 : vector<128x20xf32>
    %126 = arith.addf %111, %125 : vector<128x20xf32>
    %127 = vector.extract_strided_slice %89 {offsets = [4, 0], sizes = [1, 20], strides = [1, 1]} : vector<9x20xf32> to vector<1x20xf32>
    %128 = vector.broadcast %127 : vector<1x20xf32> to vector<128x20xf32>
    %129 = arith.mulf %112, %128 : vector<128x20xf32>
    %130 = arith.addf %126, %129 : vector<128x20xf32>
    %131 = vector.extract_strided_slice %89 {offsets = [5, 0], sizes = [1, 20], strides = [1, 1]} : vector<9x20xf32> to vector<1x20xf32>
    %132 = vector.broadcast %131 : vector<1x20xf32> to vector<128x20xf32>
    %133 = arith.mulf %122, %132 : vector<128x20xf32>
    %134 = arith.addf %130, %133 : vector<128x20xf32>
    %135 = vector.extract_strided_slice %88 {offsets = [32, 0], sizes = [128, 20], strides = [1, 1]} : vector<160x20xf32> to vector<128x20xf32>
    %c1_i32_52 = arith.constant 1 : i32
    %136 = tpu.dynamic_rotate %135 by %c1_i32_52 dim 0 : vector<128x20xf32>, i32 -> vector<128x20xf32>
    %cst_53 = arith.constant 0.000000e+00 : f32
    %137 = vector.shape_cast %8 : vector<128x1xi1> to vector<128x1xi1>
    %138 = vector.broadcast %137 : vector<128x1xi1> to vector<128x20xi1>
    %139 = vector.broadcast %cst_53 : f32 to vector<128x20xf32>
    %140 = arith.select %138, %136, %139 : vector<128x20xi1>, vector<128x20xf32>
    %c127_i32_54 = arith.constant 127 : i32
    %141 = tpu.dynamic_rotate %135 by %c127_i32_54 dim 0 : vector<128x20xf32>, i32 -> vector<128x20xf32>
    %cst_55 = arith.constant 0.000000e+00 : f32
    %142 = vector.shape_cast %14 : vector<128x1xi1> to vector<128x1xi1>
    %143 = vector.broadcast %142 : vector<128x1xi1> to vector<128x20xi1>
    %144 = vector.broadcast %cst_55 : f32 to vector<128x20xf32>
    %145 = arith.select %143, %141, %144 : vector<128x20xi1>, vector<128x20xf32>
    %146 = vector.extract_strided_slice %89 {offsets = [6, 0], sizes = [1, 20], strides = [1, 1]} : vector<9x20xf32> to vector<1x20xf32>
    %147 = vector.broadcast %146 : vector<1x20xf32> to vector<128x20xf32>
    %148 = arith.mulf %140, %147 : vector<128x20xf32>
    %149 = arith.addf %134, %148 : vector<128x20xf32>
    %150 = vector.extract_strided_slice %89 {offsets = [7, 0], sizes = [1, 20], strides = [1, 1]} : vector<9x20xf32> to vector<1x20xf32>
    %151 = vector.broadcast %150 : vector<1x20xf32> to vector<128x20xf32>
    %152 = arith.mulf %135, %151 : vector<128x20xf32>
    %153 = arith.addf %149, %152 : vector<128x20xf32>
    %154 = vector.extract_strided_slice %89 {offsets = [8, 0], sizes = [1, 20], strides = [1, 1]} : vector<9x20xf32> to vector<1x20xf32>
    %155 = vector.broadcast %154 : vector<1x20xf32> to vector<128x20xf32>
    %156 = arith.mulf %145, %155 : vector<128x20xf32>
    %157 = arith.addf %153, %156 : vector<128x20xf32>
    %c0_56 = arith.constant 0 : index
    %c0_57 = arith.constant 0 : index
    %158 = vector.load %arg6[%c0_56, %c0_57] : memref<1x20xf32, #tpu.memory_space<vmem>>, vector<1x20xf32>
    %159 = vector.broadcast %158 : vector<1x20xf32> to vector<128x20xf32>
    %160 = arith.addf %157, %159 : vector<128x20xf32>
    %cst_58 = arith.constant 5.000000e-01 : f32
    %161 = vector.broadcast %cst_58 : f32 to vector<128x20xf32>
    %162 = arith.mulf %161, %160 : vector<128x20xf32>
    %cst_59 = arith.constant 0.707106769 : f32
    %163 = vector.broadcast %cst_59 : f32 to vector<128x20xf32>
    %164 = arith.mulf %160, %163 : vector<128x20xf32>
    %cst_60 = arith.constant 0.000000e+00 : f32
    %165 = vector.broadcast %cst_60 : f32 to vector<128x20xf32>
    %166 = arith.cmpf oge, %164, %165 : vector<128x20xf32>
    %cst_61 = arith.constant 1.000000e+00 : f32
    %cst_62 = arith.constant -1.000000e+00 : f32
    %167 = vector.broadcast %cst_61 : f32 to vector<128x20xf32>
    %168 = vector.broadcast %cst_62 : f32 to vector<128x20xf32>
    %169 = arith.select %166, %167, %168 : vector<128x20xi1>, vector<128x20xf32>
    %170 = math.absf %164 : vector<128x20xf32>
    %cst_63 = arith.constant 0.327591091 : f32
    %171 = vector.broadcast %cst_63 : f32 to vector<128x20xf32>
    %172 = arith.mulf %171, %170 : vector<128x20xf32>
    %cst_64 = arith.constant 1.000000e+00 : f32
    %173 = vector.broadcast %cst_64 : f32 to vector<128x20xf32>
    %174 = arith.addf %173, %172 : vector<128x20xf32>
    %175 = tpu.reciprocal %174 {approx = true} : vector<128x20xf32> -> vector<128x20xf32>
    %cst_65 = arith.constant 1.06140542 : f32
    %176 = vector.broadcast %cst_65 : f32 to vector<128x20xf32>
    %177 = arith.mulf %176, %175 : vector<128x20xf32>
    %cst_66 = arith.constant -1.45315206 : f32
    %178 = vector.broadcast %cst_66 : f32 to vector<128x20xf32>
    %179 = arith.addf %177, %178 : vector<128x20xf32>
    %180 = arith.mulf %179, %175 : vector<128x20xf32>
    %cst_67 = arith.constant 1.42141378 : f32
    %181 = vector.broadcast %cst_67 : f32 to vector<128x20xf32>
    %182 = arith.addf %180, %181 : vector<128x20xf32>
    %183 = arith.mulf %182, %175 : vector<128x20xf32>
    %cst_68 = arith.constant -0.284496725 : f32
    %184 = vector.broadcast %cst_68 : f32 to vector<128x20xf32>
    %185 = arith.addf %183, %184 : vector<128x20xf32>
    %186 = arith.mulf %185, %175 : vector<128x20xf32>
    %cst_69 = arith.constant 0.254829586 : f32
    %187 = vector.broadcast %cst_69 : f32 to vector<128x20xf32>
    %188 = arith.addf %186, %187 : vector<128x20xf32>
    %189 = arith.mulf %188, %175 : vector<128x20xf32>
    %cst_70 = arith.constant 0.000000e+00 : f32
    %190 = vector.broadcast %cst_70 : f32 to vector<128x20xf32>
    %191 = arith.subf %190, %170 : vector<128x20xf32>
    %192 = arith.mulf %191, %170 : vector<128x20xf32>
    %193 = math.exp %192 : vector<128x20xf32>
    %194 = arith.mulf %189, %193 : vector<128x20xf32>
    %cst_71 = arith.constant 1.000000e+00 : f32
    %195 = vector.broadcast %cst_71 : f32 to vector<128x20xf32>
    %196 = arith.subf %195, %194 : vector<128x20xf32>
    %197 = arith.mulf %169, %196 : vector<128x20xf32>
    %cst_72 = arith.constant 1.000000e+00 : f32
    %198 = vector.broadcast %cst_72 : f32 to vector<128x20xf32>
    %199 = arith.addf %198, %197 : vector<128x20xf32>
    %200 = arith.mulf %162, %199 : vector<128x20xf32>
    %c126_i32 = arith.constant 126 : i32
    %201 = tpu.dynamic_rotate %200 by %c126_i32 dim 0 : vector<128x20xf32>, i32 -> vector<128x20xf32>
    %cst_73 = arith.constant 0.000000e+00 : f32
    %202 = vector.shape_cast %12 : vector<128x1xi1> to vector<128x1xi1>
    %203 = vector.broadcast %202 : vector<128x1xi1> to vector<128x20xi1>
    %204 = vector.broadcast %cst_73 : f32 to vector<128x20xf32>
    %205 = arith.select %203, %201, %204 : vector<128x20xi1>, vector<128x20xf32>
    %206 = arith.truncf %205 : vector<128x20xf32> to vector<128x20xbf16>
    %c0_74 = arith.constant 0 : index
    %c0_75 = arith.constant 0 : index
    %c0_76 = arith.constant 0 : index
    %207 = vector.load %arg7[%c0_74, %c0_75, %c0_76] : memref<5x20x20xbf16, #tpu.memory_space<vmem>>, vector<1x20x20xbf16>
    %208 = vector.shape_cast %207 : vector<1x20x20xbf16> to vector<20x20xbf16>
    %cst_77 = arith.constant dense<0.000000e+00> : vector<128x20xf32>
    %209 = tpu.matmul %206, %208, %cst_77 {dimension_numbers = #tpu.dot_dimension_numbers<[1], [0], [0], [1], [0, 0, 1, 1], [], []>} : vector<128x20xbf16>, vector<20x20xbf16>, vector<128x20xf32> -> vector<128x20xf32>
    %c127_i32_78 = arith.constant 127 : i32
    %210 = tpu.dynamic_rotate %200 by %c127_i32_78 dim 0 : vector<128x20xf32>, i32 -> vector<128x20xf32>
    %cst_79 = arith.constant 0.000000e+00 : f32
    %211 = vector.shape_cast %14 : vector<128x1xi1> to vector<128x1xi1>
    %212 = vector.broadcast %211 : vector<128x1xi1> to vector<128x20xi1>
    %213 = vector.broadcast %cst_79 : f32 to vector<128x20xf32>
    %214 = arith.select %212, %210, %213 : vector<128x20xi1>, vector<128x20xf32>
    %215 = arith.truncf %214 : vector<128x20xf32> to vector<128x20xbf16>
    %c1_80 = arith.constant 1 : index
    %c0_81 = arith.constant 0 : index
    %c0_82 = arith.constant 0 : index
    %216 = vector.load %arg7[%c1_80, %c0_81, %c0_82] : memref<5x20x20xbf16, #tpu.memory_space<vmem>>, vector<1x20x20xbf16>
    %217 = vector.shape_cast %216 : vector<1x20x20xbf16> to vector<20x20xbf16>
    %cst_83 = arith.constant dense<0.000000e+00> : vector<128x20xf32>
    %218 = tpu.matmul %215, %217, %cst_83 {dimension_numbers = #tpu.dot_dimension_numbers<[1], [0], [0], [1], [0, 0, 1, 1], [], []>} : vector<128x20xbf16>, vector<20x20xbf16>, vector<128x20xf32> -> vector<128x20xf32>
    %219 = arith.addf %209, %218 : vector<128x20xf32>
    %220 = arith.truncf %200 : vector<128x20xf32> to vector<128x20xbf16>
    %c2_84 = arith.constant 2 : index
    %c0_85 = arith.constant 0 : index
    %c0_86 = arith.constant 0 : index
    %221 = vector.load %arg7[%c2_84, %c0_85, %c0_86] : memref<5x20x20xbf16, #tpu.memory_space<vmem>>, vector<1x20x20xbf16>
    %222 = vector.shape_cast %221 : vector<1x20x20xbf16> to vector<20x20xbf16>
    %cst_87 = arith.constant dense<0.000000e+00> : vector<128x20xf32>
    %223 = tpu.matmul %220, %222, %cst_87 {dimension_numbers = #tpu.dot_dimension_numbers<[1], [0], [0], [1], [0, 0, 1, 1], [], []>} : vector<128x20xbf16>, vector<20x20xbf16>, vector<128x20xf32> -> vector<128x20xf32>
    %224 = arith.addf %219, %223 : vector<128x20xf32>
    %c1_i32_88 = arith.constant 1 : i32
    %225 = tpu.dynamic_rotate %200 by %c1_i32_88 dim 0 : vector<128x20xf32>, i32 -> vector<128x20xf32>
    %cst_89 = arith.constant 0.000000e+00 : f32
    %226 = vector.shape_cast %8 : vector<128x1xi1> to vector<128x1xi1>
    %227 = vector.broadcast %226 : vector<128x1xi1> to vector<128x20xi1>
    %228 = vector.broadcast %cst_89 : f32 to vector<128x20xf32>
    %229 = arith.select %227, %225, %228 : vector<128x20xi1>, vector<128x20xf32>
    %230 = arith.truncf %229 : vector<128x20xf32> to vector<128x20xbf16>
    %c3_90 = arith.constant 3 : index
    %c0_91 = arith.constant 0 : index
    %c0_92 = arith.constant 0 : index
    %231 = vector.load %arg7[%c3_90, %c0_91, %c0_92] : memref<5x20x20xbf16, #tpu.memory_space<vmem>>, vector<1x20x20xbf16>
    %232 = vector.shape_cast %231 : vector<1x20x20xbf16> to vector<20x20xbf16>
    %cst_93 = arith.constant dense<0.000000e+00> : vector<128x20xf32>
    %233 = tpu.matmul %230, %232, %cst_93 {dimension_numbers = #tpu.dot_dimension_numbers<[1], [0], [0], [1], [0, 0, 1, 1], [], []>} : vector<128x20xbf16>, vector<20x20xbf16>, vector<128x20xf32> -> vector<128x20xf32>
    %234 = arith.addf %224, %233 : vector<128x20xf32>
    %c2_i32_94 = arith.constant 2 : i32
    %235 = tpu.dynamic_rotate %200 by %c2_i32_94 dim 0 : vector<128x20xf32>, i32 -> vector<128x20xf32>
    %cst_95 = arith.constant 0.000000e+00 : f32
    %236 = vector.shape_cast %10 : vector<128x1xi1> to vector<128x1xi1>
    %237 = vector.broadcast %236 : vector<128x1xi1> to vector<128x20xi1>
    %238 = vector.broadcast %cst_95 : f32 to vector<128x20xf32>
    %239 = arith.select %237, %235, %238 : vector<128x20xi1>, vector<128x20xf32>
    %240 = arith.truncf %239 : vector<128x20xf32> to vector<128x20xbf16>
    %c4_96 = arith.constant 4 : index
    %c0_97 = arith.constant 0 : index
    %c0_98 = arith.constant 0 : index
    %241 = vector.load %arg7[%c4_96, %c0_97, %c0_98] : memref<5x20x20xbf16, #tpu.memory_space<vmem>>, vector<1x20x20xbf16>
    %242 = vector.shape_cast %241 : vector<1x20x20xbf16> to vector<20x20xbf16>
    %cst_99 = arith.constant dense<0.000000e+00> : vector<128x20xf32>
    %243 = tpu.matmul %240, %242, %cst_99 {dimension_numbers = #tpu.dot_dimension_numbers<[1], [0], [0], [1], [0, 0, 1, 1], [], []>} : vector<128x20xbf16>, vector<20x20xbf16>, vector<128x20xf32> -> vector<128x20xf32>
    %244 = arith.addf %234, %243 : vector<128x20xf32>
    %c0_100 = arith.constant 0 : index
    %c0_101 = arith.constant 0 : index
    %245 = vector.load %arg8[%c0_100, %c0_101] : memref<1x20xf32, #tpu.memory_space<vmem>>, vector<1x20xf32>
    %246 = vector.broadcast %245 : vector<1x20xf32> to vector<128x20xf32>
    %247 = arith.addf %244, %246 : vector<128x20xf32>
    %c0_102 = arith.constant 0 : index
    %c0_103 = arith.constant 0 : index
    %c0_104 = arith.constant 0 : index
    %248 = vector.load %arg9[%c0_102, %c0_103, %c0_104] : memref<1x128x20xf32, #tpu.memory_space<vmem>>, vector<1x128x20xf32>
    %249 = vector.shape_cast %248 : vector<1x128x20xf32> to vector<128x20xf32>
    %250 = vector.shape_cast %247 : vector<128x20xf32> to vector<1x128x20xf32>
    tpu.vector_store %arg9[%c0_102, %c0_103, %c0_104], %250 {strides = array<i32>} : memref<1x128x20xf32, #tpu.memory_space<vmem>>, vector<1x128x20xf32>,
    return
  }
  func.func @transform_0(%arg0: i32, %arg1: i32) -> (i32, i32, i32) {
    %c0_i32 = arith.constant 0 : i32
    %c0_i32_0 = arith.constant 0 : i32
    %c0_i32_1 = arith.constant 0 : i32
    return %arg0, %c0_i32, %c0_i32_0 : i32, i32, i32
  }
  func.func @transform_1(%arg0: i32, %arg1: i32) -> (i32, i32, i32) {
    %c0_i32 = arith.constant 0 : i32
    %c0_i32_0 = arith.constant 0 : i32
    %c0_i32_1 = arith.constant 0 : i32
    %c0_i32_2 = arith.constant 0 : i32
    return %c0_i32, %c0_i32_0, %c0_i32_1 : i32, i32, i32
  }
  func.func @transform_2(%arg0: i32, %arg1: i32) -> (i32, i32) {
    %c0_i32 = arith.constant 0 : i32
    %c0_i32_0 = arith.constant 0 : i32
    %c0_i32_1 = arith.constant 0 : i32
    return %c0_i32, %c0_i32_0 : i32, i32
  }
  func.func @transform_3(%arg0: i32, %arg1: i32) -> (i32, i32) {
    %c0_i32 = arith.constant 0 : i32
    %c0_i32_0 = arith.constant 0 : i32
    %c0_i32_1 = arith.constant 0 : i32
    return %c0_i32, %c0_i32_0 : i32, i32
  }
  func.func @transform_4(%arg0: i32, %arg1: i32) -> (i32, i32) {
    %c0_i32 = arith.constant 0 : i32
    %c0_i32_0 = arith.constant 0 : i32
    %c0_i32_1 = arith.constant 0 : i32
    return %c0_i32, %c0_i32_0 : i32, i32
  }
  func.func @transform_5(%arg0: i32, %arg1: i32) -> (i32, i32, i32) {
    %c0_i32 = arith.constant 0 : i32
    %c0_i32_0 = arith.constant 0 : i32
    %c0_i32_1 = arith.constant 0 : i32
    %c0_i32_2 = arith.constant 0 : i32
    return %c0_i32, %c0_i32_0, %c0_i32_1 : i32, i32, i32
  }
  func.func @transform_6(%arg0: i32, %arg1: i32) -> (i32, i32) {
    %c0_i32 = arith.constant 0 : i32
    %c0_i32_0 = arith.constant 0 : i32
    %c0_i32_1 = arith.constant 0 : i32
    return %c0_i32, %c0_i32_0 : i32, i32
  }
  func.func @transform_7(%arg0: i32, %arg1: i32) -> (i32, i32, i32) {
    %c0_i32 = arith.constant 0 : i32
    %c0_i32_0 = arith.constant 0 : i32
    return %arg0, %arg1, %c0_i32 : i32, i32, i32
  }
}

</mosaic_0001>

<bundles_post_ra>
// kernel: tpu_custom_call.1
= control target key start
LH: loop header
LB: loop body
LE: loop exit
PB: predicated region body
PF: predicated region fallthrough
CT: control target
= control target key end

     0   :  { %s4663_s24 = smov 0   ;;  %s4665_s25 = smov 0   ;;  %s7030_s0 = inlined_call_operand.vmem [shape: f32[2,256,20], index: 0, kind: input, shape index: {}]   ;;  %s7031_s1 = inlined_call_operand.vmem [shape: bf16[5,20,20], index: 1, kind: input, shape index: {}]   ;;  %s7032_s2 = inlined_call_operand.vmem [shape: f32[1,20], index: 2, kind: input, shape index: {}]   ;;  %s7033_s3 = inlined_call_operand.vmem [shape: f32[9,20], index: 3, kind: input, shape index: {}]   ;;  %s7034_s4 = inlined_call_operand.vmem [shape: f32[1,20], index: 4, kind: input, shape index: {}]   ;;  %s7035_s5 = inlined_call_operand.vmem [shape: bf16[5,20,20], index: 5, kind: input, shape index: {}]   ;;  %s7036_s6 = inlined_call_operand.vmem [shape: f32[1,20], index: 6, kind: input, shape index: {}]   ;;  %s7037_s7 = inlined_call_operand.vmem [shape: f32[2,256,20], index: 7, kind: output, shape index: {}]  }
   0x1   :  { %s4667_s26 = smov 0   ;;  %s4669_s27 = smov 0  }
   0x2   :  { %s4671_s28 = smov 0  }
   0x3 LB: > { %s26_s29 = sadd.s32 1, %s4610_s26  ;;  %s29_s30 = sadd.s32 1, %s4614_s27  ;;  %s4618_s28 = sphi %s4671_s28, %s17_s28   ;;  %s4614_s27 = sphi %s4669_s27, %s7518_s27   ;;  %s4610_s26 = sphi %s4667_s26, %s7517_s26   ;;  %s4606_s25 = sphi %s4665_s25, %s7516_s25   ;;  %s4602_s24 = sphi %s4663_s24, %s7515_s24  }
   0x4   : > { %p27_p0 = scmp.ge.s32.totalorder %s26_s29, 2  ;;  %p3796_p1 = scmp.ge.s32.totalorder %s4618_s28, 1 }
   0x5   : > { %p251_p2 = scmp.lt.s32.totalorder %s4618_s28, 5 }
   0x6   : > { %s7520_s29 = smov (%p27_p0, %s26_s29), 0  ;;  %s7522_s30 = smov (!%p27_p0, %s29_s30), %s4614_s27 }
   0x7   : > { %p252_p3 = pnand %p3796_p1, %p251_p2  ;;  %p31_p4 = scmp.ge.s32.totalorder %s7522_s30, 2 }
   0x9   : > { %s7524_s30 = smov (%p31_p4, %s7522_s30), 0  ;;  %255 = sbr.rel (%p252_p3) target bundleno = 1029 (0x405), region = 48 }
  0x10   : > { %p287_p5 = scmp.lt.s32.totalorder %s4606_s25, 1  ;;  %s3799_s8 = sshll.u32 %s4602_s24, 4 }
  0x11   : > { %p295_p6 = scmp.lt.s32.totalorder %s3799_s8, 31  ;;  %s4697_s9 = sshll.u32 %s4602_s24, 3 }
  0x12   : > { %s7526_s25 = smov (!%p287_p5, %s4606_s25), 1  ;;  %p304_p7 = scmp.eq.s32.totalorder %s4602_s24, 0 }
  0x13   : > { %s7528_s8 = smov (!%p295_p6, %s3799_s8), 31  ;;  %s3958_s10 = sshll.u32 %s7526_s25, 8 }
  0x14   : > { %s3800_s11 = sshll.u32 %s7526_s25, 5  ;;  %s4702_s14 = scalar_lea.vmem %s7030_s0, %s3958_s10 }
  0x15   : > { %s298_s15 = sadd.s32 %s3800_s11, %s7528_s8  ;;  %p3803_p8 = scmp.ne.s32.totalorder %s4602_s24, 0 }
  0x16   : > { %s3801_s16 = sshll.u32 %s298_s15, 3  ;;  %vm308_vm0 = vcmask (!%p3803_p8), 162816   ;;  %v315_v0 = vld [vmem:[%s4702_s14] sm:$0xff] (!%p3803_p8)  ;;  %v316_v1 = vld [vmem:[%s4702_s14 + $0x8] sm:$0xff] (!%p3803_p8)  ;;  %v317_v2 = vld [vmem:[%s4702_s14 + $0x10] sm:$0xff] (!%p3803_p8)  ;;  %v4620_v3 = vmov (!%p3803_p8), 0  }
  0x17   : > { %s4708_s19 = scalar_lea.vmem %s7037_s7, %s3801_s16  ;;  %307 = sbr.rel (%p3803_p8) target bundleno = 38 (0x26), region = 52  ;;  %309 = vst.msk [vmem:[#allocation2] sm:$0xff] (!%p3803_p8), %vm308_vm0, %v4620_v3  ;;  %310 = vst.msk [vmem:[#allocation2 + $0x8] sm:$0xff] (!%p3803_p8), %vm308_vm0, %v4620_v3  ;;  %v347_v4 = vpack.c.bf16 (!%p3803_p8), %v316_v1, %v315_v0  ;;  %v318_v5 = vld [vmem:[%s4702_s14 + $0x18] sm:$0xff] (!%p3803_p8)  ;;  %v319_v6 = vld [vmem:[%s4702_s14 + $0x20] sm:$0xff] (!%p3803_p8) }
  0x18   : > { %311 = vst.msk [vmem:[#allocation2 + $0x10] sm:$0xff] (!%p3803_p8), %vm308_vm0, %v4620_v3  ;;  %312 = vst.msk [vmem:[#allocation2 + $0x98] sm:$0xff] (!%p3803_p8), %vm308_vm0, %v4620_v3  ;;  %v320_v7 = vld [vmem:[%s4702_s14 + $0x28] sm:$0xff] (!%p3803_p8)  ;;  %v348_v8 = vpack.c.bf16 (!%p3803_p8), %v318_v5, %v317_v2  ;;  %v321_v10 = vld [vmem:[%s4702_s14 + $0x30] sm:$0xff] (!%p3803_p8) }
  0x19   : > { %313 = vst.msk [vmem:[#allocation2 + $0xa0] sm:$0xff] (!%p3803_p8), %vm308_vm0, %v4620_v3  ;;  %314 = vst.msk [vmem:[#allocation2 + $0xa8] sm:$0xff] (!%p3803_p8), %vm308_vm0, %v4620_v3  ;;  %v349_v9 = vpack.c.bf16 (!%p3803_p8), %v320_v7, %v319_v6  ;;  %v322_v11 = vld [vmem:[%s4702_s14 + $0x38] sm:$0xff] (!%p3803_p8)  ;;  %v323_v12 = vld [vmem:[%s4702_s14 + $0x40] sm:$0xff] (!%p3803_p8) }
  0x1a   : > { %363 = vst.msk [vmem:[#allocation2 + $0x18] sm:$0xff] (!%p3803_p8), %vm308_vm0, %v347_v4  ;;  %v350_v13 = vpack.c.bf16 (!%p3803_p8), %v322_v11, %v321_v10  ;;  %v324_v14 = vld [vmem:[%s4702_s14 + $0x48] sm:$0xff] (!%p3803_p8)  ;;  %v325_v15 = vld [vmem:[%s4702_s14 + $0x50] sm:$0xff] (!%p3803_p8)  ;;  %v326_v16 = vld [vmem:[%s4702_s14 + $0x58] sm:$0xff] (!%p3803_p8) }
  0x1b   : > { %364 = vst.msk [vmem:[#allocation2 + $0x20] sm:$0xff] (!%p3803_p8), %vm308_vm0, %v348_v8  ;;  %365 = vst.msk [vmem:[#allocation2 + $0x28] sm:$0xff] (!%p3803_p8), %vm308_vm0, %v349_v9  ;;  %v351_v17 = vpack.c.bf16 (!%p3803_p8), %v324_v14, %v323_v12  ;;  %v352_v18 = vpack.c.bf16 (!%p3803_p8), %v326_v16, %v325_v15  ;;  %v327_v19 = vld [vmem:[%s4702_s14 + $0x60] sm:$0xff] (!%p3803_p8)  ;;  %v328_v20 = vld [vmem:[%s4702_s14 + $0x68] sm:$0xff] (!%p3803_p8) }
  0x1c   : > { %v329_v21 = vld [vmem:[%s4702_s14 + $0x70] sm:$0xff] (!%p3803_p8)  ;;  %366 = vst.msk [vmem:[#allocation2 + $0x30] sm:$0xff] (!%p3803_p8), %vm308_vm0, %v350_v13  ;;  %v353_v22 = vpack.c.bf16 (!%p3803_p8), %v328_v20, %v327_v19  ;;  %v330_v23 = vld [vmem:[%s4702_s14 + $0x78] sm:$0xff] (!%p3803_p8)  ;;  %v331_v24 = vld [vmem:[%s4702_s14 + $0x80] sm:$0xff] (!%p3803_p8) }
  0x1d   : > { %v332_v25 = vld [vmem:[%s4702_s14 + $0x88] sm:$0xff] (!%p3803_p8)  ;;  %367 = vst.msk [vmem:[#allocation2 + $0x38] sm:$0xff] (!%p3803_p8), %vm308_vm0, %v351_v17  ;;  %368 = vst.msk [vmem:[#allocation2 + $0x40] sm:$0xff] (!%p3803_p8), %vm308_vm0, %v352_v18  ;;  %v354_v26 = vpack.c.bf16 (!%p3803_p8), %v330_v23, %v329_v21  ;;  %v333_v28 = vld [vmem:[%s4702_s14 + $0x90] sm:$0xff] (!%p3803_p8) }
  0x1e   : > { %v355_v27 = vpack.c.bf16 %v332_v25, %v331_v24  ;;  %v334_v29 = vld [vmem:[%s4702_s14 + $0x98] sm:$0xff]  ;;  %v335_v30 = vld [vmem:[%s4702_s14 + $0xa0] sm:$0xff]  ;;  %369 = vst.msk [vmem:[#allocation2 + $0x48] sm:$0xff] %vm308_vm0, %v353_v22  ;;  %v336_v32 = vld [vmem:[%s4702_s14 + $0xa8] sm:$0xff] }
  0x1f   : > { %v356_v31 = vpack.c.bf16 %v334_v29, %v333_v28  ;;  %v337_v33 = vld [vmem:[%s4702_s14 + $0xb0] sm:$0xff]  ;;  %v338_v34 = vld [vmem:[%s4702_s14 + $0xb8] sm:$0xff]  ;;  %370 = vst.msk [vmem:[#allocation2 + $0x50] sm:$0xff] %vm308_vm0, %v354_v26  ;;  %v357_v35 = vpack.c.bf16 %v336_v32, %v335_v30  ;;  %v339_v37 = vld [vmem:[%s4702_s14 + $0xc0] sm:$0xff] }
  0x20   : > { %371 = vst.msk [vmem:[#allocation2 + $0x58] sm:$0xff] %vm308_vm0, %v355_v27  ;;  %v358_v36 = vpack.c.bf16 %v338_v34, %v337_v33  ;;  %v340_v38 = vld [vmem:[%s4702_s14 + $0xc8] sm:$0xff]  ;;  %v341_v39 = vld [vmem:[%s4702_s14 + $0xd0] sm:$0xff]  ;;  %v342_v41 = vld [vmem:[%s4702_s14 + $0xd8] sm:$0xff] }
  0x21   : > { %372 = vst.msk [vmem:[#allocation2 + $0x60] sm:$0xff] %vm308_vm0, %v356_v31  ;;  %v359_v40 = vpack.c.bf16 %v340_v38, %v339_v37  ;;  %v343_v42 = vld [vmem:[%s4702_s14 + $0xe0] sm:$0xff]  ;;  %v344_v43 = vld [vmem:[%s4702_s14 + $0xe8] sm:$0xff]  ;;  %373 = vst.msk [vmem:[#allocation2 + $0x68] sm:$0xff] %vm308_vm0, %v357_v35  ;;  %v360_v44 = vpack.c.bf16 %v342_v41, %v341_v39 }
  0x22   : > { %374 = vst.msk [vmem:[#allocation2 + $0x70] sm:$0xff] %vm308_vm0, %v358_v36  ;;  %v361_v45 = vpack.c.bf16 %v344_v43, %v343_v42  ;;  %v345_v46 = vld [vmem:[%s4702_s14 + $0xf0] sm:$0xff]  ;;  %v346_v47 = vld [vmem:[%s4702_s14 + $0xf8] sm:$0xff] }
  0x23   : > { %375 = vst.msk [vmem:[#allocation2 + $0x78] sm:$0xff] %vm308_vm0, %v359_v40  ;;  %v362_v48 = vpack.c.bf16 %v346_v47, %v345_v46  ;;  %376 = vst.msk [vmem:[#allocation2 + $0x80] sm:$0xff] %vm308_vm0, %v360_v44 }
  0x24   : > { %377 = vst.msk [vmem:[#allocation2 + $0x88] sm:$0xff] %vm308_vm0, %v361_v45 }
  0x25   : > { %378 = vst.msk [vmem:[#allocation2 + $0x90] sm:$0xff] %vm308_vm0, %v362_v48 }
  0x26 PF: > { %v4494_v49 = vld [vmem:[%s7031_s1 + $0xc] sm:$0xff]   ;;  %vm7112_vm1 = vcmask 1041408   ;;  %v4495_v50 = vld [vmem:[%s7031_s1 + $0x14] ss:$0 sps:$4 sm:$0x33]   ;;  %s3961_s25 = sshll.u32 %s4602_s24, 7 }
  0x27   : > { %4072 = vmatprep.subr.bf16.mxu0 %v4494_v49  ;;  %s628_s8 = sadd.s32 48, %s3961_s25  ;;  %4292 = vmatprep.subr.bf16.mxu1 %v4494_v49  ;;  %vm7106_vm2 = vcmask 162816   ;;  %v4496_v51 = vld [vmem:[%s7031_s1] sm:$0xff]   ;;  %v689_v52 = vsel %vm7112_vm1, %v4495_v50, 0  ;;  %s3960_s17 = sadd.s32 16, %s3961_s25  ;;  %v4498_v58 = vld [vmem:[%s7031_s1 + $0x18] sm:$0xff]  }
  0x28   : > { %4073 = vmatpush3.bf16.msra.mxu0 %v4494_v49  ;;  %s629_s10 = sshra.s32 %s628_s8, 4  ;;  %4294 = vmatpush3.bf16.msra.mxu1 %v4494_v49  ;;  %v4497_v56 = vld [vmem:[%s7031_s1 + $0x8] ss:$0 sps:$4 sm:$0x33]   ;;  %s609_s18 = sadd.s32 48, %s3960_s17  ;;  %v4502_v20 = vld [vmem:[%s7031_s1 + $0x30] sm:$0xff]  }
  0x29   : > { %4440 = vmatprep.subr.msk.bf16.mxu0 %vm7112_vm1, %v4495_v50  ;;  %s3808_s13 = sshll.u32 %s629_s10, 3  ;;  %4441 = vmatprep.subr.msk.bf16.mxu1 %vm7112_vm1, %v4495_v50  ;;  %v844_v57 = vsel %vm7112_vm1, %v4497_v56, 0  ;;  %s610_s22 = sshra.s32 %s609_s18, 4  ;;  %v4499_v1 = vld [vmem:[%s7031_s1 + $0x20] ss:$0 sps:$4 sm:$0x33]  }
  0x2a   : > { %s4778_s14 = scalar_lea.vmem [#allocation2], %s3808_s13  ;;  %s3806_s23 = sshll.u32 %s610_s22, 3  ;;  %v1020_v2 = vsel %vm7112_vm1, %v4499_v1, 0  ;;  %v4500_v3 = vld [vmem:[%s7031_s1 + $0x24] sm:$0xff]   ;;  %vm4621_vm4 = vmmov 1  }
  0x2b   : > { %s4799_s25 = scalar_lea.vmem [#allocation2], %s3806_s23  ;;  %s3836_s13 = sadd.s32 4294967295, %s4697_s9  ;;  %v4501_v18 = vld [vmem:[%s7031_s1 + $0x2c] ss:$0 sps:$4 sm:$0x33]  }
  0x2c   : > { %v633_v53 = vld [vmem:[%s4778_s14] sm:$0xff]  ;;  %4075 = vmatpush3.bf16.msra.mxu0 %v689_v52  ;;  %v634_v54 = vld [vmem:[%s4778_s14 + $0x8] sm:$0xff]  ;;  %v635_v55 = vld [vmem:[%s4778_s14 + $0x10] sm:$0xff]  ;;  %4295 = vmatpush3.bf16.msra.mxu1 %v689_v52  ;;  %s3837_s15 = sshll.u32 %s3836_s13, 4  ;;  %v1216_v19 = vsel %vm7112_vm1, %v4501_v18, 0  ;;  %p480_p9 = scmp.eq.s32.totalorder %s4602_s24, 1 }
  0x2d   : > { %4076 = vmatprep.mubr.msk.bf16.mxu0 %vm7106_vm2, %v633_v53  ;;  %4096 = vmatprep.subr.bf16.mxu0 %v4496_v51  ;;  %v636_v59 = vld [vmem:[%s4778_s14 + $0x18] sm:$0xff]  ;;  %v637_v60 = vld [vmem:[%s4778_s14 + $0x20] sm:$0xff]  ;;  %v638_v61 = vld [vmem:[%s4778_s14 + $0x28] sm:$0xff]  ;;  %s961_s16 = sadd.s32 48, %s3837_s15 }
  0x2e   : > { %v614_v62 = vld [vmem:[%s4799_s25] sm:$0xff]  ;;  %v615_v63 = vld [vmem:[%s4799_s25 + $0x8] sm:$0xff]  ;;  %v616_v0 = vld [vmem:[%s4799_s25 + $0x10] sm:$0xff]  ;;  %s962_s17 = sshra.s32 %s961_s16, 4 }
  0x2f   : > { %4077 = vmatmul.mubr.msk.bf16.vlgmr.msra.gmra.mrb[0].mxu0 %vm7106_vm2, %v634_v54  ;;  %v617_v4 = vld [vmem:[%s4799_s25 + $0x18] sm:$0xff]  ;;  %v618_v5 = vld [vmem:[%s4799_s25 + $0x20] sm:$0xff]  ;;  %v639_v6 = vld [vmem:[%s4778_s14 + $0x30] sm:$0xff]  ;;  %s3838_s18 = sshll.u32 %s962_s17, 3  ;;  %s3872_s17 = sadd.s32 4294967293, %s4697_s9 }
  0x30   : > { %4097 = vmatpush3.bf16.msra.mxu0 %v4496_v51  ;;  %4080 = vmatprep.mubr.msk.bf16.mxu0 %vm7106_vm2, %v635_v55  ;;  %v640_v7 = vld [vmem:[%s4778_s14 + $0x38] sm:$0xff]  ;;  %v619_v8 = vld [vmem:[%s4799_s25 + $0x28] sm:$0xff]  ;;  %v620_v9 = vld [vmem:[%s4799_s25 + $0x30] sm:$0xff]  ;;  %s4838_s20 = scalar_lea.vmem [#allocation2], %s3838_s18  ;;  %s3873_s18 = sshll.u32 %s3872_s17, 4 }
  0x31   : > { %4442 = vmatprep.subr.msk.bf16.mxu0 %vm7112_vm1, %v4497_v56  ;;  %4088 = vmatprep.mubr.msk.bf16.mxu1 %vm7106_vm2, %v639_v6  ;;  %v641_v10 = vld [vmem:[%s4778_s14 + $0x40] sm:$0xff]  ;;  %v642_v11 = vld [vmem:[%s4778_s14 + $0x48] sm:$0xff]  ;;  %v621_v12 = vld [vmem:[%s4799_s25 + $0x38] sm:$0xff]  ;;  %s5369_s24 = scalar_select %p480_p9, 1, 0 }
  0x32   : > { %4089 = vmatmul.mubr.msk.bf16.vlgmr.msra.gmra.mrb[0].mxu1 %vm7106_vm2, %v640_v7  ;;  %v622_v13 = vld [vmem:[%s4799_s25 + $0x40] sm:$0xff]  ;;  %v623_v14 = vld [vmem:[%s4799_s25 + $0x48] sm:$0xff]  ;;  %v968_v17 = vld [vmem:[%s4838_s20 + $0x10] sm:$0xff]  ;;  %s3854_s25 = sadd.s32 4294967294, %s4697_s9 }
  0x33   : > { %4092 = vmatprep.mubr.msk.bf16.mxu1 %vm7106_vm2, %v641_v10  ;;  %v966_v15 = vld [vmem:[%s4838_s20] sm:$0xff]  ;;  %v967_v16 = vld [vmem:[%s4838_s20 + $0x8] sm:$0xff]  ;;  %v969_v21 = vld [vmem:[%s4838_s20 + $0x18] sm:$0xff]  ;;  %s3855_s8 = sshll.u32 %s3854_s25, 4 }
  0x34   : > { %4099 = vmatpush3.bf16.msra.mxu0 %v844_v57  ;;  %v970_v22 = vld [vmem:[%s4838_s20 + $0x20] sm:$0xff]  ;;  %v971_v23 = vld [vmem:[%s4838_s20 + $0x28] sm:$0xff]  ;;  %v972_v24 = vld [vmem:[%s4838_s20 + $0x30] sm:$0xff]  ;;  %s1157_s10 = sadd.s32 48, %s3855_s8 }
  0x35   : > { %4120 = vmatprep.subr.bf16.mxu0 %v4498_v58  ;;  %v973_v25 = vld [vmem:[%s4838_s20 + $0x38] sm:$0xff]  ;;  %s1158_s11 = sshra.s32 %s1157_s10, 4  ;;  %v974_v26 = vld [vmem:[%s4838_s20 + $0x40] sm:$0xff]  ;;  %v975_v27 = vld [vmem:[%s4838_s20 + $0x48] sm:$0xff]  ;;  %s1353_s20 = sadd.s32 48, %s3873_s18 }
  0x36   : > { %s3856_s12 = sshll.u32 %s1158_s11, 3  ;;  %v4503_v31 = vld [vmem:[%s7031_s1 + $0x38] ss:$0 sps:$4 sm:$0x33]   ;;  %s1354_s14 = sshra.s32 %s1353_s20, 4 }
  0x37   : > { %4081 = vmatmul.mubr.msk.bf16.gmra.mrb[4].mxu0 %vm7106_vm2, %v636_v59  ;;  %s1161_s13 = scalar_lea.vmem [#allocation2], %s3856_s12  ;;  %v1412_v32 = vsel %vm7112_vm1, %v4503_v31, 0  ;;  %s3874_s21 = sshll.u32 %s1354_s14, 3 }
  0x38   : > { %4084 = vmatprep.mubr.msk.bf16.mxu0 %vm7106_vm2, %v637_v60  ;;  %v1162_v28 = vld [vmem:[%s1161_s13] sm:$0xff]  ;;  %v1163_v29 = vld [vmem:[%s1161_s13 + $0x8] sm:$0xff]  ;;  %v1164_v30 = vld [vmem:[%s1161_s13 + $0x10] sm:$0xff]  ;;  %s1357_s22 = scalar_lea.vmem [#allocation2], %s3874_s21 }
  0x39   : > { %v1165_v33 = vld [vmem:[%s1161_s13 + $0x18] sm:$0xff]  ;;  %v1166_v34 = vld [vmem:[%s1161_s13 + $0x20] sm:$0xff]  ;;  %v1167_v35 = vld [vmem:[%s1161_s13 + $0x28] sm:$0xff]  ;;  %s501_s9 = scalar_select %p304_p7, 1, 0 }
  0x3a   : > { %4093 = vmatmul.mubr.msk.bf16.gmra.mrb[4].mxu1 %vm7106_vm2, %v642_v11  ;;  %v1168_v36 = vld [vmem:[%s1161_s13 + $0x30] sm:$0xff]  ;;  %v1169_v37 = vld [vmem:[%s1161_s13 + $0x38] sm:$0xff]  ;;  %v1170_v38 = vld [vmem:[%s1161_s13 + $0x40] sm:$0xff] }
  0x3b   : > { %v1171_v39 = vld [vmem:[%s1161_s13 + $0x48] sm:$0xff]  ;;  %v1358_v40 = vld [vmem:[%s1357_s22] sm:$0xff]  ;;  %v1360_v42 = vld [vmem:[%s1357_s22 + $0x10] sm:$0xff]  ;;  %v502_v60 = vstv %s501_s9 }
  0x3c   : > { %v1359_v41 = vld [vmem:[%s1357_s22 + $0x8] sm:$0xff]  ;;  %v1361_v43 = vld [vmem:[%s1357_s22 + $0x18] sm:$0xff]  ;;  %v1362_v44 = vld [vmem:[%s1357_s22 + $0x20] sm:$0xff]  ;;  %vm503_vm3 = vcmp.eq.s32.totalorder %v502_v60, 1 }
  0x3d   : > { %v1363_v45 = vld [vmem:[%s1357_s22 + $0x28] sm:$0xff]  ;;  %v1364_v46 = vld [vmem:[%s1357_s22 + $0x30] sm:$0xff]  ;;  %v1365_v47 = vld [vmem:[%s1357_s22 + $0x38] sm:$0xff] }
  0x3e   : > { %v1366_v48 = vld [vmem:[%s1357_s22 + $0x40] sm:$0xff]  ;;  %v1367_v49 = vld [vmem:[%s1357_s22 + $0x48] sm:$0xff]  ;;  %vm4950_vm5 = vmxor %vm503_vm3, %vm4621_vm4 }
  0x3f   : > { %4085 = vmatmul.mubr.msk.bf16.gmra.mrb[8].mxu0 %vm7106_vm2, %v638_v61 }
  0x40   : > { %4100 = vmatprep.mubr.msk.bf16.mxu0 %vm7106_vm2, %v614_v62 }
  0x47   : > { %4101 = vmatmul.mubr.msk.bf16.vlgmr.msra.gmra.mrb[0].mxu0 %vm7106_vm2, %v615_v63 }
  0x48   : > { %4121 = vmatpush3.bf16.msra.mxu0 %v4498_v58  ;;  %4104 = vmatprep.mubr.msk.bf16.mxu0 %vm7106_vm2, %v616_v0  ;;  %v379_v58 = vlaneseq  ;;  %v4926_v0 = vld [vmem:[%s7033_s3] sm:$0xff] }
  0x49   : > { %4443 = vmatprep.subr.msk.bf16.mxu0 %vm7112_vm1, %v4499_v1 }
  0x4a   : > { %v4914_v59 = vshrl.u32 %v379_v58, 7 }
  0x4c   : > { %4123 = vmatpush3.bf16.msra.mxu0 %v1020_v2  ;;  %v1820_v61 = vsub.s32 1, %v4914_v59  ;;  %v4918_v62 = vadd.s32 8, %v4914_v59  ;;  %v4921_v63 = vadd.s32 16, %v4914_v59  ;;  %v1970_v1 = vsub.s32 4, %v4914_v59  ;;  %v4932_v2 = vld [vmem:[%s7032_s2] ss:$0 sm:$0xff] }
  0x4d   : > { %4144 = vmatprep.subr.bf16.mxu0 %v4500_v3  ;;  %v2006_v6 = vsub.s32 5, %v4914_v59  ;;  %v1934_v11 = vsub.s32 3, %v4914_v59  ;;  %vm7114_vm6 = vcmp.lt.s32.totalorder %v4914_v59, 1  ;;  %vm7137_vm7 = vcmp.lt.s32.totalorder %v4914_v59, 7 }
  0x4e   : > { %7150 = vst [vmem:[#allocation7_spill] sm:$0xff] %v4918_v62  ;;  %7151 = vst [vmem:[#allocation8_spill] sm:$0xff] %v4921_v63  ;;  %v4938_v7 = vrot.slane %v4926_v0, %v1820_v61  ;;  %v7039_v10 = vand.u32 15, %v4921_v63 }
  0x4f   : > { %4105 = vmatmul.mubr.msk.bf16.gmra.mrb[4].mxu0 %vm7106_vm2, %v617_v4 }
  0x50   : > { %4108 = vmatprep.mubr.msk.bf16.mxu0 %vm7106_vm2, %v618_v5  ;;  %v1856_v5 = vsub.s32 2, %v4914_v59  ;;  %vm4982_vm8 = vcmp.ge.s32.totalorder %v7039_v10, 1 }
  0x57   : > { %4109 = vmatmul.mubr.msk.bf16.gmra.mrb[8].mxu0 %vm7106_vm2, %v619_v8 }
  0x58   : > { %4112 = vmatprep.mubr.msk.bf16.mxu0 %vm7106_vm2, %v620_v9  ;;  %v7041_v9 = vand.u32 15, %v4918_v62 }
  0x5a   : > { %vm4988_vm9 = vcmp.le.s32.totalorder %v7041_v9, 14 }
  0x5f   : > { %4113 = vmatmul.mubr.msk.bf16.gmra.mrb[12].mxu0 %vm7106_vm2, %v621_v12 }
  0x60   : > { %4116 = vmatprep.mubr.msk.bf16.mxu0 %vm7106_vm2, %v622_v13  ;;  %v4947_v13 = vrot.slane %v4926_v0, %v1970_v1 }
  0x67   : > { %4117 = vmatmul.mubr.msk.bf16.gmra.mrb[16].mxu0 %vm7106_vm2, %v623_v14  ;;  %v7165_v14 = vmov 0 }
  0x68   : > { %4124 = vmatprep.mubr.msk.bf16.mxu0 %vm7106_vm2, %v966_v15 }
  0x6f   : > { %4125 = vmatmul.mubr.msk.bf16.vlgmr.msra.gmra.mrb[0].mxu0 %vm7106_vm2, %v967_v16 }
  0x70   : > { %4145 = vmatpush3.bf16.msra.mxu0 %v4500_v3  ;;  %4128 = vmatprep.mubr.msk.bf16.mxu0 %vm7106_vm2, %v968_v17  ;;  %v1800_v3 = vsub.s32 0, %v4914_v59 }
  0x71   : > { %4444 = vmatprep.subr.msk.bf16.mxu0 %vm7112_vm1, %v4501_v18 }
  0x72   : > { %v4958_v17 = vrot.slane %v4926_v0, %v1800_v3 }
  0x74   : > { %4147 = vmatpush3.bf16.msra.mxu0 %v1216_v19  ;;  %v4961_v19 = vadd.s32 24, %v4914_v59 }
  0x75   : > { %4168 = vmatprep.subr.bf16.mxu0 %v4502_v20 }
  0x76   : > { %7154 = vst [vmem:[#allocation9_spill] sm:$0xff] %v4961_v19 }
  0x77   : > { %4129 = vmatmul.mubr.msk.bf16.gmra.mrb[4].mxu0 %vm7106_vm2, %v969_v21 }
  0x78   : > { %4132 = vmatprep.mubr.msk.bf16.mxu0 %vm7106_vm2, %v970_v22  ;;  %v4970_v22 = vrot.slane %v4926_v0, %v1856_v5 }
  0x7f   : > { %4133 = vmatmul.mubr.msk.bf16.gmra.mrb[8].mxu0 %vm7106_vm2, %v971_v23  ;;  %v4973_v23 = vrot.slane %v4926_v0, %v2006_v6 }
  0x80   : > { %4136 = vmatprep.mubr.msk.bf16.mxu0 %vm7106_vm2, %v972_v24 }
  0x87   : > { %4137 = vmatmul.mubr.msk.bf16.gmra.mrb[12].mxu0 %vm7106_vm2, %v973_v25 }
  0x88   : > { %4140 = vmatprep.mubr.msk.bf16.mxu0 %vm7106_vm2, %v974_v26  ;;  %v7156_v26 = vmov 0 }
  0x89   : > { %v7157_v26 = vsel %vm4982_vm8, 4294967295, %v7156_v26 }
  0x8a   : > { %7158 = vst [vmem:[#allocation11_spill] sm:$0xff] %v7157_v26 }
  0x8f   : > { %4141 = vmatmul.mubr.msk.bf16.gmra.mrb[16].mxu0 %vm7106_vm2, %v975_v27  ;;  %v7159_v27 = vmov 0 }
  0x90   : > { %4148 = vmatprep.mubr.msk.bf16.mxu0 %vm7106_vm2, %v1162_v28  ;;  %v7160_v27 = vsel %vm4988_vm9, 4294967295, %v7159_v27  ;;  %v4993_v28 = vrot.slane %v4926_v0, %v1934_v11 }
  0x91   : > { %7161 = vst [vmem:[#allocation12_spill] sm:$0xff] %v7160_v27 }
  0x97   : > { %4149 = vmatmul.mubr.msk.bf16.vlgmr.msra.gmra.mrb[0].mxu0 %vm7106_vm2, %v1163_v29 }
  0x98   : > { %4169 = vmatpush3.bf16.msra.mxu0 %v4502_v20  ;;  %4152 = vmatprep.mubr.msk.bf16.mxu0 %vm7106_vm2, %v1164_v30  ;;  %v4964_v20 = vadd.s32 32, %v4914_v59 }
  0x99   : > { %4445 = vmatprep.subr.msk.bf16.mxu0 %vm7112_vm1, %v4503_v31 }
  0x9a   : > { %7155 = vst [vmem:[#allocation10_spill] sm:$0xff] %v4964_v20 }
  0x9c   : > { %4171 = vmatpush3.bf16.msra.mxu0 %v1412_v32  ;;  %v2120_v32 = vsub.s32 7, %v4914_v59 }
  0x9f   : > { %4153 = vmatmul.mubr.msk.bf16.gmra.mrb[4].mxu0 %vm7106_vm2, %v1165_v33 }
  0xa0   : > { %4156 = vmatprep.mubr.msk.bf16.mxu0 %vm7106_vm2, %v1166_v34 }
  0xa7   : > { %4157 = vmatmul.mubr.msk.bf16.gmra.mrb[8].mxu0 %vm7106_vm2, %v1167_v35  ;;  %v7040_v35 = vand.u32 15, %v4961_v19 }
  0xa8   : > { %4160 = vmatprep.mubr.msk.bf16.mxu0 %vm7106_vm2, %v1168_v36  ;;  %v7038_v36 = vand.u32 15, %v4964_v20  ;;  %v5144_v20 = vrot.slane %v4926_v0, %v2120_v32 }
  0xa9   : > { %vm5063_vm11 = vcmp.le.s32.totalorder %v7040_v35, 14 }
  0xaa   : > { %vm5054_vm10 = vcmp.ge.s32.totalorder %v7038_v36, 1 }
  0xab   : > { %v7166_v14 = vsel %vm5054_vm10, 4294967295, %v7165_v14 }
  0xac   : > { %7167 = vst [vmem:[#allocation16_spill] sm:$0xff] %v7166_v14 }
  0xaf   : > { %4161 = vmatmul.mubr.msk.bf16.gmra.mrb[12].mxu0 %vm7106_vm2, %v1169_v37 }
  0xb0   : > { %4164 = vmatprep.mubr.msk.bf16.mxu0 %vm7106_vm2, %v1170_v38 }
  0xb7   : > { %4165 = vmatmul.mubr.msk.bf16.gmra.mrb[16].mxu0 %vm7106_vm2, %v1171_v39 }
  0xb8   : > { %4172 = vmatprep.mubr.msk.bf16.mxu0 %vm7106_vm2, %v1358_v40 }
  0xbf   : > { %4173 = vmatmul.mubr.msk.bf16.vlgmr.msra.gmra.mrb[0].mxu0 %vm7106_vm2, %v1359_v41 }
  0xc0   : > { %4176 = vmatprep.mubr.msk.bf16.mxu0 %vm7106_vm2, %v1360_v42 }
  0xc7   : > { %4177 = vmatmul.mubr.msk.bf16.gmra.mrb[4].mxu0 %vm7106_vm2, %v1361_v43 }
  0xc8   : > { %4180 = vmatprep.mubr.msk.bf16.mxu0 %vm7106_vm2, %v1362_v44 }
  0xcf   : > { %4181 = vmatmul.mubr.msk.bf16.gmra.mrb[8].mxu0 %vm7106_vm2, %v1363_v45 }
  0xd0   : > { %4184 = vmatprep.mubr.msk.bf16.mxu0 %vm7106_vm2, %v1364_v46  ;;  %v5025_v46 = vadd.s32 48, %v4914_v59 }
  0xd2   : > { %7164 = vst [vmem:[#allocation15_spill] sm:$0xff] %v5025_v46 }
  0xd7   : > { %4185 = vmatmul.mubr.msk.bf16.gmra.mrb[12].mxu0 %vm7106_vm2, %v1365_v47 }
  0xd8   : > { %4188 = vmatprep.mubr.msk.bf16.mxu0 %vm7106_vm2, %v1366_v48 }
  0xdf   : > { %4189 = vmatmul.mubr.msk.bf16.gmra.mrb[16].mxu0 %vm7106_vm2, %v1367_v49 }
 0x105   : > { %v4896_v50 = vpop.f32.mrb[0].mxu1 }
 0x106   : > { %v4898_v51 = vpop.f32.mrb[1].mxu1 }
 0x107   : > { %v4900_v52 = vpop.f32.mrb[2].mxu1 }
 0x108   : > { %v4902_v53 = vpop.f32.mrb[3].mxu1 }
 0x10d   : > { %v4904_v54 = vpop.f32.mrb[4].mxu1 }
 0x10e   : > { %7146 = vst [vmem:[#allocation3_spill] sm:$0xff] %v4904_v54  ;;  %v4906_v55 = vpop.f32.mrb[5].mxu1 }
 0x10f   : > { %7147 = vst [vmem:[#allocation4_spill] sm:$0xff] %v4906_v55  ;;  %v4908_v56 = vpop.f32.mrb[6].mxu1 }
 0x110   : > { %7148 = vst [vmem:[#allocation5_spill] sm:$0xff] %v4908_v56  ;;  %v4910_v57 = vpop.f32.mrb[7].mxu1 }
 0x111   : > { %7149 = vst [vmem:[#allocation6_spill] sm:$0xff] %v4910_v57 }
 0x192   : > { %v4174_v4 = vpop.f32.mrb[0].mxu0 }
 0x193   : > { %v1448_v8 = vpop.f32.mrb[1].mxu0  ;;  %v4944_v12 = vadd.f32 %v4174_v4, %v4932_v2 }
 0x194   : > { %v1554_v15 = vadd.f32 %v4932_v2, %v1448_v8  ;;  %v4175_v16 = vpop.f32.mrb[2].mxu0 }
 0x195   : > { %v1451_v18 = vpop.f32.mrb[3].mxu0  ;;  %v4967_v21 = vadd.f32 %v4175_v16, %v4932_v2  ;;  %v4996_v29 = vrot.slane %v4944_v12, 7  ;;  %v5002_v33 = vrot.slane %v4944_v12, 1  ;;  %v1824_v6 = vmul.f32 %v4938_v7, %v4944_v12 }
 0x196   : > { %v1555_v24 = vadd.f32 %v4932_v2, %v1451_v18  ;;  %v4978_v25 = vsel %vm4950_vm5, %v1554_v15, 0.0  ;;  %v7168_v18 = vmov 0 }
 0x197   : > { %7162 = vst [vmem:[#allocation13_spill] sm:$0xff] %v4996_v29  ;;  %v1639_v30 = vrot.slane %v4967_v21, 7  ;;  %v1720_v31 = vrot.slane %v4967_v21, 1  ;;  %7163 = vst [vmem:[#allocation14_spill] sm:$0xff] %v5002_v33  ;;  %v7042_v37 = vrot.slane %v4978_v25, 7  ;;  %v1825_v44 = vmul.f32 %v4938_v7, %v4967_v21 }
 0x198   : > { %v5006_v34 = vsel %vm4950_vm5, %v1555_v24, 0.0  ;;  %v7169_v18 = vsel %vm5063_vm11, 4294967295, %v7168_v18 }
 0x199   : > { %v1665_v38 = vsel %vm7114_vm6, %v4996_v29, %v1639_v30  ;;  %v1637_v39 = vrot.slane %v5006_v34, 7  ;;  %v7043_v40 = vrot.slane %v5006_v34, 1  ;;  %v5019_v42 = vsel %vm7137_vm7, %v5002_v33, %v1720_v31  ;;  %7170 = vst [vmem:[#allocation17_spill] sm:$0xff] %v7169_v18 }
 0x19a   : > { %v4178_v41 = vpop.f32.mrb[4].mxu0  ;;  %v1805_v43 = vmul.f32 %v4958_v17, %v1665_v38  ;;  %v1823_v58 = vmul.f32 %v4938_v7, %v5006_v34  ;;  %v5372_v18 = vadd.s32 112, %v4914_v59 }
 0x19b   : > { %v1464_v45 = vpop.f32.mrb[5].mxu0  ;;  %v1666_v47 = vsel %vm7114_vm6, %v1637_v39, %v4996_v29  ;;  %v1667_v48 = vsel %vm7114_vm6, %v7042_v37, %v1637_v39  ;;  %v1747_v49 = vsel %vm7137_vm7, %v7043_v40, %v5002_v33  ;;  %v5059_v16 = vadd.f32 %v4178_v41, %v4932_v2 }
 0x19c   : > { %v4179_v60 = vpop.f32.mrb[6].mxu0  ;;  %v5041_v61 = vadd.f32 %v1825_v44, %v1805_v43  ;;  %v1703_v1 = vsel %vm4982_vm8, %v1666_v47, 0.0  ;;  %v1783_v3 = vsel %vm4988_vm9, %v1747_v49, 0.0  ;;  %v1803_v4 = vmul.f32 %v4958_v17, %v1667_v48  ;;  %7196 = vst [vmem:[#allocation35_spill] sm:$0xff] %v5372_v18 }
 0x19d   : > { %v1467_v5 = vpop.f32.mrb[7].mxu0  ;;  %v1804_v8 = vmul.f32 %v4958_v17, %v1703_v1  ;;  %v1859_v11 = vmul.f32 %v4970_v22, %v1783_v3  ;;  %v5068_v24 = vadd.f32 %v4932_v2, %v1464_v45  ;;  %v1860_v39 = vmul.f32 %v4970_v22, %v5019_v42 }
 0x19e   : > { %v1839_v15 = vadd.f32 %v1823_v58, %v1803_v4  ;;  %v5073_v44 = vadd.f32 %v4179_v60, %v4932_v2  ;;  %v2084_v47 = vsub.s32 6, %v4914_v59  ;;  %v1937_v48 = vmul.f32 %v4993_v28, %v1665_v38 }
 0x19f   : > { %7171 = vst [vmem:[#allocation18_spill] sm:$0xff] %v5068_v24  ;;  %v1840_v43 = vadd.f32 %v1824_v6, %v1804_v8  ;;  %v5079_v58 = vadd.s32 64, %v4914_v59  ;;  %v1973_v45 = vmul.f32 %v4947_v13, %v4967_v21  ;;  %v5084_v3 = vrot.slane %v5068_v24, 7 }
 0x1a0   : > { %v1875_v41 = vadd.f32 %v1859_v11, %v1839_v15  ;;  %v5087_v60 = vadd.f32 %v4932_v2, %v1467_v5  ;;  %v1642_v38 = vrot.slane %v5059_v16, 7  ;;  %v1723_v8 = vrot.slane %v5059_v16, 1 }
 0x1a1   : > { %7172 = vst [vmem:[#allocation19_spill] sm:$0xff] %v5079_v58  ;;  %v1876_v1 = vadd.f32 %v1860_v39, %v1840_v43  ;;  %7173 = vst [vmem:[#allocation20_spill] sm:$0xff] %v5084_v3  ;;  %v5094_v11 = vrot.slane %v5068_v24, 1  ;;  %v1664_v21 = vsel %vm7114_vm6, %v1639_v30, %v5084_v3  ;;  %v1826_v5 = vmul.f32 %v4938_v7, %v5068_v24 }
 0x1a2   : > { %v5089_v4 = vpop.f32.mrb[8].mxu0  ;;  %v1953_v6 = vadd.f32 %v1937_v48, %v1875_v41  ;;  %v7045_v39 = vrot.slane %v5073_v44, 7  ;;  %v7047_v43 = vrot.slane %v5073_v44, 1  ;;  %v1705_v36 = vsel %vm5054_vm10, %v1664_v21, 0.0 }
 0x1a3   : > { %7174 = vst [vmem:[#allocation21_spill] sm:$0xff] %v5094_v11  ;;  %v5096_v15 = vpop.f32.mrb[9].mxu0  ;;  %v1745_v10 = vsel %vm7137_vm7, %v1720_v31, %v5094_v11  ;;  %v1897_v30 = vsel %vm4982_vm8, %v1664_v21, 0.0  ;;  %v1806_v37 = vmul.f32 %v4958_v17, %v1705_v36  ;;  %v1828_v32 = vmul.f32 %v4938_v7, %v5059_v16 }
 0x1a4   : > { %v5105_v41 = vpop.f32.mrb[10].mxu0  ;;  %v1989_v48 = vadd.f32 %v1973_v45, %v1953_v6  ;;  %v1785_v9 = vsel %vm5063_vm11, %v1745_v10, 0.0  ;;  %v1938_v40 = vmul.f32 %v4993_v28, %v1897_v30  ;;  %v1974_v45 = vmul.f32 %v4947_v13, %v5068_v24 }
 0x1a5   : > { %v5114_v35 = vpop.f32.mrb[11].mxu0  ;;  %v1861_v6 = vmul.f32 %v4970_v22, %v1785_v9  ;;  %v1917_v31 = vsel %vm4988_vm9, %v1745_v10, 0.0  ;;  %v5129_v21 = vsel %vm7114_vm6, %v1642_v38, %v7045_v39  ;;  %v5135_v36 = vsel %vm7137_vm7, %v1723_v8, %v7047_v43 }
 0x1a6   : > { %v1842_v30 = vadd.f32 %v1826_v5, %v1806_v37  ;;  %v1954_v49 = vadd.f32 %v1938_v40, %v1876_v1  ;;  %v1809_v9 = vmul.f32 %v4958_v17, %v5129_v21  ;;  %v1829_v10 = vmul.f32 %v4938_v7, %v5073_v44 }
 0x1a7   : > { %v5147_v39 = vrot.slane %v4926_v0, %v2084_v47  ;;  %v2009_v43 = vmul.f32 %v4973_v23, %v1917_v31  ;;  %v7176_v37 = vand.u32 15, %v5025_v46  ;;  %v7177_v40 = vmov 0 }
 0x1a8   : > { %v1990_v63 = vadd.f32 %v1974_v45, %v1954_v49  ;;  %v5150_v19 = vadd.f32 %v1829_v10, %v1809_v9  ;;  %v1641_v5 = vrot.slane %v5087_v60, 7  ;;  %v1722_v0 = vrot.slane %v5087_v60, 1 }
 0x1a9   : > { %vm5154_vm12 = vcmp.ge.s32.totalorder %v7176_v37, 1  ;;  %v1976_v45 = vmul.f32 %v4947_v13, %v5059_v16  ;;  %v1827_v31 = vmul.f32 %v4938_v7, %v5087_v60  ;;  %v1877_v9 = vadd.f32 %v1861_v6, %v5041_v61 }
 0x1aa   : > { %7175 = vst [vmem:[#allocation22_spill] sm:$0xff] %v5150_v19  ;;  %v7178_v40 = vsel %vm5154_vm12, 4294967295, %v7177_v40  ;;  %v5158_v1 = vpop.f32.mrb[12].mxu0  ;;  %v2025_v10 = vadd.f32 %v2009_v43, %v1989_v48  ;;  %v1662_v46 = vsel %vm7114_vm6, %v1641_v5, %v1642_v38  ;;  %v1663_v47 = vsel %vm7114_vm6, %v5084_v3, %v1641_v5 }
 0x1ab   : > { %7179 = vst [vmem:[#allocation23_spill] sm:$0xff] %v7178_v40  ;;  %v5165_v49 = vpop.f32.mrb[13].mxu0  ;;  %v5181_v62 = vsel %vm7137_vm7, %v1722_v0, %v1723_v8  ;;  %v5186_v19 = vsel %vm7137_vm7, %v5094_v11, %v1722_v0  ;;  %v1707_v43 = vsel %vm5154_vm12, %v1662_v46, 0.0  ;;  %v1807_v38 = vmul.f32 %v4958_v17, %v1663_v47 }
 0x1ac   : > { %v5172_v37 = vpop.f32.mrb[14].mxu0  ;;  %7180 = vst [vmem:[#allocation24_spill] sm:$0xff] %v5181_v62  ;;  %v1862_v48 = vmul.f32 %v4970_v22, %v5186_v19  ;;  %v1899_v6 = vsel %vm5054_vm10, %v1662_v46, 0.0  ;;  %v2124_v8 = vmul.f32 %v5144_v20, %v5059_v16  ;;  %v1808_v5 = vmul.f32 %v4958_v17, %v1707_v43 }
 0x1ad   : > { %v5188_v61 = vpop.f32.mrb[15].mxu0  ;;  %v1919_v0 = vsel %vm5063_vm11, %v5181_v62, 0.0  ;;  %v1939_v33 = vmul.f32 %v4993_v28, %v1663_v47  ;;  %v7181_v29 = vand.u32 15, %v5079_v58  ;;  %v7182_v11 = vmov 0 }
 0x1ae   : > { %v5210_v57 = vadd.f32 %v1827_v31, %v1807_v38  ;;  %v1878_v3 = vadd.f32 %v1862_v48, %v1842_v30  ;;  %v1940_v56 = vmul.f32 %v4993_v28, %v1899_v6  ;;  %v2010_v16 = vmul.f32 %v4973_v23, %v5186_v19 }
 0x1af   : > { %vm5206_vm13 = vcmp.ge.s32.totalorder %v7181_v29, 1  ;;  %v1955_v43 = vadd.f32 %v1939_v33, %v1877_v9  ;;  %v1975_v55 = vmul.f32 %v4947_v13, %v5087_v60  ;;  %v2047_v54 = vsel %vm4982_vm8, %v1662_v46, 0.0  ;;  %v5229_v33 = vld [vmem:[%s7033_s3 + $0x8] ss:$0 sm:$0xff] }
 0x1b0   : > { %v7183_v11 = vsel %vm5206_vm13, 4294967295, %v7182_v11  ;;  %7185 = vst [vmem:[#allocation26_spill] sm:$0xff] %v5210_v57  ;;  %v2087_v29 = vmul.f32 %v5147_v39, %v1663_v47  ;;  %v1956_v58 = vadd.f32 %v1940_v56, %v1878_v3  ;;  %v2026_v24 = vadd.f32 %v2010_v16, %v1990_v63 }
 0x1b1   : > { %7184 = vst [vmem:[#allocation25_spill] sm:$0xff] %v7183_v11  ;;  %v2067_v30 = vsel %vm4988_vm9, %v5181_v62, 0.0  ;;  %v2088_v31 = vmul.f32 %v5147_v39, %v2047_v54  ;;  %v1991_v9 = vadd.f32 %v1975_v55, %v1955_v43  ;;  %v2011_v46 = vmul.f32 %v4973_v23, %v1919_v0 }
 0x1b2   : > { %v5224_v38 = vpop.f32.mrb[16].mxu0  ;;  %v2103_v48 = vadd.f32 %v2087_v29, %v2025_v10  ;;  %v2123_v56 = vmul.f32 %v5144_v20, %v5087_v60  ;;  %v5238_v54 = vadd.f32 %v4932_v2, %v5096_v15  ;;  %v1844_v47 = vadd.f32 %v1828_v32, %v1808_v5  ;;  %v5256_v32 = vld [vmem:[%s7034_s4] ss:$0 sm:$0xff] }
 0x1b3   : > { %v5234_v63 = vpop.f32.mrb[17].mxu0  ;;  %v2104_v3 = vadd.f32 %v2088_v31, %v2026_v24  ;;  %v1992_v6 = vadd.f32 %v1976_v45, %v1956_v58  ;;  %v2089_v55 = vmul.f32 %v5147_v39, %v5129_v21  ;;  %v2027_v43 = vadd.f32 %v2011_v46, %v1991_v9 }
 0x1b4   : > { %v5240_v16 = vpop.f32.mrb[18].mxu0  ;;  %v2139_v0 = vadd.f32 %v2123_v56, %v2103_v48  ;;  %v2159_v10 = vmul.f32 %v5229_v33, %v2067_v30  ;;  %v1864_v24 = vmul.f32 %v4970_v22, %v5135_v36  ;;  %v2125_v60 = vmul.f32 %v5144_v20, %v5073_v44 }
 0x1b5   : > { %v5245_v29 = vpop.f32.mrb[19].mxu0  ;;  %v2160_v58 = vmul.f32 %v5229_v33, %v5135_v36  ;;  %v2140_v15 = vadd.f32 %v2124_v8, %v2104_v3  ;;  %v2105_v45 = vadd.f32 %v2089_v55, %v2027_v43  ;;  %v7058_v30 = vrot.slane %v5238_v54, 7 }
 0x1b6   : > { %v2175_v5 = vadd.f32 %v2159_v10, %v2139_v0  ;;  %v7057_v31 = vrot.slane %v5238_v54, 1  ;;  %v2012_v9 = vmul.f32 %v4973_v23, %v5135_v36  ;;  %v1880_v48 = vadd.f32 %v1864_v24, %v1844_v47 }
 0x1b7   : > { %v5262_v46 = vadd.f32 %v2160_v58, %v2140_v15  ;;  %v2141_v56 = vadd.f32 %v2125_v60, %v2105_v45  ;;  %v7186_v3 = vrot.slane %v5073_v44, 7  ;;  %v7187_v43 = vrot.slane %v5073_v44, 1 }
 0x1b8   : > { %v5265_v8 = vadd.f32 %v5256_v32, %v2175_v5  ;;  %v2028_v10 = vadd.f32 %v2012_v9, %v1992_v6  ;;  %v1830_v58 = vmul.f32 %v4938_v7, %v5238_v54  ;;  %v5294_v45 = vadd.f32 %v5089_v4, %v4932_v2 }
 0x1b9   : > { %v1660_v55 = vsel %vm7114_vm6, %v7186_v3, %v7058_v30  ;;  %v5279_v36 = vsel %vm7137_vm7, %v7187_v43, %v7057_v31  ;;  %v5315_v30 = vadd.f32 %v5105_v41, %v4932_v2  ;;  %v5329_v41 = vadd.s32 80, %v4914_v59 }
 0x1ba   : > { %7188 = vst [vmem:[#allocation27_spill] sm:$0xff] %v5279_v36  ;;  %v1709_v47 = vsel %vm5206_vm13, %v1660_v55, 0.0  ;;  %v1901_v0 = vsel %vm5154_vm12, %v1660_v55, 0.0  ;;  %v5286_v24 = vmul.f32 0.70710677, %v5265_v8  ;;  %v2049_v5 = vsel %vm5054_vm10, %v1660_v55, 0.0 }
 0x1bb   : > { %v1810_v60 = vmul.f32 %v4958_v17, %v1709_v47  ;;  %v1942_v15 = vmul.f32 %v4993_v28, %v1901_v0  ;;  %v2069_v6 = vsel %vm5063_vm11, %v5279_v36, 0.0  ;;  %v1978_v47 = vmul.f32 %v4947_v13, %v5238_v54  ;;  %7189 = vst [vmem:[#allocation28_spill] sm:$0xff] %v5315_v30  ;;  %7190 = vst [vmem:[#allocation29_spill] sm:$0xff] %v5329_v41 }
 0x1bc   : > { %v5302_v9 = vand.u32 2147483647, %v5286_v24  ;;  %v2090_v0 = vmul.f32 %v5147_v39, %v2049_v5  ;;  %v2161_v4 = vmul.f32 %v5229_v33, %v2069_v6  ;;  %v1727_v5 = vrot.slane %v5294_v45, 1 }
 0x1bd   : > { %v5304_v3 = vadd.f32 %v1830_v58, %v1810_v60  ;;  %v1958_v43 = vadd.f32 %v1942_v15, %v1880_v48  ;;  %v1646_v60 = vrot.slane %v5294_v45, 7  ;;  %v2126_v48 = vmul.f32 %v5144_v20, %v5238_v54 }
 0x1be   : > { %v2294_v31 = vmul.f32 0.3275911, %v5302_v9  ;;  %v2106_v58 = vadd.f32 %v2090_v0, %v2028_v10  ;;  %v2177_v15 = vadd.f32 %v2161_v4, %v2141_v56  ;;  %v7062_v6 = vrot.slane %v5315_v30, 7 }
 0x1bf   : > { %v5311_v55 = vadd.f32 %v1978_v47, %v1958_v43  ;;  %v7061_v43 = vrot.slane %v5315_v30, 1  ;;  %v1833_v4 = vmul.f32 %v4938_v7, %v5315_v30  ;;  %v5376_v57 = vadd.f32 %v4932_v2, %v5114_v35 }
 0x1c0   : > { %v2310_v14 = vadd.f32 1.0, %v2294_v31  ;;  %v5323_v47 = vadd.f32 %v2126_v48, %v2106_v58  ;;  %v5326_v26 = vadd.f32 %v5256_v32, %v2177_v15  ;;  %v5335_v56 = vsel %vm7114_vm6, %v1646_v60, %v7062_v6  ;;  %v4504_v58 = vld [vmem:[%s7035_s5 + $0xc] sm:$0xff]   ;;  %v5357_v48 = vld [vmem:[%s7035_s5 + $0x14] ss:$0 sps:$4 sm:$0x33]  }
 0x1c1   : > { %7191 = vst [vmem:[#allocation30_spill] sm:$0xff] %v5335_v56  ;;  %v5341_v31 = vsel %vm7137_vm7, %v1727_v5, %v7061_v43  ;;  %v1813_v0 = vmul.f32 %v4958_v17, %v5335_v56  ;;  %7193 = vst [vmem:[#allocation32_spill] sm:$0xff] %v5357_v48  ;;  %v5366_v6 = vadd.s32 96, %v4914_v59  ;;  %4192 = vmatprep.subr.bf16.mxu1 %v4504_v58  ;;  %v5406_v36 = vadd.s32 120, %v4914_v59 }
 0x1c2   : > { %v5344_v10 = vmul.f32 0.70710677, %v5326_v26  ;;  %4514 = vrcp.f32 %v2310_v14  ;;  %v7067_v14 = vand.u32 15, %v5329_v41  ;;  %4193 = vmatpush3.bf16.msra.mxu1 %v4504_v58  ;;  %7197 = vst [vmem:[#allocation36_spill] sm:$0xff] %v5376_v57  ;;  %v5394_v35 = vadd.f32 %v5172_v37, %v4900_v52 }
 0x1c3   : > { %v5363_v43 = vadd.f32 %v1833_v4, %v1813_v0  ;;  %7195 = vst [vmem:[#allocation34_spill] sm:$0xff] %v5366_v6  ;;  %v5380_v0 = vadd.f32 %v5158_v1, %v4896_v50  ;;  %v4297_v4 = vadd.f32 %v5165_v49, %v4898_v51  ;;  %4446 = vmatprep.subr.msk.bf16.mxu1 %vm7112_vm1, %v5357_v48  ;;  %v1645_v51 = vrot.slane %v5376_v57, 7 }
 0x1c4   : > { %7192 = vst [vmem:[#allocation31_spill] sm:$0xff] %v5344_v10  ;;  %v5360_v15 = vand.u32 2147483647, %v5344_v10  ;;  %vm5388_vm14 = vcmp.ge.s32.totalorder %v7067_v14, 1  ;;  %v5398_v50 = vadd.f32 %v5188_v61, %v4902_v53  ;;  %v1726_v49 = vrot.slane %v5376_v57, 1  ;;  %7201 = vst [vmem:[#allocation38_spill] sm:$0xff] %v5406_v36 }
 0x1c5   : > { %7194 = vst [vmem:[#allocation33_spill] sm:$0xff] %v5363_v43  ;;  %v7198_v43 = vmov 0  ;;  %v1658_v37 = vsel %vm7114_vm6, %v1645_v51, %v1646_v60  ;;  %v7202_v53 = vrot.slane %v5238_v54, 7  ;;  %v7205_v14 = vrot.slane %v5238_v54, 1 }
 0x1c6   : > { %v2296_v27 = vmul.f32 0.3275911, %v5360_v15  ;;  %v7199_v43 = vsel %vm5388_vm14, 4294967295, %v7198_v43  ;;  %v5419_v61 = vsel %vm7137_vm7, %v1726_v49, %v1727_v5  ;;  %v1832_v52 = vmul.f32 %v4938_v7, %v5294_v45 }
 0x1c7   : > { %7200 = vst [vmem:[#allocation37_spill] sm:$0xff] %v7199_v43  ;;  %7204 = vst [vmem:[#allocation40_spill] sm:$0xff] %v5419_v61  ;;  %v1740_v41 = vsel %vm7137_vm7, %v7205_v14, %v1726_v49  ;;  %v1711_v60 = vsel %vm5388_vm14, %v1658_v37, 0.0  ;;  %v1903_v14 = vsel %vm5206_vm13, %v1658_v37, 0.0  ;;  %v5441_v49 = vadd.f32 %v5256_v32, %v5262_v46 }
 0x1c8   : > { %v2312_v1 = vadd.f32 1.0, %v2296_v27  ;;  %v5415_v27 = vsel %vm7114_vm6, %v7202_v53, %v1645_v51  ;;  %v1831_v51 = vmul.f32 %v4938_v7, %v5376_v57  ;;  %v1812_v54 = vmul.f32 %v4958_v17, %v1711_v60 }
 0x1c9   : > { %7203 = vst [vmem:[#allocation39_spill] sm:$0xff] %v5415_v27  ;;  %v1811_v58 = vmul.f32 %v4958_v17, %v5415_v27  ;;  %v1866_v5 = vmul.f32 %v4970_v22, %v1740_v41  ;;  %7206 = vst [vmem:[#allocation41_spill] sm:$0xff] %v5441_v49  ;;  %v2014_v62 = vmul.f32 %v4973_v23, %v1740_v41  ;;  %v7208_v27 = vand.u32 15, %v5366_v6 }
 0x1ca   : > { %4516 = vrcp.f32 %v2312_v1  ;;  %v7209_v57 = vmov 0  ;;  %v5453_v1 = vadd.s32 40, %v4914_v59  ;;  %v1848_v60 = vadd.f32 %v1832_v52, %v1812_v54 }
 0x1cb   : > { %v5443_v61 = vadd.f32 %v1831_v51, %v1811_v58  ;;  %vm5448_vm15 = vcmp.ge.s32.totalorder %v7208_v27, 1  ;;  %v1882_v56 = vadd.f32 %v1866_v5, %v5304_v3  ;;  %v1944_v10 = vmul.f32 %v4993_v28, %v1903_v14 }
 0x1cc   : > { %v5433_v53 = vpop.eup %4514  ;;  %v7210_v57 = vsel %vm5448_vm15, 4294967295, %v7209_v57  ;;  %7212 = vst [vmem:[#allocation44_spill] sm:$0xff] %v5453_v1  ;;  %v2051_v46 = vsel %vm5154_vm12, %v1658_v37, 0.0  ;;  %v2030_v51 = vadd.f32 %v2014_v62, %v5311_v55  ;;  %v2162_v6 = vmul.f32 %v5229_v33, %v1740_v41 }
 0x1cd   : > { %7207 = vst [vmem:[#allocation42_spill] sm:$0xff] %v5443_v61  ;;  %7211 = vst [vmem:[#allocation43_spill] sm:$0xff] %v7210_v57  ;;  %v2342_v58 = vmul.f32 1.0614054, %v5433_v53  ;;  %v2092_v27 = vmul.f32 %v5147_v39, %v2051_v46  ;;  %v1980_v61 = vmul.f32 %v4947_v13, %v5294_v45  ;;  %v1868_v52 = vmul.f32 %v4970_v22, %v5341_v31 }
 0x1ce   : > { %v1960_v3 = vadd.f32 %v1944_v10, %v1882_v56  ;;  %v5468_v54 = vadd.s32 104, %v4914_v59  ;;  %v2128_v5 = vmul.f32 %v5144_v20, %v5294_v45  ;;  %v2178_v55 = vadd.f32 %v2162_v6, %v5323_v47 }
 0x1cf   : > { %v2108_v62 = vadd.f32 %v2092_v27, %v2030_v51  ;;  %v5475_v41 = vmul.f32 0.70710677, %v5441_v49  ;;  %v5478_v14 = vadd.f32 %v4297_v4, %v4932_v2  ;;  %v1884_v46 = vadd.f32 %v1868_v52, %v1848_v60 }
 0x1d0   : > { %7213 = vst [vmem:[#allocation45_spill] sm:$0xff] %v5468_v54  ;;  %v1996_v40 = vadd.f32 %v1980_v61, %v1960_v3  ;;  %v2358_v56 = vadd.f32 -1.4531521, %v2342_v58  ;;  %v2164_v10 = vmul.f32 %v5229_v33, %v5341_v31  ;;  %v5483_v37 = vadd.f32 %v5256_v32, %v2178_v55 }
 0x1d1   : > { %7214 = vst [vmem:[#allocation46_spill] sm:$0xff] %v5475_v41  ;;  %7215 = vst [vmem:[#allocation47_spill] sm:$0xff] %v5478_v14  ;;  %v2144_v48 = vadd.f32 %v2128_v5, %v2108_v62  ;;  %v2016_v45 = vmul.f32 %v4973_v23, %v5341_v31  ;;  %v7083_v6 = vrot.slane %v5478_v14, 7  ;;  %v7217_v60 = vrot.slane %v5006_v34, 1 }
 0x1d2   : > { %7216 = vst [vmem:[#allocation48_spill] sm:$0xff] %v5483_v37  ;;  %v7218_v61 = vrot.slane %v4978_v25, 1  ;;  %v5499_v27 = vmul.f32 0.70710677, %v5483_v37  ;;  %v5506_v3 = vmul.f32 %v4947_v13, %v4944_v12  ;;  %v2279_v34 = vand.u32 2147483647, %v5475_v41 }
 0x1d3   : > { %v5496_v51 = vadd.f32 %v2164_v10, %v2144_v48  ;;  %v7221_v5 = vrot.slane %v5315_v30, 7  ;;  %v2032_v62 = vadd.f32 %v2016_v45, %v1996_v40  ;;  %v5517_v55 = vmul.f32 %v4938_v7, %v4978_v25 }
 0x1d4   : > { %v1748_v58 = vsel %vm7137_vm7, %v7218_v61, %v7217_v60  ;;  %7219 = vst [vmem:[#allocation49_spill] sm:$0xff] %v5499_v27  ;;  %v5502_v52 = vpop.eup %4516  ;;  %7220 = vst [vmem:[#allocation50_spill] sm:$0xff] %v5506_v3  ;;  %v5521_v10 = vmul.f32 %v4973_v23, %v5019_v42  ;;  %v2374_v12 = vmul.f32 %v5433_v53, %v2358_v56  ;;  %v5525_v60 = vand.u32 2147483647, %v5499_v27 }
 0x1d5   : > { %v1656_v48 = vsel %vm7114_vm6, %v7221_v5, %v7083_v6  ;;  %v5528_v61 = vmul.f32 %v4970_v22, %v1748_v58  ;;  %v2486_v4 = vsub.f32 0.0, %v5302_v9  ;;  %v2344_v5 = vmul.f32 1.0614054, %v5502_v52 }
 0x1d6   : > { %7222 = vst [vmem:[#allocation51_spill] sm:$0xff] %v5521_v10  ;;  %v1713_v40 = vsel %vm5448_vm15, %v1656_v48, 0.0  ;;  %v1905_v45 = vsel %vm5388_vm14, %v1656_v48, 0.0  ;;  %v2297_v42 = vmul.f32 0.3275911, %v5525_v60  ;;  %v1834_v31 = vmul.f32 %v4938_v7, %v5478_v14 }
 0x1d7   : > { %7223 = vst [vmem:[#allocation52_spill] sm:$0xff] %v5528_v61  ;;  %v1814_v56 = vmul.f32 %v4958_v17, %v1713_v40  ;;  %v2295_v47 = vmul.f32 0.3275911, %v2279_v34  ;;  %v2488_v58 = vsub.f32 0.0, %v5360_v15  ;;  %v1946_v6 = vmul.f32 %v4993_v28, %v1905_v45 }
 0x1d8   : > { %v2053_v49 = vsel %vm5206_vm13, %v1656_v48, 0.0  ;;  %v2390_v41 = vadd.f32 1.4214138, %v2374_v12  ;;  %v2313_v37 = vadd.f32 1.0, %v2297_v42  ;;  %v5546_v30 = vadd.f32 %v5380_v0, %v4932_v2  ;;  %v7224_v42 = vld [vmem:[#allocation18_spill] sm:$0xff] }
 0x1d9   : > { %v5548_v1 = vadd.f32 %v1834_v31, %v1814_v56  ;;  %v1962_v40 = vadd.f32 %v1946_v6, %v1884_v46  ;;  %v1982_v10 = vmul.f32 %v4947_v13, %v5478_v14  ;;  %v2094_v3 = vmul.f32 %v5147_v39, %v2053_v49 }
 0x1da   : > { %v5555_v45 = vadd.f32 %v5394_v35, %v4932_v2  ;;  %v2487_v11 = vsub.f32 0.0, %v2279_v34  ;;  %v2502_v48 = vmul.f32 %v2486_v4, %v5302_v9  ;;  %v2360_v12 = vadd.f32 -1.4531521, %v2344_v5 }
 0x1db   : > { %4518 = vrcp.f32 %v2313_v37  ;;  %v5560_v0 = vmul.f32 %v5144_v20, %v7224_v42  ;;  %v2504_v46 = vmul.f32 %v2488_v58, %v5360_v15  ;;  %v5563_v6 = vadd.f32 %v1982_v10, %v1962_v40 }
 0x1dc   : > { %v2110_v31 = vadd.f32 %v2094_v3, %v2032_v62  ;;  %vm2246_vm0 = vcmp.ge.f32.partialorder %v5286_v24, 0.0  ;;  %v2311_v49 = vadd.f32 1.0, %v2295_v47  ;;  %v2406_v35 = vmul.f32 %v5433_v53, %v2390_v41 }
 0x1dd   : > { %7225 = vst [vmem:[#allocation18_spill] sm:$0xff] %v5560_v0  ;;  %v2130_v9 = vmul.f32 %v5144_v20, %v5478_v14  ;;  %v1650_v37 = vrot.slane %v5546_v30, 7  ;;  %v1731_v4 = vrot.slane %v5546_v30, 1  ;;  %v5572_v5 = vrot.slane %v5555_v45, 7 }
 0x1de   : > { %v5575_v15 = vrot.slane %v5555_v45, 1  ;;  %v2503_v10 = vmul.f32 %v2487_v11, %v2279_v34  ;;  %v2519_v3 = vmul.f32 1.442695, %v2502_v48  ;;  %v2376_v62 = vmul.f32 %v5502_v52, %v2360_v12 }
 0x1df   : > { %v5578_v47 = vadd.f32 %v2130_v9, %v2110_v31  ;;  %v7226_v41 = vstv %s5369_s24  ;;  %v2523_v58 = vmul.f32 1.442695, %v2504_v46  ;;  %v5589_v40 = vsel %vm7114_vm6, %v1650_v37, %v5572_v5 }
 0x1e0   : > { %vm5582_vm3 = vcmp.eq.s32.totalorder %v7226_v41, 1  ;;  %v7229_v42 = vrot.slane %v4978_v25, 7  ;;  %v5601_v34 = vsel %vm7137_vm7, %v1731_v4, %v5575_v15  ;;  %v5605_v48 = vmul.f32 %v4993_v28, %v5129_v21 }
 0x1e1   : > { %v5609_v12 = vmul.f32 %v4947_v13, %v5073_v44  ;;  %v2422_v46 = vadd.f32 -0.28449672, %v2406_v35  ;;  %v1817_v31 = vmul.f32 %v4958_v17, %v5589_v40  ;;  %v5615_v9 = vmul.f32 %v5229_v33, %v5186_v19 }
 0x1e2   : > { %v5596_v11 = vsel %vm7114_vm6, %v5572_v5, %v7229_v42  ;;  %7230 = vst [vmem:[#allocation53_spill] sm:$0xff] %v5605_v48  ;;  %v5618_v41 = vmul.f32 0.5, %v5265_v8  ;;  %4520 = vrcp.f32 %v2311_v49  ;;  %v1837_v21 = vmul.f32 %v4938_v7, %v5555_v45 }
 0x1e3   : > { %7231 = vst [vmem:[#allocation54_spill] sm:$0xff] %v5609_v12  ;;  %7232 = vst [vmem:[#allocation55_spill] sm:$0xff] %v5615_v9  ;;  %v7234_v42 = vand.u32 15, %v5372_v18  ;;  %v7235_v44 = vmov 0  ;;  %v7093_v35 = vmov -1.0   ;;  %4522 = vpow2.f32 %v2519_v3 }
 0x1e4   : > { %7233 = vst [vmem:[#allocation56_spill] sm:$0xff] %v5618_v41  ;;  %v5631_v12 = vsel %vm2246_vm0, 1.0, %v7093_v35  ;;  %v5633_v19 = vmul.f32 1.442695, %v2503_v10  ;;  %v2392_v8 = vadd.f32 1.4214138, %v2376_v62  ;;  %4524 = vpow2.f32 %v2523_v58  ;;  %vm5695_vm0 = vmxor %vm5582_vm3, %vm4621_vm4 }
 0x1e5   : > { %vm5624_vm5 = vcmp.ge.s32.totalorder %v7234_v42, 1  ;;  %7238 = vst [vmem:[#allocation58_spill] sm:$0xff] %v5631_v12  ;;  %v5635_v49 = vadd.f32 %v1837_v21, %v1817_v31  ;;  %v5639_v18 = vadd.f32 %v5398_v50, %v4932_v2  ;;  %v7241_v42 = vld [vmem:[#allocation3_spill] sm:$0xff]  ;;  %v5643_v41 = vpop.eup %4518  ;;  %v2438_v24 = vmul.f32 %v5433_v53, %v2422_v46  ;;  %v7243_v10 = vld [vmem:[#allocation4_spill] sm:$0xff]  ;;  %v7244_v58 = vld [vmem:[#allocation5_spill] sm:$0xff] }
 0x1e6   : > { %v7236_v44 = vsel %vm5624_vm5, 4294967295, %v7235_v44  ;;  %v4300_v48 = vadd.f32 %v5224_v38, %v7241_v42  ;;  %v5648_v3 = vadd.f32 %v5256_v32, %v5496_v51  ;;  %v4301_v62 = vadd.f32 %v5234_v63, %v7243_v10 }
 0x1e7   : > { %7237 = vst [vmem:[#allocation57_spill] sm:$0xff] %v7236_v44  ;;  %7239 = vst [vmem:[#allocation59_spill] sm:$0xff] %v5635_v49  ;;  %v5654_v31 = vadd.f32 %v5240_v16, %v7244_v58  ;;  %v2345_v50 = vmul.f32 1.0614054, %v5643_v41  ;;  %v2489_v21 = vsub.f32 0.0, %v5525_v60  ;;  %v1649_v38 = vrot.slane %v5639_v18, 7 }
 0x1e8   : > { %7240 = vst [vmem:[#allocation60_spill] sm:$0xff] %v5639_v18  ;;  %7242 = vst [vmem:[#allocation3_spill] sm:$0xff] %v5648_v3  ;;  %v1730_v42 = vrot.slane %v5639_v18, 1  ;;  %v2408_v46 = vmul.f32 %v5502_v52, %v2392_v8  ;;  %v1836_v51 = vmul.f32 %v4938_v7, %v5546_v30  ;;  %v2132_v63 = vmul.f32 %v5144_v20, %v5546_v30 }
 0x1e9   : > { %v7097_v10 = vrot.slane %v5478_v14, 1  ;;  %v2361_v16 = vadd.f32 -1.4531521, %v2345_v50  ;;  %v1654_v58 = vsel %vm7114_vm6, %v1649_v38, %v1650_v37  ;;  %v7245_v35 = vrot.slane %v5478_v14, 7 }
 0x1ea   : > { %v1835_v8 = vmul.f32 %v4938_v7, %v5639_v18  ;;  %v5678_v0 = vsel %vm7137_vm7, %v1730_v42, %v1731_v4  ;;  %v1572_v12 = vadd.f32 %v4300_v48, %v4932_v2  ;;  %v2454_v27 = vadd.f32 0.2548296, %v2438_v24 }
 0x1eb   : > { %v5672_v9 = vsel %vm7114_vm6, %v7245_v35, %v1649_v38  ;;  %v1736_v50 = vsel %vm7137_vm7, %v7097_v10, %v1730_v42  ;;  %v5688_v35 = vmul.f32 0.70710677, %v5648_v3  ;;  %v2377_v7 = vmul.f32 %v5643_v41, %v2361_v16 }
 0x1ec   : > { %7246 = vst [vmem:[#allocation4_spill] sm:$0xff] %v5672_v9  ;;  %v1815_v37 = vmul.f32 %v4958_v17, %v5672_v9  ;;  %v2505_v38 = vmul.f32 %v2489_v21, %v5525_v60  ;;  %v1870_v10 = vmul.f32 %v4970_v22, %v1736_v50  ;;  %v2018_v48 = vmul.f32 %v4973_v23, %v1736_v50  ;;  %v5705_v3 = vpop.eup %4520 }
 0x1ed   : > { %v2055_v24 = vsel %vm5388_vm14, %v1654_v58, 0.0  ;;  %7250 = vst [vmem:[#allocation61_spill] sm:$0xff] %v5705_v3  ;;  %v2424_v16 = vadd.f32 -0.28449672, %v2408_v46  ;;  %v2393_v60 = vadd.f32 1.4214138, %v2377_v7  ;;  %v2166_v56 = vmul.f32 %v5229_v33, %v1736_v50 }
 0x1ee   : > { %v5699_v42 = vadd.f32 %v1835_v8, %v1815_v37  ;;  %v2096_v21 = vmul.f32 %v5147_v39, %v2055_v24  ;;  %v7251_v14 = vand.u32 15, %v4914_v59  ;;  %v7252_v8 = vmov 0  ;;  %v4523_v37 = vpop.eup %4522 }
 0x1ef   : > { %v2034_v9 = vadd.f32 %v2018_v48, %v5563_v6  ;;  %v5718_v43 = vsel %vm5695_vm0, %v1572_v12, 0.0  ;;  %v5721_v46 = vadd.f32 %v4301_v62, %v4932_v2  ;;  %v1715_v7 = vsel %vm5624_vm5, %v1654_v58, 0.0  ;;  %v5725_v50 = vpop.eup %4524 }
 0x1f0   : > { %7249 = vst [vmem:[#allocation5_spill] sm:$0xff] %v5699_v42  ;;  %vm5711_vm4 = vcmp.ge.s32.totalorder %v7251_v14, 1  ;;  %v2470_v14 = vmul.f32 %v5433_v53, %v2454_v27  ;;  %v2409_v24 = vmul.f32 %v5643_v41, %v2393_v60  ;;  %v2525_v18 = vmul.f32 1.442695, %v2505_v38 }
 0x1f1   : > { %v7253_v8 = vsel %vm5711_vm4, 4294967295, %v7252_v8  ;;  %v2182_v3 = vadd.f32 %v2166_v56, %v5578_v47  ;;  %v1907_v6 = vsel %vm5448_vm15, %v1654_v58, 0.0  ;;  %v2112_v12 = vadd.f32 %v2096_v21, %v2034_v9 }
 0x1f2   : > { %7254 = vst [vmem:[#allocation62_spill] sm:$0xff] %v7253_v8  ;;  %v1816_v48 = vmul.f32 %v4958_v17, %v1715_v7  ;;  %v1886_v62 = vadd.f32 %v1870_v10, %v5548_v1  ;;  %v2440_v49 = vmul.f32 %v5502_v52, %v2424_v16  ;;  %v2425_v42 = vadd.f32 -0.28449672, %v2409_v24 }
 0x1f3   : > { %v1890_v61 = vrot.slane %v5721_v46, 7  ;;  %v1911_v53 = vrot.slane %v5721_v46, 1  ;;  %v2168_v27 = vmul.f32 %v5229_v33, %v5601_v34  ;;  %v2148_v38 = vadd.f32 %v2132_v63, %v2112_v12 }
 0x1f4   : > { %v1852_v47 = vadd.f32 %v1836_v51, %v1816_v48  ;;  %v1872_v58 = vmul.f32 %v4970_v22, %v5601_v34  ;;  %v2441_v9 = vmul.f32 %v5643_v41, %v2425_v42  ;;  %4526 = vpow2.f32 %v2525_v18 }
 0x1f5   : > { %v1893_v1 = vsel %vm7114_vm6, %v5572_v5, %v1890_v61  ;;  %v1948_v10 = vmul.f32 %v4993_v28, %v1907_v6  ;;  %v5748_v16 = vadd.f32 %v2168_v27, %v2148_v38  ;;  %v5757_v18 = vsel %vm7137_vm7, %v5575_v15, %v1911_v53 }
 0x1f6   : > { %v1888_v60 = vadd.f32 %v1872_v58, %v1852_v47  ;;  %v1909_v51 = vsel %vm5624_vm5, %v1893_v1, 0.0  ;;  %7255 = vst [vmem:[#allocation63_spill] sm:$0xff] %v5757_v18  ;;  %v5760_v63 = vmul.f32 0.5, %v5326_v26  ;;  %v2456_v42 = vadd.f32 0.2548296, %v2440_v49 }
 0x1f7   : > { %v1984_v5 = vmul.f32 %v4947_v13, %v5546_v30  ;;  %v1950_v21 = vmul.f32 %v4993_v28, %v1909_v51  ;;  %v7256_v56 = vand.u32 15, %v5406_v36  ;;  %v7257_v7 = vmov 0 }
 0x1f8   : > { %v7260_v24 = vand.u32 15, %v5468_v54  ;;  %v7261_v6 = vmov 0  ;;  %v5777_v26 = vmul.f32 %v4523_v37, %v2470_v14  ;;  %v5780_v49 = vand.u32 2147483647, %v5688_v35  ;;  %v7279_v54 = vld [vmem:[#allocation49_spill] sm:$0xff] }
 0x1f9   : > { %vm5767_vm3 = vcmp.le.s32.totalorder %v7256_v56, 14  ;;  %v1964_v30 = vadd.f32 %v1948_v10, %v1886_v62  ;;  %v1573_v12 = vadd.f32 %v5654_v31, %v4932_v2  ;;  %v2457_v48 = vadd.f32 0.2548296, %v2441_v9 }
 0x1fa   : > { %v7258_v7 = vsel %vm5767_vm3, 4294967295, %v7257_v7  ;;  %vm5773_vm2 = vcmp.le.s32.totalorder %v7260_v24, 14  ;;  %v1966_v27 = vadd.f32 %v1950_v21, %v1888_v60  ;;  %v1986_v38 = vmul.f32 %v4947_v13, %v5721_v46  ;;  %v7264_v24 = vld [vmem:[#allocation20_spill] sm:$0xff] }
 0x1fb   : > { %7259 = vst [vmem:[#allocation64_spill] sm:$0xff] %v7258_v7  ;;  %v7262_v6 = vsel %vm5773_vm2, 4294967295, %v7261_v6  ;;  %v2057_v47 = vsel %vm5448_vm15, %v1893_v1, 0.0  ;;  %v2000_v58 = vadd.f32 %v1984_v5, %v1964_v30  ;;  %v2020_v37 = vmul.f32 %v4973_v23, %v5601_v34 }
 0x1fc   : > { %7263 = vst [vmem:[#allocation65_spill] sm:$0xff] %v7262_v6  ;;  %v1633_v14 = vsel %vm5695_vm0, %v1573_v12, 0.0  ;;  %v1701_v62 = vsel %vm5711_vm4, %v5596_v11, 0.0  ;;  %v2472_v31 = vmul.f32 %v5502_v52, %v2456_v42  ;;  %v7108_v9 = vrot.slane %v5718_v43, 7  ;;  %v7321_v6 = vld [vmem:[#allocation53_spill] sm:$0xff] }
 0x1fd   : > { %v7107_v10 = vrot.slane %v5718_v43, 1  ;;  %v5798_v60 = vadd.f32 %v1986_v38, %v1966_v27  ;;  %v2036_v1 = vadd.f32 %v2020_v37, %v2000_v58  ;;  %v2098_v51 = vmul.f32 %v5147_v39, %v2057_v47 }
 0x1fe   : > { %v2041_v5 = vrot.slane %v1633_v14, 7  ;;  %v2062_v34 = vrot.slane %v1633_v14, 1  ;;  %v2473_v4 = vmul.f32 %v5643_v41, %v2457_v48  ;;  %v5803_v21 = vadd.f32 %v5256_v32, %v2182_v3  ;;  %v4527_v3 = vpop.eup %4526 }
 0x1ff   : > { %v2134_v11 = vmul.f32 %v5144_v20, %v5721_v46  ;;  %v1802_v52 = vmul.f32 %v4958_v17, %v1701_v62  ;;  %v2114_v42 = vadd.f32 %v2098_v51, %v2036_v1  ;;  %4528 = vpow2.f32 %v5633_v19 }
 0x200   : > { %v5812_v56 = vsel %vm7114_vm6, %v7108_v9, %v2041_v5  ;;  %v5817_v30 = vsel %vm7114_vm6, %v2041_v5, %v7264_v24  ;;  %v5823_v41 = vsel %vm7137_vm7, %v7107_v10, %v2062_v34  ;;  %v7265_v48 = vrot.slane %v4978_v25, 1  ;;  %v7273_v10 = vld [vmem:[#allocation61_spill] sm:$0xff] }
 0x201   : > { %v5834_v38 = vmul.f32 %v5725_v50, %v2472_v31  ;;  %v1949_v47 = vmul.f32 %v4993_v28, %v5589_v40  ;;  %v1985_v58 = vmul.f32 %v4947_v13, %v5555_v45  ;;  %v2150_v19 = vadd.f32 %v2134_v11, %v2114_v42  ;;  %v7267_v31 = vld [vmem:[#allocation21_spill] sm:$0xff] }
 0x202   : > { %v1749_v27 = vsel %vm7137_vm7, %v5575_v15, %v7265_v48  ;;  %v5840_v37 = vmul.f32 %v4527_v3, %v2473_v4  ;;  %v5843_v62 = vmul.f32 0.70710677, %v5803_v21  ;;  %v5847_v25 = vmul.f32 %v5144_v20, %v5718_v43  ;;  %v7266_v15 = vld [vmem:[#allocation6_spill] sm:$0xff]  ;;  %v5865_v11 = vld [vmem:[%s7035_s5] sm:$0xff]  }
 0x203   : > { %v4303_v50 = vadd.f32 %v5245_v29, %v7266_v15  ;;  %v5854_v1 = vsel %vm7137_vm7, %v2062_v34, %v7267_v31  ;;  %v1795_v51 = vsel %vm5773_vm2, %v5678_v0, 0.0  ;;  %v1797_v5 = vsel %vm5767_vm3, %v1749_v27, 0.0  ;;  %7268 = vst [vmem:[#allocation20_spill] sm:$0xff] %v5865_v11  ;;  %v7270_v27 = vld [vmem:[#allocation32_spill] sm:$0xff]  ;;  %v7272_v31 = vld [vmem:[#allocation59_spill] sm:$0xff] }
 0x204   : > { %v1838_v4 = vadd.f32 %v5517_v55, %v1802_v52  ;;  %v1871_v42 = vmul.f32 %v4970_v22, %v1795_v51  ;;  %v1873_v34 = vmul.f32 %v4970_v22, %v1797_v5  ;;  %v1929_v24 = vsel %vm5773_vm2, %v5757_v18, 0.0  ;;  %v7269_v52 = vld [vmem:[#allocation52_spill] sm:$0xff] }
 0x205   : > { %v1571_v29 = vadd.f32 %v4303_v50, %v4932_v2  ;;  %v2045_v3 = vsel %vm5711_vm4, %v5817_v30, 0.0  ;;  %v2137_v55 = vmul.f32 %v5144_v20, %v1633_v14  ;;  %v2815_v15 = vsel %vm7112_vm1, %v7270_v27, 0  ;;  %v7271_v2 = vld [vmem:[#allocation5_spill] sm:$0xff]  ;;  %v7275_v27 = vld [vmem:[#allocation14_spill] sm:$0xff] }
 0x206   : > { %v1874_v48 = vadd.f32 %v7269_v52, %v1838_v4  ;;  %v1887_v50 = vadd.f32 %v1871_v42, %v7271_v2  ;;  %v1889_v51 = vadd.f32 %v1873_v34, %v7272_v31  ;;  %4195 = vmatpush3.bf16.msra.mxu1 %v2815_v15  ;;  %v2081_v17 = vsel %vm5767_vm3, %v5854_v1, 0.0  ;;  %v7274_v34 = vld [vmem:[#allocation13_spill] sm:$0xff] }
 0x207   : > { %v1891_v5 = vrot.slane %v1571_v29, 7  ;;  %v1912_v12 = vrot.slane %v1571_v29, 1  ;;  %v1987_v30 = vmul.f32 %v4947_v13, %v1571_v29  ;;  %v2021_v14 = vmul.f32 %v4973_v23, %v1929_v24  ;;  %4212 = vmatprep.subr.bf16.mxu1 %v5865_v11 }
 0x208   : > { %v2343_v4 = vmul.f32 1.0614054, %v7273_v10  ;;  %v1965_v31 = vadd.f32 %v1949_v47, %v1887_v50  ;;  %v7276_v57 = vrot.slane %v5718_v43, 7  ;;  %v7278_v50 = vrot.slane %v5718_v43, 1 }
 0x209   : > { %v1892_v42 = vsel %vm7114_vm6, %v1890_v61, %v1891_v5  ;;  %v1894_v52 = vsel %vm7114_vm6, %v1891_v5, %v7274_v34  ;;  %v1913_v1 = vsel %vm7137_vm7, %v1911_v53, %v1912_v12  ;;  %v1915_v24 = vsel %vm7137_vm7, %v1912_v12, %v7275_v27  ;;  %v5908_v9 = vpop.eup %4528 }
 0x20a   : > { %v1895_v15 = vsel %vm5711_vm4, %v1894_v52, 0.0  ;;  %v1931_v2 = vsel %vm5767_vm3, %v1915_v24, 0.0  ;;  %v1951_v61 = vmul.f32 %v4993_v28, %v1892_v42  ;;  %v2022_v34 = vmul.f32 %v4973_v23, %v1913_v1  ;;  %v7277_v52 = vld [vmem:[#allocation31_spill] sm:$0xff] }
 0x20b   : > { %v1936_v46 = vmul.f32 %v4993_v28, %v1895_v15  ;;  %v2023_v53 = vmul.f32 %v4973_v23, %v1931_v2  ;;  %v2043_v27 = vsel %vm7114_vm6, %v1891_v5, %v7276_v57  ;;  %vm2248_vm0 = vcmp.ge.f32.partialorder %v7277_v52, 0.0 }
 0x20c   : > { %v1967_v8 = vadd.f32 %v1951_v61, %v1889_v51  ;;  %v2001_v24 = vadd.f32 %v1985_v58, %v1965_v31  ;;  %v2059_v47 = vsel %vm5624_vm5, %v2043_v27, 0.0  ;;  %v2064_v15 = vsel %vm7137_vm7, %v1912_v12, %v7278_v50  ;;  %v7280_v27 = vld [vmem:[#allocation50_spill] sm:$0xff] }
 0x20d   : > { %vm2249_vm1 = vcmp.ge.f32.partialorder %v7279_v54, 0.0  ;;  %v1952_v2 = vadd.f32 %v1936_v46, %v1874_v48  ;;  %v2038_v36 = vadd.f32 %v2022_v34, %v5798_v60  ;;  %v2079_v57 = vsel %vm5773_vm2, %v2064_v15, 0.0  ;;  %v7299_v54 = vld [vmem:[#allocation39_spill] sm:$0xff] }
 0x20e   : > { %v2099_v5 = vmul.f32 %v5147_v39, %v1892_v42  ;;  %v2003_v51 = vadd.f32 %v1987_v30, %v1967_v8  ;;  %v2037_v58 = vadd.f32 %v2021_v14, %v2001_v24  ;;  %v2100_v61 = vmul.f32 %v5147_v39, %v2059_v47  ;;  %v7281_v30 = vld [vmem:[#allocation51_spill] sm:$0xff] }
 0x20f   : > { %v2170_v31 = vmul.f32 %v5229_v33, %v1913_v1  ;;  %v2086_v43 = vmul.f32 %v5147_v39, %v2045_v3  ;;  %v2101_v12 = vmul.f32 %v5147_v39, %v5812_v56  ;;  %v1988_v48 = vadd.f32 %v7280_v27, %v1952_v2  ;;  %v7288_v27 = vld [vmem:[#allocation44_spill] sm:$0xff] }
 0x210   : > { %v2135_v60 = vmul.f32 %v5144_v20, %v1571_v29  ;;  %v2039_v46 = vadd.f32 %v2023_v53, %v2003_v51  ;;  %v2115_v34 = vadd.f32 %v2099_v5, %v2037_v58  ;;  %v2116_v50 = vadd.f32 %v2100_v61, %v2038_v36  ;;  %v7283_v29 = vld [vmem:[#allocation58_spill] sm:$0xff] }
 0x211   : > { %v2186_v15 = vadd.f32 %v2170_v31, %v2150_v19  ;;  %v2172_v8 = vmul.f32 %v5229_v33, %v5823_v41  ;;  %v2024_v14 = vadd.f32 %v7281_v30, %v1988_v48  ;;  %v2171_v42 = vmul.f32 %v5229_v33, %v2079_v57  ;;  %v7286_v31 = vld [vmem:[#allocation18_spill] sm:$0xff] }
 0x212   : > { %v2359_v1 = vadd.f32 -1.4531521, %v2343_v4  ;;  %v2117_v3 = vadd.f32 %v2101_v12, %v2039_v46  ;;  %v2151_v24 = vadd.f32 %v2135_v60, %v2115_v34  ;;  %v2152_v56 = vadd.f32 %v5847_v25, %v2116_v50  ;;  %v7295_v34 = vld [vmem:[#allocation28_spill] sm:$0xff] }
 0x213   : > { %v5942_v47 = vadd.f32 %v5256_v32, %v2186_v15  ;;  %v7284_v53 = vsub.f32 1.0, %v5777_v26  ;;  %v2299_v19 = vmul.f32 0.3275911, %v5780_v49  ;;  %v7285_v41 = vsub.f32 0.0, %v5780_v49  ;;  %v7296_v15 = vld [vmem:[#allocation55_spill] sm:$0xff] }
 0x214   : > { %v2102_v5 = vadd.f32 %v2086_v43, %v2024_v14  ;;  %v2173_v4 = vmul.f32 %v5229_v33, %v2081_v17  ;;  %v2153_v57 = vadd.f32 %v2137_v55, %v2117_v3  ;;  %v2187_v51 = vadd.f32 %v2171_v42, %v2151_v24 }
 0x215   : > { %7282 = vst [vmem:[#allocation6_spill] sm:$0xff] %v5942_v47  ;;  %v2582_v36 = vmul.f32 %v7284_v53, %v7283_v29  ;;  %v2507_v2 = vmul.f32 %v7285_v41, %v5780_v49  ;;  %v2188_v58 = vadd.f32 %v2172_v8, %v2152_v56  ;;  %v2569_v25 = vsub.f32 1.0, %v5840_v37  ;;  %v7293_v49 = vld [vmem:[#allocation30_spill] sm:$0xff]  ;;  %v7298_v41 = vld [vmem:[#allocation36_spill] sm:$0xff] }
 0x216   : > { %v2285_v61 = vand.u32 2147483647, %v5843_v62  ;;  %v2138_v12 = vadd.f32 %v7286_v31, %v2102_v5  ;;  %v5956_v26 = vmul.f32 0.70710677, %v5942_v47  ;;  %v7289_v48 = vand.u32 15, %v7288_v27 }
 0x217   : > { %v7290_v60 = vmov 0  ;;  %v2568_v33 = vsub.f32 1.0, %v5834_v38  ;;  %v5967_v17 = vmul.f32 %v4993_v28, %v7293_v49  ;;  %v2189_v37 = vadd.f32 %v2173_v4, %v2153_v57 }
 0x218   : > { %7287 = vst [vmem:[#allocation21_spill] sm:$0xff] %v5956_v26  ;;  %vm5960_vm6 = vcmp.le.s32.totalorder %v7289_v48, 14  ;;  %v2375_v55 = vmul.f32 %v7273_v10, %v2359_v1  ;;  %v7294_v43 = vmov -1.0   ;;  %v5975_v50 = vmul.f32 %v4947_v13, %v7295_v34  ;;  %v7302_v48 = vld [vmem:[#allocation56_spill] sm:$0xff] }
 0x219   : > { %v7291_v60 = vsel %vm5960_vm6, 4294967295, %v7290_v60  ;;  %v2264_v46 = vsel %vm2248_vm0, 1.0, %v7294_v43  ;;  %v2174_v8 = vadd.f32 %v7296_v15, %v2138_v12  ;;  %v5979_v30 = vadd.f32 %v5256_v32, %v2187_v51 }
 0x21a   : > { %7292 = vst [vmem:[#allocation52_spill] sm:$0xff] %v7291_v60  ;;  %v5983_v38 = vmul.f32 %v5147_v39, %v7293_v49  ;;  %v2265_v14 = vsel %vm2249_vm1, 1.0, %v7294_v43  ;;  %v2315_v42 = vadd.f32 1.0, %v2299_v19  ;;  %v5989_v52 = vand.u32 2147483647, %v5956_v26 }
 0x21b   : > { %7297 = vst [vmem:[#allocation32_spill] sm:$0xff] %v5979_v30  ;;  %v2598_v1 = vadd.f32 1.0, %v2582_v36  ;;  %v2529_v3 = vmul.f32 1.442695, %v2507_v2  ;;  %v2585_v24 = vmul.f32 %v2569_v25, %v2265_v14  ;;  %v2493_v56 = vsub.f32 0.0, %v2285_v61  ;;  %v7301_v25 = vld [vmem:[#allocation48_spill] sm:$0xff] }
 0x21c   : > { %v2584_v29 = vmul.f32 %v2568_v33, %v2264_v46  ;;  %v5993_v53 = vmul.f32 %v5144_v20, %v7295_v34  ;;  %v5997_v5 = vmul.f32 %v4947_v13, %v7298_v41  ;;  %v2391_v4 = vadd.f32 1.4214138, %v2375_v55 }
 0x21d   : > { %v6001_v19 = vmul.f32 %v4993_v28, %v7299_v54  ;;  %v6005_v36 = vmul.f32 %v5144_v20, %v7298_v41  ;;  %v2301_v2 = vmul.f32 0.3275911, %v2285_v61  ;;  %v6008_v57 = vmul.f32 0.70710677, %v5979_v30 }
 0x21e   : > { %v6012_v51 = vmul.f32 %v5147_v39, %v7299_v54  ;;  %v2217_v31 = vmul.f32 0.5, %v7301_v25  ;;  %4530 = vrcp.f32 %v2315_v42  ;;  %v2305_v12 = vmul.f32 0.3275911, %v5989_v52  ;;  %v7305_v42 = vld [vmem:[#allocation60_spill] sm:$0xff] }
 0x21f   : > { %7300 = vst [vmem:[#allocation5_spill] sm:$0xff] %v6008_v57  ;;  %v6017_v33 = vmul.f32 %v2598_v1, %v7302_v48  ;;  %4532 = vpow2.f32 %v2529_v3  ;;  %v2601_v49 = vadd.f32 1.0, %v2585_v24  ;;  %v2509_v55 = vmul.f32 %v2493_v56, %v2285_v61  ;;  %v7308_v56 = vld [vmem:[#allocation24_spill] sm:$0xff] }
 0x220   : > { %v2600_v46 = vadd.f32 1.0, %v2584_v29  ;;  %v6021_v15 = vmul.f32 %v5147_v39, %v5589_v40  ;;  %v6025_v14 = vmul.f32 %v5144_v20, %v5555_v45  ;;  %v2407_v41 = vmul.f32 %v7273_v10, %v2391_v4  ;;  %v7310_v4 = vld [vmem:[#allocation4_spill] sm:$0xff] }
 0x221   : > { %v6030_v54 = vmul.f32 %v4947_v13, %v7305_v42  ;;  %v2317_v1 = vadd.f32 1.0, %v2301_v2  ;;  %v6033_v3 = vand.u32 2147483647, %v6008_v57  ;;  %v6036_v61 = vadd.f32 %v5256_v32, %v2174_v8 }
 0x222   : > { %7303 = vst [vmem:[#allocation59_spill] sm:$0xff] %v6021_v15  ;;  %7304 = vst [vmem:[#allocation61_spill] sm:$0xff] %v6025_v14  ;;  %v6040_v40 = vmul.f32 %v5144_v20, %v7305_v42  ;;  %v6043_v45 = vadd.f32 %v5256_v32, %v2188_v58  ;;  %v2321_v24 = vadd.f32 1.0, %v2305_v12  ;;  %v1787_v13 = vsel %vm5960_vm6, %v7308_v56, 0.0 }
 0x223   : > { %7306 = vst [vmem:[#allocation13_spill] sm:$0xff] %v6030_v54  ;;  %v6048_v29 = vmul.f32 %v2601_v49, %v2217_v31  ;;  %v6052_v2 = vmul.f32 %v4993_v28, %v7310_v4  ;;  %v6056_v8 = vmul.f32 %v5147_v39, %v7310_v4  ;;  %v2533_v20 = vmul.f32 1.442695, %v2509_v55 }
 0x224   : > { %7307 = vst [vmem:[#allocation14_spill] sm:$0xff] %v6043_v45  ;;  %v6059_v25 = vmul.f32 %v2600_v46, %v5760_v63  ;;  %v6062_v58 = vadd.f32 %v5256_v32, %v2189_v37  ;;  %v6065_v12 = vmul.f32 0.70710677, %v6036_v61  ;;  %v2423_v31 = vadd.f32 -0.28449672, %v2407_v41  ;;  %v7316_v37 = vld [vmem:[#allocation27_spill] sm:$0xff] }
 0x225   : > { %7309 = vst [vmem:[#allocation31_spill] sm:$0xff] %v6048_v29  ;;  %7311 = vst [vmem:[#allocation49_spill] sm:$0xff] %v6052_v2  ;;  %v6068_v48 = vmul.f32 0.5, %v5803_v21  ;;  %4534 = vrcp.f32 %v2317_v1  ;;  %v2306_v28 = vmul.f32 0.3275911, %v6033_v3  ;;  %v1863_v39 = vmul.f32 %v4970_v22, %v1787_v13  ;;  %v7317_v46 = vld [vmem:[#allocation46_spill] sm:$0xff] }
 0x226   : > { %7312 = vst [vmem:[#allocation50_spill] sm:$0xff] %v6059_v25  ;;  %7313 = vst [vmem:[#allocation51_spill] sm:$0xff] %v6062_v58  ;;  %v6073_v49 = vmul.f32 0.70710677, %v6043_v45  ;;  %4536 = vrcp.f32 %v2321_v24  ;;  %v2277_v63 = vand.u32 2147483647, %v6065_v12  ;;  %v2439_v27 = vmul.f32 %v7273_v10, %v2423_v31 }
 0x227   : > { %7314 = vst [vmem:[#allocation58_spill] sm:$0xff] %v6068_v48  ;;  %v1921_v55 = vsel %vm5960_vm6, %v7316_v37, 0.0  ;;  %4538 = vpow2.f32 %v2533_v20  ;;  %vm2247_vm1 = vcmp.ge.f32.partialorder %v7317_v46, 0.0  ;;  %v7318_v41 = vld [vmem:[#allocation26_spill] sm:$0xff]  ;;  %v6085_v56 = vmul.f32 0.70710677, %v6062_v58 }
 0x228   : > { %7315 = vst [vmem:[#allocation18_spill] sm:$0xff] %v6073_v49  ;;  %v1879_v42 = vadd.f32 %v1863_v39, %v7318_v41  ;;  %v6082_v1 = vpop.eup %4530  ;;  %v7320_v13 = vld [vmem:[#allocation41_spill] sm:$0xff]  ;;  %v2293_v4 = vmul.f32 0.3275911, %v2277_v63  ;;  %v2322_v20 = vadd.f32 1.0, %v2306_v28  ;;  %v7125_v46 = vrot.slane %v6059_v25, 1 }
 0x229   : > { %7319 = vst [vmem:[#allocation30_spill] sm:$0xff] %v6085_v56  ;;  %v6088_v24 = vmul.f32 0.5, %v7320_v13  ;;  %v6091_v44 = vpop.eup %4532  ;;  %v2013_v39 = vmul.f32 %v4973_v23, %v1921_v55  ;;  %v2291_v41 = vand.u32 2147483647, %v6073_v49  ;;  %v6098_v30 = vsel %vm2247_vm1, 1.0, %v7294_v43  ;;  %v7323_v28 = vld [vmem:[#allocation54_spill] sm:$0xff] }
 0x22a   : > { %v1957_v21 = vadd.f32 %v7321_v6, %v1879_v42  ;;  %v2309_v47 = vadd.f32 1.0, %v2293_v4  ;;  %v7322_v7 = vrot.slane %v6048_v29, 1  ;;  %v2347_v55 = vmul.f32 1.0614054, %v6082_v1  ;;  %v7326_v48 = vld [vmem:[#allocation47_spill] sm:$0xff] }
 0x22b   : > { %v6112_v42 = vadd.s32 56, %v4914_v59  ;;  %v2292_v57 = vand.u32 2147483647, %v6085_v56  ;;  %v2497_v4 = vsub.f32 0.0, %v5989_v52  ;;  %v2455_v13 = vadd.f32 0.2548296, %v2439_v27 }
 0x22c   : > { %v6107_v31 = vsel %vm7137_vm7, %v7125_v46, %v7322_v7  ;;  %v1993_v6 = vadd.f32 %v7323_v28, %v1957_v21  ;;  %4540 = vrcp.f32 %v2309_v47  ;;  %v2363_v58 = vadd.f32 -1.4531521, %v2347_v55  ;;  %v7325_v21 = vld [vmem:[#allocation40_spill] sm:$0xff] }
 0x22d   : > { %7324 = vst [vmem:[#allocation28_spill] sm:$0xff] %v6112_v42  ;;  %4542 = vrcp.f32 %v2322_v20  ;;  %v7131_v45 = vand.u32 15, %v6112_v42  ;;  %v2498_v7 = vsub.f32 0.0, %v6033_v3  ;;  %v2499_v46 = vsub.f32 0.0, %v2291_v41 }
 0x22e   : > { %v2029_v26 = vadd.f32 %v2013_v39, %v1993_v6  ;;  %v2071_v28 = vsel %vm5960_vm6, %v7325_v21, 0.0  ;;  %v7327_v29 = vrot.slane %v7326_v48, 1  ;;  %v7328_v56 = vrot.slane %v7295_v34, 1 }
 0x22f   : > { %v6129_v27 = vpop.eup %4534  ;;  %v2307_v20 = vmul.f32 0.3275911, %v2291_v41  ;;  %v2379_v6 = vmul.f32 %v6082_v1, %v2363_v58  ;;  %vm6135_vm0 = vcmp.le.s32.totalorder %v7131_v45, 14  ;;  %v2513_v34 = vmul.f32 %v2497_v4, %v5989_v52  ;;  %v6152_v58 = vld [vmem:[%s7033_s3 + $0x8] ss:$0 sm:$0xff] }
 0x230   : > { %v6127_v47 = vsel %vm7137_vm7, %v7328_v56, %v7327_v29  ;;  %v2107_v39 = vadd.f32 %v6012_v51, %v2029_v26  ;;  %v6139_v48 = vpop.eup %4536  ;;  %v2471_v29 = vmul.f32 %v7273_v10, %v2455_v13  ;;  %v2485_v56 = vsub.f32 0.0, %v2277_v63 }
 0x231   : > { %v1789_v60 = vsel %vm6135_vm0, %v7316_v37, 0.0  ;;  %v6146_v26 = vpop.eup %4538  ;;  %v2163_v45 = vmul.f32 %v6152_v58, %v2071_v28  ;;  %v2395_v42 = vadd.f32 1.4214138, %v2379_v6  ;;  %v2308_v10 = vmul.f32 0.3275911, %v2292_v57 }
 0x232   : > { %v2143_v51 = vadd.f32 %v6005_v36, %v2107_v39  ;;  %v1865_v52 = vmul.f32 %v4970_v22, %v1789_v60  ;;  %v2500_v13 = vsub.f32 0.0, %v2292_v57  ;;  %v2514_v4 = vmul.f32 %v2498_v7, %v6033_v3  ;;  %v7331_v39 = vld [vmem:[#allocation22_spill] sm:$0xff] }
 0x233   : > { %v2515_v14 = vmul.f32 %v2499_v46, %v2291_v41  ;;  %v2353_v37 = vmul.f32 1.0614054, %v6139_v48  ;;  %v2411_v36 = vmul.f32 %v6082_v1, %v2395_v42  ;;  %v2323_v18 = vadd.f32 1.0, %v2307_v20 }
 0x234   : > { %v2179_v15 = vadd.f32 %v2163_v45, %v2143_v51  ;;  %v1881_v49 = vadd.f32 %v1865_v52, %v7331_v39  ;;  %v2501_v54 = vmul.f32 %v2485_v56, %v2277_v63  ;;  %v2551_v2 = vmul.f32 %v5908_v9, %v2471_v29 }
 0x235   : > { %v2541_v6 = vmul.f32 1.442695, %v2513_v34  ;;  %v2427_v3 = vadd.f32 -0.28449672, %v2411_v36  ;;  %v2324_v41 = vadd.f32 1.0, %v2308_v10  ;;  %v1923_v9 = vsel %vm6135_vm0, %v7325_v21, 0.0 }
 0x236   : > { %v6165_v11 = vadd.f32 %v5256_v32, %v2179_v15  ;;  %v1959_v46 = vadd.f32 %v6001_v19, %v1881_v49  ;;  %v6168_v45 = vpop.eup %4540  ;;  %v6170_v42 = vmul.f32 1.442695, %v2514_v4  ;;  %v2349_v63 = vmul.f32 1.0614054, %v6129_v27 }
 0x237   : > { %v6176_v7 = vpop.eup %4542  ;;  %v2369_v20 = vadd.f32 -1.4531521, %v2353_v37  ;;  %v2516_v34 = vmul.f32 %v2500_v13, %v2292_v57  ;;  %v2545_v32 = vmul.f32 1.442695, %v2515_v14  ;;  %v2341_v15 = vmul.f32 1.0614054, %v6168_v45 }
 0x238   : > { %v2517_v29 = vmul.f32 1.442695, %v2501_v54  ;;  %v2567_v19 = vsub.f32 1.0, %v2551_v2  ;;  %v6180_v49 = vmul.f32 0.70710677, %v6165_v11  ;;  %v2443_v56 = vmul.f32 %v6082_v1, %v2427_v3 }
 0x239   : > { %v2357_v51 = vadd.f32 -1.4531521, %v2341_v15  ;;  %v1995_v52 = vadd.f32 %v5997_v5, %v1959_v46  ;;  %v2015_v10 = vmul.f32 %v4973_v23, %v1923_v9  ;;  %v2365_v4 = vadd.f32 -1.4531521, %v2349_v63 }
 0x23a   : > { %4544 = vrcp.f32 %v2323_v18  ;;  %v2354_v37 = vmul.f32 1.0614054, %v6176_v7  ;;  %v6187_v57 = vand.u32 2147483647, %v6180_v49  ;;  %v2459_v14 = vadd.f32 0.2548296, %v2443_v56 }
 0x23b   : > { %4546 = vrcp.f32 %v2324_v41  ;;  %v6190_v54 = vmul.f32 0.5, %v6036_v61  ;;  %v2373_v2 = vmul.f32 %v6168_v45, %v2357_v51  ;;  %v2031_v13 = vadd.f32 %v2015_v10, %v1995_v52 }
 0x23c   : > { %v2385_v36 = vmul.f32 %v6139_v48, %v2369_v20  ;;  %v2583_v5 = vmul.f32 %v2567_v19, %v6098_v30  ;;  %v2298_v39 = vmul.f32 0.3275911, %v6187_v57  ;;  %v2073_v18 = vsel %vm6135_vm0, %v6127_v47, 0.0 }
 0x23d   : > { %v2547_v3 = vmul.f32 1.442695, %v2516_v34  ;;  %v2389_v46 = vadd.f32 1.4214138, %v2373_v2  ;;  %v2109_v41 = vadd.f32 %v5983_v38, %v2031_v13  ;;  %v2381_v61 = vmul.f32 %v6129_v27, %v2365_v4 }
 0x23e   : > { %v2370_v9 = vadd.f32 -1.4531521, %v2354_v37  ;;  %4548 = vpow2.f32 %v2517_v29  ;;  %v2314_v63 = vadd.f32 1.0, %v2298_v39  ;;  %v2475_v15 = vmul.f32 %v6082_v1, %v2459_v14 }
 0x23f   : > { %v2405_v30 = vmul.f32 %v6168_v45, %v2389_v46  ;;  %v2145_v20 = vadd.f32 %v5993_v53, %v2109_v41  ;;  %v2165_v19 = vmul.f32 %v6152_v58, %v2073_v18  ;;  %v2397_v56 = vadd.f32 1.4214138, %v2381_v61 }
 0x240   : > { %v2401_v34 = vadd.f32 1.4214138, %v2385_v36  ;;  %vm2245_vm7 = vcmp.ge.f32.partialorder %v6065_v12, 0.0  ;;  %v2599_v38 = vadd.f32 1.0, %v2583_v5  ;;  %4550 = vrcp.f32 %v2314_v63  ;;  %v6219_v12 = vld [vmem:[%s7034_s4] ss:$0 sm:$0xff] }
 0x241   : > { %4552 = vpow2.f32 %v2541_v6  ;;  %v2421_v51 = vadd.f32 -0.28449672, %v2405_v30  ;;  %v2181_v29 = vadd.f32 %v2165_v19, %v2145_v20  ;;  %v2413_v52 = vmul.f32 %v6129_v27, %v2397_v56 }
 0x242   : > { %v2386_v1 = vmul.f32 %v6176_v7, %v2370_v9  ;;  %4554 = vpow2.f32 %v2545_v32  ;;  %v2555_v10 = vmul.f32 %v6091_v44, %v2475_v15  ;;  %v6211_v53 = vadd.s32 72, %v4914_v59  ;;  %v7338_v9 = vld [vmem:[#allocation3_spill] sm:$0xff] }
 0x243   : > { %v2261_v4 = vsel %vm2245_vm7, 1.0, %v7294_v43  ;;  %v2437_v37 = vmul.f32 %v6168_v45, %v2421_v51  ;;  %vm2251_vm1 = vcmp.ge.f32.partialorder %v5688_v35, 0.0  ;;  %v6222_v6 = vadd.f32 %v6219_v12, %v2181_v29 }
 0x244   : > { %7333 = vst [vmem:[#allocation55_spill] sm:$0xff] %v6211_v53  ;;  %v6224_v32 = vpop.eup %4544  ;;  %v2417_v44 = vmul.f32 %v6139_v48, %v2401_v34  ;;  %v6228_v14 = vmul.f32 %v2599_v38, %v6088_v24  ;;  %v2429_v2 = vadd.f32 -0.28449672, %v2413_v52  ;;  %v7139_v13 = vand.u32 15, %v6211_v53 }
 0x245   : > { %v6231_v36 = vpop.eup %4546  ;;  %4556 = vpow2.f32 %v2547_v3  ;;  %v2453_v5 = vadd.f32 0.2548296, %v2437_v37  ;;  %v2490_v39 = vsub.f32 0.0, %v6187_v57  ;;  %v6235_v18 = vmul.f32 0.70710677, %v6222_v6 }
 0x246   : > { %7334 = vst [vmem:[#allocation36_spill] sm:$0xff] %v6228_v14  ;;  %v2402_v46 = vadd.f32 1.4214138, %v2386_v1  ;;  %v2571_v41 = vsub.f32 1.0, %v2555_v10  ;;  %vm6239_vm7 = vcmp.le.s32.totalorder %v7139_v13, 14  ;;  %v6245_v24 = vadd.f32 %v6219_v12, %v5748_v16 }
 0x247   : > { %v2469_v3 = vmul.f32 %v6168_v45, %v2453_v5  ;;  %v2219_v63 = vmul.f32 0.5, %v7338_v9  ;;  %v2267_v15 = vsel %vm2251_vm1, 1.0, %v7294_v43  ;;  %v2284_v30 = vand.u32 2147483647, %v6235_v18 }
 0x248   : > { %7337 = vst [vmem:[#allocation39_spill] sm:$0xff] %v6245_v24  ;;  %v4549_v20 = vpop.eup %4548  ;;  %v6253_v19 = vadd.f32 -0.28449672, %v2417_v44  ;;  %v2723_v56 = vrot.slane %v6228_v14, 1  ;;  %v2445_v34 = vmul.f32 %v6129_v27, %v2429_v2  ;;  %v1791_v16 = vsel %vm6239_vm7, %v7325_v21, 0.0 }
 0x249   : > { %v2549_v45 = vmul.f32 %v4549_v20, %v2469_v3  ;;  %v2506_v38 = vmul.f32 %v2490_v39, %v6187_v57  ;;  %v2300_v51 = vmul.f32 0.3275911, %v2284_v30  ;;  %v1867_v35 = vmul.f32 %v4970_v22, %v1791_v16 }
 0x24a   : > { %v6262_v29 = vpop.eup %4550  ;;  %v6265_v52 = vmul.f32 %v6176_v7, %v2402_v46  ;;  %v2587_v1 = vmul.f32 %v2571_v41, %v2267_v15  ;;  %vm7339_vm1 = vcmp.ge.f32.partialorder %v5843_v62, 0.0  ;;  %v6273_v37 = vmul.f32 0.70710677, %v6245_v24  ;;  %v7344_v15 = vld [vmem:[#allocation42_spill] sm:$0xff] }
 0x24b   : > { %v6270_v10 = vsel %vm7339_vm1, 1.0, %v7294_v43  ;;  %v6275_v21 = vpop.eup %4552  ;;  %v2565_v57 = vsub.f32 1.0, %v2549_v45  ;;  %v2346_v44 = vmul.f32 1.0614054, %v6262_v29  ;;  %v2316_v2 = vadd.f32 1.0, %v2300_v51 }
 0x24c   : > { %v1925_v5 = vsel %vm6239_vm7, %v6127_v47, 0.0  ;;  %v6281_v39 = vpop.eup %4554  ;;  %v7340_v46 = vrot.slane %v6017_v33, 1  ;;  %vm7341_vm1 = vcmp.lt.s32.totalorder %v4914_v59, 7  ;;  %v7342_v41 = vrot.slane %v6059_v25, 1 }
 0x24d   : > { %vm7343_vm15 = vmmov %vm7341_vm1  ;;  %v2461_v9 = vadd.f32 0.2548296, %v2445_v34  ;;  %v1883_v20 = vadd.f32 %v1867_v35, %v7344_v15  ;;  %v2581_v16 = vmul.f32 %v2565_v57, %v2261_v4  ;;  %v2362_v45 = vadd.f32 -1.4531521, %v2346_v44 }
 0x24e   : > { %v2750_v62 = vsel %vm7341_vm1, %v7340_v46, %v2723_v56  ;;  %v2749_v3 = vsel %vm7343_vm15, %v2723_v56, %v7342_v41  ;;  %v2527_v51 = vmul.f32 1.442695, %v2506_v38  ;;  %4558 = vrcp.f32 %v2316_v2 }
 0x24f   : > { %v2603_v13 = vadd.f32 1.0, %v2587_v1  ;;  %v1961_v60 = vadd.f32 %v5967_v17, %v1883_v20  ;;  %v2017_v14 = vmul.f32 %v4973_v23, %v1925_v5  ;;  %v6295_v53 = vand.u32 2147483647, %v6273_v37  ;;  %v6297_v46 = vpop.eup %4556 }
 0x250   : > { %v2597_v25 = vadd.f32 1.0, %v2581_v16  ;;  %v2754_v56 = vsel %vm4988_vm9, %v2750_v62, 0.0  ;;  %v7346_v4 = vsel %vm5063_vm11, %v6107_v31, 0.0  ;;  %v2378_v38 = vmul.f32 %v6262_v29, %v2362_v45  ;;  %vm7348_vm9 = vmmov %vm7341_vm1 }
 0x251   : > { %v2770_v34 = vpack.c.bf16 %v7346_v4, %v2749_v3  ;;  %v2477_v17 = vmul.f32 %v6129_v27, %v2461_v9  ;;  %v2492_v35 = vsub.f32 0.0, %v2284_v30  ;;  %v1997_v1 = vadd.f32 %v5975_v50, %v1961_v60 }
 0x252   : > { %v2303_v57 = vmul.f32 0.3275911, %v6295_v53  ;;  %v6310_v44 = vmul.f32 %v2597_v25, %v6190_v54  ;;  %vm2250_vm15 = vcmp.ge.f32.partialorder %v6180_v49, 0.0  ;;  %v2394_v24 = vadd.f32 1.4214138, %v2378_v38 }
 0x253   : > { %v6314_v28 = vadd.s32 88, %v4914_v59  ;;  %4560 = vpow2.f32 %v2527_v51  ;;  %v6316_v31 = vmul.f32 %v2603_v13, %v2219_v63  ;;  %v2033_v2 = vadd.f32 %v2017_v14, %v1997_v1 }
 0x254   : > { %v2319_v5 = vadd.f32 1.0, %v2303_v57  ;;  %v2721_v27 = vrot.slane %v6310_v44, 1  ;;  %v2410_v50 = vmul.f32 %v6262_v29, %v2394_v24  ;;  %v2075_v25 = vsel %vm6239_vm7, %v5678_v0, 0.0 }
 0x255   : > { %v407_v60 = vand.u32 15, %v6314_v28  ;;  %v2508_v54 = vmul.f32 %v2492_v35, %v2284_v30  ;;  %v2557_v62 = vmul.f32 %v6146_v26, %v2477_v17  ;;  %v2111_v41 = vadd.f32 %v6056_v8, %v2033_v2 }
 0x256   : > { %4562 = vrcp.f32 %v2319_v5  ;;  %v7347_v13 = vrot.slane %v6017_v33, 1  ;;  %v2426_v63 = vadd.f32 -0.28449672, %v2410_v50  ;;  %v2355_v30 = vmul.f32 1.0614054, %v6224_v32  ;;  %v7354_v5 = vld [vmem:[#allocation33_spill] sm:$0xff] }
 0x257   : > { %vm6334_vm11 = vcmp.le.s32.totalorder %v407_v60, 14  ;;  %v6340_v8 = vmul.f32 0.5, %v6165_v11  ;;  %v2147_v9 = vadd.f32 %v6040_v40, %v2111_v41  ;;  %v2167_v15 = vmul.f32 %v6152_v58, %v2075_v25  ;;  %v4507_v11 = vld [vmem:[%s7035_s5 + $0x8] ss:$0 sps:$4 sm:$0x33]   ;;  %v6378_v41 = vld [vmem:[%s7035_s5 + $0x18] sm:$0xff]  }
 0x258   : > { %v2751_v14 = vsel %vm7348_vm9, %v2721_v27, %v7347_v13  ;;  %v6344_v20 = vpop.eup %4558  ;;  %v2266_v16 = vsel %vm2250_vm15, 1.0, %v7294_v43  ;;  %v2442_v45 = vmul.f32 %v6262_v29, %v2426_v63  ;;  %v2727_v51 = vrot.slane %v6316_v31, 1 }
 0x259   : > { %v2769_v26 = vpack.c.bf16 %v2754_v56, %v2751_v14  ;;  %v1793_v56 = vsel %vm6334_vm11, %v6127_v47, 0.0  ;;  %vm7351_vm1 = vcmask 162816   ;;  %v2348_v40 = vmul.f32 1.0614054, %v6344_v20  ;;  %v7353_v47 = vld [vmem:[#allocation20_spill] sm:$0xff] }
 0x25a   : > { %v2531_v4 = vmul.f32 1.442695, %v2508_v54  ;;  %v2183_v38 = vadd.f32 %v2167_v15, %v2147_v9  ;;  %v1869_v49 = vmul.f32 %v4970_v22, %v1793_v56  ;;  %vm7352_vm15 = vmmov %vm7351_vm1  ;;  %v2458_v17 = vadd.f32 0.2548296, %v2442_v45 }
 0x25b   : > { %4196 = vmatprep.mubr.msk.bf16.mxu1 %vm7351_vm1, %v2769_v26  ;;  %v2573_v35 = vsub.f32 1.0, %v2557_v62  ;;  %v2495_v1 = vsub.f32 0.0, %v6295_v53  ;;  %v2371_v57 = vadd.f32 -1.4531521, %v2355_v30  ;;  %v2364_v24 = vadd.f32 -1.4531521, %v2348_v40 }
 0x25c   : > { %4197 = vmatmul.mubr.msk.bf16.vlgmr.msra.gmra.mrb[8].mxu1 %vm7352_vm15, %v2770_v34  ;;  %v6364_v2 = vadd.f32 %v6219_v12, %v2183_v38  ;;  %v1885_v50 = vadd.f32 %v1869_v49, %v7354_v5  ;;  %v1927_v25 = vsel %vm6334_vm11, %v5678_v0, 0.0  ;;  %v2474_v22 = vmul.f32 %v6262_v29, %v2458_v17  ;;  %v7357_v29 = vld [vmem:[#allocation49_spill] sm:$0xff]  ;;  %v7359_v5 = vld [vmem:[#allocation63_spill] sm:$0xff] }
 0x25d   : > { %4213 = vmatpush3.bf16.msra.mxu1 %v7353_v47  ;;  %vm7355_vm9 = vcmask 1041408   ;;  %v2387_v34 = vmul.f32 %v6224_v32, %v2371_v57  ;;  %v2356_v62 = vmul.f32 1.0614054, %v6231_v36  ;;  %v4561_v13 = vpop.eup %4560  ;;  %v2380_v14 = vmul.f32 %v6344_v20, %v2364_v24  ;;  %v7358_v40 = vld [vmem:[#allocation13_spill] sm:$0xff] }
 0x25e   : > { %4447 = vmatprep.subr.msk.bf16.mxu1 %vm7355_vm9, %v4507_v11  ;;  %vm7356_vm1 = vmmov %vm7355_vm9  ;;  %4564 = vpow2.f32 %v2531_v4  ;;  %v6382_v0 = vmul.f32 0.70710677, %v6364_v2  ;;  %v1963_v63 = vadd.f32 %v7357_v29, %v1885_v50  ;;  %v2554_v30 = vmul.f32 %v4561_v13, %v2474_v22  ;;  %v7361_v13 = vld [vmem:[#allocation59_spill] sm:$0xff] }
 0x25f   : > { %v2948_v54 = vsel %vm7356_vm1, %v4507_v11, 0  ;;  %v2511_v26 = vmul.f32 %v2495_v1, %v6295_v53  ;;  %v2403_v9 = vadd.f32 1.4214138, %v2387_v34  ;;  %v2372_v15 = vadd.f32 -1.4531521, %v2356_v62 }
 0x260   : > { %v6386_v45 = vpop.eup %4562  ;;  %v2396_v56 = vadd.f32 1.4214138, %v2380_v14  ;;  %v6389_v11 = vand.u32 2147483647, %v6382_v0  ;;  %v1999_v38 = vadd.f32 %v7358_v40, %v1963_v63  ;;  %v2019_v4 = vmul.f32 %v4973_v23, %v1927_v25 }
 0x261   : > { %4215 = vmatpush3.bf16.msra.mxu1 %v2948_v54  ;;  %v2570_v49 = vsub.f32 1.0, %v2554_v30  ;;  %v2589_v17 = vmul.f32 %v2573_v35, %v6270_v10  ;;  %v2351_v57 = vmul.f32 1.0614054, %v6386_v45  ;;  %v2419_v53 = vmul.f32 %v6224_v32, %v2403_v9  ;;  %v7360_v35 = vld [vmem:[#allocation18_spill] sm:$0xff] }
 0x262   : > { %4232 = vmatprep.subr.bf16.mxu1 %v6378_v41  ;;  %v2412_v1 = vmul.f32 %v6344_v20, %v2396_v56  ;;  %v2302_v47 = vmul.f32 0.3275911, %v6389_v11  ;;  %v2035_v24 = vadd.f32 %v2019_v4, %v1999_v38  ;;  %v2077_v50 = vsel %vm6334_vm11, %v7359_v5, 0.0 }
 0x263   : > { %v2586_v23 = vmul.f32 %v2570_v49, %v2266_v16  ;;  %v2367_v25 = vadd.f32 -1.4531521, %v2351_v57  ;;  %v2435_v22 = vadd.f32 -0.28449672, %v2419_v53  ;;  %v2388_v10 = vmul.f32 %v6231_v36, %v2372_v15  ;;  %v7362_v16 = vld [vmem:[#allocation61_spill] sm:$0xff] }
 0x264   : > { %v2428_v34 = vadd.f32 -0.28449672, %v2412_v1  ;;  %v2318_v54 = vadd.f32 1.0, %v2302_v47  ;;  %v2537_v62 = vmul.f32 1.442695, %v2511_v26  ;;  %v2113_v14 = vadd.f32 %v7361_v13, %v2035_v24 }
 0x265   : > { %v2602_v29 = vadd.f32 1.0, %v2586_v23  ;;  %v2383_v63 = vmul.f32 %v6386_v45, %v2367_v25  ;;  %v2451_v30 = vmul.f32 %v6224_v32, %v2435_v22  ;;  %v2404_v9 = vadd.f32 1.4214138, %v2388_v10  ;;  %v7363_v22 = vld [vmem:[#allocation30_spill] sm:$0xff] }
 0x266   : > { %v2444_v56 = vmul.f32 %v6344_v20, %v2428_v34  ;;  %4566 = vrcp.f32 %v2318_v54  ;;  %v2149_v40 = vadd.f32 %v7362_v16, %v2113_v14  ;;  %v2169_v15 = vmul.f32 %v6152_v58, %v2077_v50  ;;  %v7365_v54 = vld [vmem:[#allocation31_spill] sm:$0xff] }
 0x267   : > { %v6411_v38 = vmul.f32 %v2602_v29, %v6340_v8  ;;  %v2399_v4 = vadd.f32 1.4214138, %v2383_v63  ;;  %v2467_v26 = vadd.f32 0.2548296, %v2451_v30  ;;  %v2420_v49 = vmul.f32 %v6231_v36, %v2404_v9 }
 0x268   : > { %v4565_v57 = vpop.eup %4564  ;;  %v2434_v53 = vadd.f32 -0.28449672, %v6265_v52  ;;  %v2460_v1 = vadd.f32 0.2548296, %v2444_v56  ;;  %v2185_v47 = vadd.f32 %v2169_v15, %v2149_v40  ;;  %v2605_v23 = vadd.f32 1.0, %v2589_v17  ;;  %v7371_v15 = vld [vmem:[#allocation58_spill] sm:$0xff] }
 0x269   : > { %v2726_v24 = vrot.slane %v6411_v38, 1  ;;  %v2415_v5 = vmul.f32 %v6386_v45, %v2399_v4  ;;  %v2483_v58 = vmul.f32 %v6224_v32, %v2467_v26  ;;  %v2436_v50 = vadd.f32 -0.28449672, %v2420_v49 }
 0x26a   : > { %v2476_v8 = vmul.f32 %v6344_v20, %v2460_v1  ;;  %4568 = vpow2.f32 %v2537_v62  ;;  %v6421_v25 = vadd.f32 %v6219_v12, %v2185_v47  ;;  %vm2260_vm1 = vcmp.ge.f32.partialorder %v7363_v22, 0.0 }
 0x26b   : > { %vm7364_vm15 = vcmp.lt.s32.totalorder %v4914_v59, 7  ;;  %v2431_v10 = vadd.f32 -0.28449672, %v2415_v5  ;;  %v2494_v34 = vsub.f32 0.0, %v6389_v11  ;;  %v2563_v32 = vmul.f32 %v6281_v39, %v2483_v58 }
 0x26c   : > { %v2746_v52 = vsel %vm7364_vm15, %v2726_v24, %v2727_v51  ;;  %v7366_v13 = vrot.slane %v7365_v54, 1  ;;  %vm7367_vm9 = vmmov %vm7364_vm15  ;;  %v2556_v62 = vmul.f32 %v4565_v57, %v2476_v8  ;;  %v6437_v14 = vmul.f32 0.70710677, %v6421_v25 }
 0x26d   : > { %v2758_v12 = vsel %vm5960_vm6, %v2746_v52, 0.0  ;;  %v2447_v63 = vmul.f32 %v6386_v45, %v2431_v10  ;;  %v2579_v30 = vsub.f32 1.0, %v2563_v32  ;;  %v2452_v9 = vmul.f32 %v6231_v36, %v2436_v50 }
 0x26e   : > { %v2747_v20 = vsel %vm7367_vm9, %v7366_v13, %v2726_v24  ;;  %v2449_v39 = vmul.f32 %v6139_v48, %v6253_v19  ;;  %vm7369_vm15 = vcmp.ge.f32.partialorder %v6235_v18, 0.0  ;;  %v2572_v16 = vsub.f32 1.0, %v2556_v62 }
 0x26f   : > { %v2771_v29 = vpack.c.bf16 %v2758_v12, %v2747_v20  ;;  %v2268_v56 = vsel %vm7369_vm15, 1.0, %v7294_v43  ;;  %v2288_v40 = vand.u32 2147483647, %v6437_v14  ;;  %vm7370_vm6 = vcmask 162816  }
 0x270   : > { %v6449_v4 = vmul.f32 %v2605_v23, %v7371_v15  ;;  %v2463_v26 = vadd.f32 0.2548296, %v2447_v63  ;;  %vm7372_vm9 = vcmp.ge.f32.partialorder %v7360_v35, 0.0  ;;  %v2468_v57 = vadd.f32 0.2548296, %v2452_v9  ;;  %v6454_v1 = vpop.eup %4566 }
 0x271   : > { %4200 = vmatprep.mubr.msk.bf16.mxu1 %vm7370_vm6, %v2771_v29  ;;  %v2275_v49 = vsel %vm7372_vm9, 1.0, %v7294_v43  ;;  %v2588_v19 = vmul.f32 %v2572_v16, %v2268_v56  ;;  %v2510_v18 = vmul.f32 %v2494_v34, %v6389_v11  ;;  %v2304_v47 = vmul.f32 0.3275911, %v2288_v40 }
 0x272   : > { %v2595_v24 = vmul.f32 %v2579_v30, %v2275_v49  ;;  %v2450_v5 = vmul.f32 %v6176_v7, %v2434_v53  ;;  %4570 = vpow2.f32 %v6170_v42  ;;  %v2350_v58 = vmul.f32 1.0614054, %v6454_v1 }
 0x273   : > { %v2484_v50 = vmul.f32 %v6231_v36, %v2468_v57  ;;  %v2465_v8 = vadd.f32 0.2548296, %v2449_v39  ;;  %v2220_v35 = vmul.f32 0.5, %v6222_v6  ;;  %v2604_v23 = vadd.f32 1.0, %v2588_v19  ;;  %v7373_v6 = vld [vmem:[#allocation14_spill] sm:$0xff] }
 0x274   : > { %v2320_v52 = vadd.f32 1.0, %v2304_v47  ;;  %v2729_v10 = vrot.slane %v6449_v4, 1  ;;  %v2366_v32 = vadd.f32 -1.4531521, %v2350_v58  ;;  %v2479_v11 = vmul.f32 %v6386_v45, %v2463_v26  ;;  %v4569_v13 = vpop.eup %4568  ;;  %v7376_v26 = vld [vmem:[#allocation51_spill] sm:$0xff] }
 0x275   : > { %v2564_v34 = vmul.f32 %v6297_v46, %v2484_v50  ;;  %v6465_v53 = vmul.f32 %v2604_v23, %v2220_v35  ;;  %v2535_v42 = vmul.f32 1.442695, %v2510_v18  ;;  %v2611_v20 = vadd.f32 1.0, %v2595_v24 }
 0x276   : > { %4572 = vrcp.f32 %v2320_v52  ;;  %v2466_v17 = vadd.f32 0.2548296, %v2450_v5  ;;  %v2382_v36 = vmul.f32 %v6454_v1, %v2366_v32  ;;  %v2227_v62 = vmul.f32 0.5, %v7373_v6  ;;  %v7378_v52 = vld [vmem:[#allocation21_spill] sm:$0xff] }
 0x277   : > { %v2580_v12 = vsub.f32 1.0, %v2564_v34  ;;  %v2276_v29 = vsel %vm2260_vm1, 1.0, %v7294_v43  ;;  %v2728_v45 = vrot.slane %v6465_v53, 1  ;;  %v2559_v46 = vmul.f32 %v4569_v13, %v2479_v11  ;;  %v7379_v34 = vld [vmem:[#allocation5_spill] sm:$0xff] }
 0x278   : > { %v2398_v63 = vadd.f32 1.4214138, %v2382_v36  ;;  %v2481_v9 = vmul.f32 %v6139_v48, %v2465_v8  ;;  %vm7374_vm15 = vcmp.lt.s32.totalorder %v4914_v59, 7  ;;  %4574 = vpow2.f32 %v2535_v42 }
 0x279   : > { %v2596_v30 = vmul.f32 %v2580_v12, %v2276_v29  ;;  %v2744_v39 = vsel %vm7374_vm15, %v2728_v45, %v2729_v10  ;;  %v6478_v56 = vmul.f32 %v2611_v20, %v2227_v62  ;;  %v2482_v16 = vmul.f32 %v6176_v7, %v2466_v17  ;;  %vm7375_vm1 = vmmov %vm7374_vm15 }
 0x27a   : > { %v2745_v22 = vsel %vm7375_vm1, %v2727_v51, %v2728_v45  ;;  %v2760_v15 = vsel %vm6135_vm0, %v2744_v39, 0.0  ;;  %v2414_v48 = vmul.f32 %v6454_v1, %v2398_v63  ;;  %v2228_v49 = vmul.f32 0.5, %v7376_v26 }
 0x27b   : > { %v2772_v57 = vpack.c.bf16 %v2760_v15, %v2745_v22  ;;  %v2496_v19 = vsub.f32 0.0, %v2288_v40  ;;  %v2612_v18 = vadd.f32 1.0, %v2596_v30  ;;  %vm2255_vm6 = vcmp.ge.f32.partialorder %v6273_v37, 0.0  ;;  %v7382_v15 = vld [vmem:[#allocation39_spill] sm:$0xff] }
 0x27c   : > { %v4571_v47 = vpop.eup %4570  ;;  %v2430_v24 = vadd.f32 -0.28449672, %v2414_v48  ;;  %v2575_v7 = vsub.f32 1.0, %v2559_v46  ;;  %v2561_v5 = vmul.f32 %v6275_v21, %v2481_v9  ;;  %vm7377_vm9 = vcmask 162816  }
 0x27d   : > { %4201 = vmatmul.mubr.msk.bf16.gmra.mrb[12].mxu1 %vm7377_vm9, %v2772_v57  ;;  %v2735_v51 = vrot.slane %v6478_v56, 1  ;;  %v6493_v55 = vmul.f32 %v2612_v18, %v2228_v49  ;;  %v2562_v58 = vmul.f32 %v4571_v47, %v2482_v16  ;;  %v2271_v35 = vsel %vm2255_vm6, 1.0, %v7294_v43  ;;  %vm7380_vm6 = vmmov %vm7375_vm1  ;;  %v7383_v57 = vld [vmem:[#allocation38_spill] sm:$0xff] }
 0x27e   : > { %v2446_v50 = vmul.f32 %v6454_v1, %v2430_v24  ;;  %v2512_v23 = vmul.f32 %v2496_v19, %v2288_v40  ;;  %vm2257_vm0 = vcmp.ge.f32.partialorder %v7378_v52, 0.0  ;;  %v2591_v21 = vmul.f32 %v2575_v7, %v2271_v35 }
 0x27f   : > { %v2736_v37 = vrot.slane %v6493_v55, 1  ;;  %vm2258_vm15 = vcmp.ge.f32.partialorder %v7379_v34, 0.0  ;;  %v2577_v13 = vsub.f32 1.0, %v2561_v5  ;;  %v2578_v20 = vsub.f32 1.0, %v2562_v58 }
 0x280   : > { %v6496_v8 = vpop.eup %4572  ;;  %v2462_v32 = vadd.f32 0.2548296, %v2446_v50  ;;  %v2273_v29 = vsel %vm2257_vm0, 1.0, %v7294_v43  ;;  %v2539_v45 = vmul.f32 1.442695, %v2512_v23  ;;  %vm2254_vm9 = vcmp.ge.f32.partialorder %v6382_v0, 0.0 }
 0x281   : > { %v2352_v11 = vmul.f32 1.0614054, %v6496_v8  ;;  %v2737_v42 = vsel %vm7375_vm1, %v2735_v51, %v2736_v37  ;;  %v2752_v40 = vsel %vm7380_vm6, %v2736_v37, %v2721_v27  ;;  %v2607_v30 = vadd.f32 1.0, %v2591_v21  ;;  %vm7391_vm6 = vmmov %vm7375_vm1 }
 0x282   : > { %v2478_v17 = vmul.f32 %v6454_v1, %v2462_v32  ;;  %v2768_v6 = vsel %vm5767_vm3, %v2752_v40, 0.0  ;;  %v4575_v62 = vpop.eup %4574  ;;  %v2274_v27 = vsel %vm2258_vm15, 1.0, %v7294_v43  ;;  %v2593_v1 = vmul.f32 %v2577_v13, %v2273_v29 }
 0x283   : > { %v2368_v36 = vadd.f32 -1.4531521, %v2352_v11  ;;  %v6515_v63 = vpack.c.bf16 %v2768_v6, %v2737_v42  ;;  %v2629_v39 = vrot.slane %v6310_v44, 2  ;;  %v2643_v16 = vrot.slane %v6478_v56, 2 }
 0x284   : > { %v2558_v46 = vmul.f32 %v4575_v62, %v2478_v17  ;;  %v2594_v22 = vmul.f32 %v2578_v20, %v2274_v27  ;;  %v2223_v48 = vmul.f32 0.5, %v7382_v15  ;;  %v2270_v0 = vsel %vm2254_vm9, 1.0, %v7294_v43  ;;  %v7385_v20 = vld [vmem:[#allocation6_spill] sm:$0xff]  ;;  %v7386_v17 = vld [vmem:[#allocation32_spill] sm:$0xff]  ;;  %v7387_v62 = vld [vmem:[#allocation55_spill] sm:$0xff] }
 0x285   : > { %v2384_v9 = vmul.f32 %v6496_v8, %v2368_v36  ;;  %4576 = vpow2.f32 %v2539_v45  ;;  %v7384_v19 = vand.u32 15, %v7383_v57  ;;  %v2644_v18 = vrot.slane %v6493_v55, 2 }
 0x286   : > { %v2574_v26 = vsub.f32 1.0, %v2558_v46  ;;  %v6529_v24 = vmul.f32 %v2607_v30, %v2223_v48  ;;  %vm2645_vm0 = vcmp.lt.s32.totalorder %v4914_v59, 6  ;;  %v2222_v50 = vmul.f32 0.5, %v6364_v2 }
 0x287   : > { %v2400_v49 = vadd.f32 1.4214138, %v2384_v9  ;;  %vm459_vm3 = vcmp.le.s32.totalorder %v7384_v19, 13  ;;  %v2646_v5 = vsel %vm2645_vm0, %v2643_v16, %v2644_v18  ;;  %v2661_v58 = vsel %vm2645_vm0, %v2644_v18, %v2629_v39 }
 0x288   : > { %v2590_v47 = vmul.f32 %v2574_v26, %v2270_v0  ;;  %v2709_v37 = vsel %vm459_vm3, %v2661_v58, 0.0  ;;  %v2609_v52 = vadd.f32 1.0, %v2593_v1  ;;  %v2610_v32 = vadd.f32 1.0, %v2594_v22 }
 0x289   : > { %v2416_v7 = vmul.f32 %v6496_v8, %v2400_v49  ;;  %v6542_v21 = vpack.c.bf16 %v2709_v37, %v2646_v5  ;;  %v3054_v11 = vpack.c.bf16 %v6493_v55, %v6478_v56  ;;  %v2731_v13 = vrot.slane %v6529_v24, 1 }
 0x28a   : > { %v2606_v35 = vadd.f32 1.0, %v2590_v47  ;;  %v2639_v40 = vrot.slane %v6529_v24, 2  ;;  %v2225_v2 = vmul.f32 0.5, %v7385_v20  ;;  %v2226_v36 = vmul.f32 0.5, %v7386_v17 }
 0x28b   : > { %v2432_v23 = vadd.f32 -0.28449672, %v2416_v7  ;;  %v7388_v29 = vand.u32 15, %v7387_v62  ;;  %v2637_v9 = vrot.slane %v6449_v4, 2  ;;  %vm2256_vm9 = vcmp.ge.f32.partialorder %v6437_v14, 0.0 }
 0x28c   : > { %v6546_v34 = vmul.f32 %v2606_v35, %v2222_v50  ;;  %v6561_v30 = vmul.f32 %v2609_v52, %v2225_v2  ;;  %v6564_v27 = vmul.f32 %v2610_v32, %v2226_v36  ;;  %v3213_v47 = vrot.slane %v6411_v38, 7 }
 0x28d   : > { %v2448_v42 = vmul.f32 %v6496_v8, %v2432_v23  ;;  %vm6556_vm15 = vcmp.le.s32.totalorder %v7388_v29, 13  ;;  %vm7392_vm3 = vcmask 162816   ;;  %v3215_v58 = vrot.slane %v6465_v53, 7 }
 0x28e   : > { %v2730_v12 = vrot.slane %v6546_v34, 1  ;;  %v2638_v46 = vrot.slane %v6546_v34, 2  ;;  %v2733_v7 = vrot.slane %v6561_v30, 1  ;;  %v2734_v5 = vrot.slane %v6564_v27, 1 }
 0x28f   : > { %v2464_v6 = vadd.f32 0.2548296, %v2448_v42  ;;  %v4577_v48 = vpop.eup %4576  ;;  %v2272_v50 = vsel %vm2256_vm9, 1.0, %v7294_v43  ;;  %v3216_v35 = vrot.slane %v6449_v4, 7  ;;  %v3217_v23 = vrot.slane %v6546_v34, 7 }
 0x290   : > { %v2742_v1 = vsel %vm7375_vm1, %v2730_v12, %v2731_v13  ;;  %v2651_v15 = vsel %vm2645_vm0, %v2638_v46, %v2639_v40  ;;  %v2743_v26 = vsel %vm7391_vm6, %v2729_v10, %v2730_v12  ;;  %v2652_v0 = vsel %vm2645_vm0, %v2637_v9, %v2638_v46 }
 0x291   : > { %v2480_v22 = vmul.f32 %v6496_v8, %v2464_v6  ;;  %v2762_v49 = vsel %vm6239_vm7, %v2742_v1, 0.0  ;;  %v2703_v8 = vsel %vm6556_vm15, %v2651_v15, 0.0  ;;  %v3214_v10 = vrot.slane %v6316_v31, 7 }
 0x292   : > { %v2773_v57 = vpack.c.bf16 %v2762_v49, %v2743_v26  ;;  %v6588_v18 = vpack.c.bf16 %v2703_v8, %v2652_v0  ;;  %vm7393_vm7 = vcmp.lt.s32.totalorder %v4914_v59, 1  ;;  %v3223_v52 = vrot.slane %v6493_v55, 7  ;;  %v7402_v26 = vld [vmem:[#allocation7_spill] sm:$0xff] }
 0x293   : > { %v2560_v19 = vmul.f32 %v4577_v48, %v2480_v22  ;;  %v3233_v14 = vsel %vm7393_vm7, %v3213_v47, %v3214_v10  ;;  %vm7394_vm15 = vmmov %vm7393_vm7  ;;  %v3218_v36 = vrot.slane %v6529_v24, 7  ;;  %v2224_v12 = vmul.f32 0.5, %v6421_v25 }
 0x294   : > { %4204 = vmatprep.mubr.msk.bf16.mxu1 %vm7392_vm3, %v2773_v57  ;;  %v3232_v32 = vsel %vm7394_vm15, %v3214_v10, %v3215_v58  ;;  %v3246_v20 = vsel %vm5154_vm12, %v3233_v14, 0.0  ;;  %vm7396_vm1 = vmmov %vm7393_vm7  ;;  %vm7398_vm9 = vcmp.lt.s32.totalorder %v4914_v59, 7  ;;  %v3221_v22 = vrot.slane %v6564_v27, 7  ;;  %v7406_v57 = vld [vmem:[#allocation36_spill] sm:$0xff] }
 0x295   : > { %v2576_v61 = vsub.f32 1.0, %v2560_v19  ;;  %v6608_v2 = vpack.c.bf16 %v3232_v32, %v3246_v20  ;;  %v3230_v43 = vsel %vm7396_vm1, %v3216_v35, %v3217_v23  ;;  %vm7397_vm6 = vmmov %vm7396_vm1  ;;  %v2739_v62 = vsel %vm7398_vm9, %v2733_v7, %v2734_v5 }
 0x296   : > { %v3231_v17 = vsel %vm7397_vm6, %v3215_v58, %v3216_v35  ;;  %vm7400_vm12 = vmmov %vm7396_vm1  ;;  %v3222_v15 = vrot.slane %v6478_v56, 7  ;;  %v7403_v49 = vand.u32 15, %v7402_v26  ;;  %v2641_v8 = vrot.slane %v6561_v30, 2 }
 0x297   : > { %v2592_v37 = vmul.f32 %v2576_v61, %v2272_v50  ;;  %v3248_v45 = vsel %vm5206_vm13, %v3231_v17, 0.0  ;;  %v3229_v1 = vsel %vm7400_vm12, %v3217_v23, %v3218_v36  ;;  %vm7401_vm3 = vmmov %vm7398_vm9  ;;  %v2631_v19 = vrot.slane %v7406_v57, 2 }
 0x298   : > { %v6620_v46 = vpack.c.bf16 %v3230_v43, %v3248_v45  ;;  %v2738_v25 = vsel %vm7401_vm3, %v2734_v5, %v2735_v51  ;;  %vm6634_vm7 = vcmp.le.s32.totalorder %v7403_v49, 13  ;;  %vm6642_vm13 = vcmp.le.s32.totalorder %v407_v60, 13  ;;  %vm7409_vm15 = vmmov %vm7396_vm1  ;;  %v7418_v49 = vld [vmem:[#allocation9_spill] sm:$0xff] }
 0x299   : > { %v2608_v6 = vadd.f32 1.0, %v2592_v37  ;;  %v3224_v51 = vsel %vm7409_vm15, %v3222_v15, %v3223_v52  ;;  %v3225_v61 = vsel %vm7396_vm1, %v3221_v22, %v3222_v15  ;;  %v2766_v14 = vsel %vm5773_vm2, %v2738_v25, 0.0  ;;  %vm7413_vm6 = vmmov %vm7401_vm3 }
 0x29a   : > { %v2630_v35 = vrot.slane %v6017_v33, 2  ;;  %v3250_v37 = vsel %vm5388_vm14, %v3229_v1, 0.0  ;;  %v3254_v42 = vsel %vm5624_vm5, %v3225_v61, 0.0  ;;  %vm7414_vm9 = vmmov %vm7401_vm3  ;;  %v2775_v15 = vpack.c.bf16 %v2766_v14, %v2739_v62 }
 0x29b   : > { %v6626_v48 = vmul.f32 %v2608_v6, %v2224_v12  ;;  %vm7415_vm2 = vmmov %vm7396_vm1  ;;  %v6700_v25 = vpack.c.bf16 %v3224_v51, %v3254_v42  ;;  %vm7416_vm14 = vcmask 162816   ;;  %v7419_v10 = vand.u32 15, %v7418_v49  ;;  %v7423_v51 = vld [vmem:[#allocation15_spill] sm:$0xff] }
 0x29c   : > { %v2660_v3 = vsel %vm2645_vm0, %v2629_v39, %v2630_v35  ;;  %vm7417_vm5 = vmmov %vm7416_vm14  ;;  %v7422_v39 = vld [vmem:[#allocation50_spill] sm:$0xff]  ;;  %v3422_v62 = vrot.slane %v6411_v38, 6  ;;  %v3423_v50 = vrot.slane %v6316_v31, 6  ;;  %v3424_v0 = vrot.slane %v6465_v53, 6 }
 0x29d   : > { %v2732_v5 = vrot.slane %v6626_v48, 1  ;;  %v2640_v58 = vrot.slane %v6626_v48, 2  ;;  %v3052_v28 = vpack.c.bf16 %v6626_v48, %v6529_v24  ;;  %v3219_v60 = vrot.slane %v6626_v48, 7  ;;  %vm7437_vm1 = vmmov %vm7417_vm5 }
 0x29e   : > { %v2633_v14 = vrot.slane %v7365_v54, 2  ;;  %v2635_v32 = vrot.slane %v6316_v31, 2 }
 0x29f   : > { %v2740_v20 = vsel %vm7413_vm6, %v2732_v5, %v2733_v7  ;;  %v2741_v43 = vsel %vm7414_vm9, %v2731_v13, %v2732_v5  ;;  %v2649_v17 = vsel %vm2645_vm0, %v2640_v58, %v2641_v8  ;;  %v2650_v12 = vsel %vm2645_vm0, %v2639_v40, %v2640_v58  ;;  %vm7438_vm6 = vmmov %vm7437_vm1 }
 0x2a0   : > { %v2764_v6 = vsel %vm6334_vm11, %v2740_v20, 0.0  ;;  %v2659_v7 = vsel %vm2645_vm0, %v2630_v35, %v2631_v19  ;;  %v2705_v13 = vsel %vm6642_vm13, %v2649_v17, 0.0  ;;  %v3228_v29 = vsel %vm7415_vm2, %v3218_v36, %v3219_v60  ;;  %v7425_v35 = vld [vmem:[#allocation44_spill] sm:$0xff]  ;;  %vm7441_vm2 = vmmov %vm7437_vm1 }
 0x2a1   : > { %v2774_v45 = vpack.c.bf16 %v2764_v6, %v2741_v43  ;;  %v6696_v40 = vpack.c.bf16 %v2705_v13, %v2650_v12  ;;  %v6698_v1 = vpack.c.bf16 %v3228_v29, %v3250_v37  ;;  %v2695_v26 = vsel %vm6634_vm7, %v2659_v7, 0.0  ;;  %v7429_v43 = vld [vmem:[#allocation19_spill] sm:$0xff] }
 0x2a2   : > { %v2710_v36 = vpack.c.bf16 %v2695_v26, %v2660_v3  ;;  %vm6708_vm11 = vcmp.le.s32.totalorder %v7419_v10, 13  ;;  %v2632_v5 = vrot.slane %v7422_v39, 2  ;;  %v7424_v58 = vand.u32 15, %v7423_v51  ;;  %v7439_v12 = vld [vmem:[#allocation35_spill] sm:$0xff] }
 0x2a3   : > { %4205 = vmatmul.mubr.msk.bf16.gmra.mrb[16].mxu1 %vm7416_vm14, %v2774_v45  ;;  %v7426_v23 = vand.u32 15, %v7425_v35  ;;  %vm3433_vm7 = vcmp.lt.s32.totalorder %v4914_v59, 2  ;;  %v7430_v17 = vand.u32 15, %v7429_v43  ;;  %v3425_v6 = vrot.slane %v6449_v4, 6  ;;  %v7433_v45 = vld [vmem:[#allocation29_spill] sm:$0xff] }
 0x2a4   : > { %4208 = vmatprep.mubr.msk.bf16.mxu1 %vm7417_vm5, %v2775_v15  ;;  %vm434_vm12 = vcmp.ge.s32.totalorder %v7424_v58, 2  ;;  %v3442_v42 = vsel %vm3433_vm7, %v3423_v50, %v3424_v0  ;;  %v3443_v20 = vsel %vm3433_vm7, %v3422_v62, %v3423_v50  ;;  %v2634_v7 = vrot.slane %v6411_v38, 2  ;;  %vm7444_vm5 = vmmov %vm7437_vm1 }
 0x2a5   : > { %vm6721_vm3 = vcmp.le.s32.totalorder %v7426_v23, 13  ;;  %vm6735_vm13 = vcmp.ge.s32.totalorder %v7430_v17, 2  ;;  %v3488_v13 = vsel %vm434_vm12, %v3443_v20, 0.0  ;;  %v3426_v29 = vrot.slane %v6546_v34, 6 }
 0x2a6   : > { %v7434_v3 = vand.u32 15, %v7433_v45  ;;  %v6748_v26 = vpack.c.bf16 %v3442_v42, %v3488_v13  ;;  %v3441_v49 = vsel %vm3433_vm7, %v3424_v0, %v3425_v6  ;;  %v3427_v10 = vrot.slane %v6529_v24, 6 }
 0x2a7   : > { %v3428_v51 = vrot.slane %v6626_v48, 6  ;;  %v2657_v58 = vsel %vm2645_vm0, %v2632_v5, %v2633_v14  ;;  %v3432_v50 = vrot.slane %v6493_v55, 6  ;;  %v3440_v35 = vsel %vm3433_vm7, %v3425_v6, %v3426_v29  ;;  %v7488_v55 = vld [vmem:[#allocation10_spill] sm:$0xff] }
 0x2a8   : > { %vm6744_vm15 = vcmp.ge.s32.totalorder %v7434_v3, 2  ;;  %v3490_v23 = vsel %vm6735_vm13, %v3441_v49, 0.0  ;;  %v2655_v0 = vsel %vm2645_vm0, %v2634_v7, %v2635_v32  ;;  %v3439_v43 = vsel %vm3433_vm7, %v3426_v29, %v3427_v10  ;;  %vm7448_vm13 = vmmov %vm7437_vm1 }
 0x2a9   : > { %v6765_v42 = vpack.c.bf16 %v3440_v35, %v3490_v23  ;;  %v3438_v20 = vsel %vm3433_vm7, %v3427_v10, %v3428_v51  ;;  %v3492_v17 = vsel %vm6744_vm15, %v3439_v43, 0.0  ;;  %v7440_v6 = vand.u32 15, %v7439_v12 }
 0x2aa   : > { %v3431_v13 = vrot.slane %v6478_v56, 6  ;;  %v6780_v45 = vpack.c.bf16 %v3438_v20, %v3492_v17  ;;  %v2697_v3 = vsel %vm6708_vm11, %v2657_v58, 0.0  ;;  %v2699_v15 = vsel %vm6721_vm3, %v2655_v0, 0.0  ;;  %v4509_v20 = vld [vmem:[%s7035_s5 + $0x20] ss:$0 sps:$4 sm:$0x33]   ;;  %vm7447_vm3 = vmmov %vm7437_vm1 }
 0x2ab   : > { %4209 = vmatmul.mubr.msk.bf16.gmra.mrb[20].mxu1 %vm7437_vm1, %v6515_v63  ;;  %v3430_v63 = vrot.slane %v6564_v27, 6  ;;  %vm442_vm9 = vcmp.ge.s32.totalorder %v7440_v6, 2  ;;  %v2658_v61 = vsel %vm2645_vm0, %v2631_v19, %v2632_v5  ;;  %v2656_v35 = vsel %vm2645_vm0, %v2633_v14, %v2634_v7  ;;  %v7442_v0 = vld [vmem:[#allocation28_spill] sm:$0xff]  ;;  %v4510_v14 = vld [vmem:[%s7035_s5 + $0x24] sm:$0xff]  }
 0x2ac   : > { %4216 = vmatprep.mubr.msk.bf16.mxu1 %vm7438_vm6, %v2710_v36  ;;  %v3434_v36 = vsel %vm3433_vm7, %v3431_v13, %v3432_v50  ;;  %v2711_v58 = vpack.c.bf16 %v2697_v3, %v2658_v61  ;;  %v2636_v23 = vrot.slane %v6465_v53, 2  ;;  %v2712_v37 = vpack.c.bf16 %v2699_v15, %v2656_v35  ;;  %vm7451_vm6 = vmmov %vm7437_vm1 }
 0x2ad   : > { %v3435_v29 = vsel %vm3433_vm7, %v3430_v63, %v3431_v13  ;;  %v7443_v43 = vand.u32 15, %v7442_v0  ;;  %vm7445_vm11 = vcmask 1041408   ;;  %v3050_v15 = vpack.c.bf16 %v6465_v53, %v6316_v31 }
 0x2ae   : > { %v3496_v49 = vsel %vm442_vm9, %v3435_v29, 0.0  ;;  %v2653_v19 = vsel %vm2645_vm0, %v2636_v23, %v2637_v9  ;;  %vm7446_vm12 = vmmov %vm7445_vm11  ;;  %v2654_v17 = vsel %vm2645_vm0, %v2635_v32, %v2636_v23  ;;  %v2642_v9 = vrot.slane %v6564_v27, 2  ;;  %v4512_v29 = vld [vmem:[%s7035_s5 + $0x30] sm:$0xff]  }
 0x2af   : > { %v6798_v10 = vpack.c.bf16 %v3434_v36, %v3496_v49  ;;  %vm451_vm14 = vcmp.le.s32.totalorder %v7443_v43, 13  ;;  %v3093_v5 = vsel %vm7446_vm12, %v4509_v20, 0  ;;  %vm7452_vm9 = vmmov %vm7437_vm1  ;;  %v3051_v49 = vpack.c.bf16 %v6546_v34, %v6449_v4 }
 0x2b0   : > { %v2701_v7 = vsel %vm451_vm14, %v2653_v19, 0.0  ;;  %v2647_v13 = vsel %vm2645_vm0, %v2642_v9, %v2643_v16  ;;  %v2648_v32 = vsel %vm2645_vm0, %v2641_v8, %v2642_v9  ;;  %v3048_v16 = vpack.c.bf16 %v7422_v39, %v7406_v57  ;;  %v4511_v8 = vld [vmem:[%s7035_s5 + $0x2c] ss:$0 sps:$4 sm:$0x33]   ;;  %vm7454_vm0 = vmmov %vm7437_vm1 }
 0x2b1   : > { %v2713_v12 = vpack.c.bf16 %v2701_v7, %v2654_v17  ;;  %vm7455_vm14 = vmmov %vm7454_vm0  ;;  %v3208_v61 = vrot.slane %v6310_v44, 7  ;;  %v3209_v4 = vrot.slane %v6017_v33, 7  ;;  %v3210_v53 = vrot.slane %v7406_v57, 7  ;;  %v4513_v7 = vld [vmem:[%s7035_s5 + $0x38] ss:$0 sps:$4 sm:$0x33]  }
 0x2b2   : > { %vm7458_vm12 = vmmov %vm7454_vm0  ;;  %v3212_v24 = vrot.slane %v7365_v54, 7 }
 0x2b3   : > { %4217 = vmatmul.mubr.msk.bf16.vlgmr.msra.gmra.mrb[8].mxu1 %vm7441_vm2, %v2711_v58  ;;  %vm7453_vm2 = vmmov %vm7437_vm1  ;;  %v3053_v58 = vpack.c.bf16 %v6564_v27, %v6561_v30  ;;  %v3955_v27 = vld [vmem:[%s7036_s6] ss:$0 sm:$0xff] }
 0x2b4   : > { %4220 = vmatprep.mubr.msk.bf16.mxu1 %vm7444_vm5, %v2712_v37  ;;  %4233 = vmatpush3.bf16.msra.mxu1 %v6378_v41  ;;  %v7449_v41 = vld [vmem:[#allocation45_spill] sm:$0xff]  ;;  %vm7456_vm5 = vmmov %vm7445_vm11 }
 0x2b5   : > { %4448 = vmatprep.subr.msk.bf16.mxu1 %vm7445_vm11, %v4509_v20  ;;  %v7450_v6 = vand.u32 15, %v7449_v41  ;;  %vm7457_vm11 = vmmov %vm7456_vm5  ;;  %v3211_v20 = vrot.slane %v7422_v39, 7 }
 0x2b7   : > { %vm457_vm15 = vcmp.le.s32.totalorder %v7450_v6, 13  ;;  %v7479_v6 = vld [vmem:[#allocation43_spill] sm:$0xff] }
 0x2b8   : > { %4235 = vmatpush3.bf16.msra.mxu1 %v3093_v5  ;;  %v2707_v3 = vsel %vm457_vm15, %v2647_v13, 0.0  ;;  %vm7461_vm15 = vmmov %vm7454_vm0 }
 0x2b9   : > { %4252 = vmatprep.subr.bf16.mxu1 %v4510_v14  ;;  %v2716_v36 = vpack.c.bf16 %v2707_v3, %v2648_v32  ;;  %v3417_v3 = vrot.slane %v6310_v44, 6 }
 0x2bb   : > { %4221 = vmatmul.mubr.msk.bf16.gmra.mrb[12].mxu1 %vm7447_vm3, %v2713_v12  ;;  %vm7459_vm3 = vmmov %vm7454_vm0 }
 0x2bc   : > { %4224 = vmatprep.mubr.msk.bf16.mxu1 %vm7448_vm13, %v6588_v18  ;;  %v3047_v18 = vpack.c.bf16 %v6017_v33, %v6310_v44  ;;  %vm7460_vm13 = vmmov %vm7454_vm0 }
 0x2c3   : > { %4225 = vmatmul.mubr.msk.bf16.gmra.mrb[16].mxu1 %vm7437_vm1, %v6696_v40  ;;  %v3049_v40 = vpack.c.bf16 %v6411_v38, %v7365_v54  ;;  %vm7462_vm1 = vcmp.lt.s32.totalorder %v4914_v59, 1  ;;  %v7494_v38 = vld [vmem:[#allocation34_spill] sm:$0xff] }
 0x2c4   : > { %4228 = vmatprep.mubr.msk.bf16.mxu1 %vm7451_vm6, %v2716_v36  ;;  %v3239_v31 = vsel %vm7462_vm1, %v3223_v52, %v3208_v61  ;;  %vm7463_vm6 = vmmov %vm7462_vm1 }
 0x2c5   : > { %v3238_v34 = vsel %vm7463_vm6, %v3208_v61, %v3209_v4  ;;  %v3240_v23 = vsel %vm5711_vm4, %v3239_v31, 0.0  ;;  %vm7468_vm4 = vmmov %vm7462_vm1  ;;  %vm7480_vm6 = vnez %v7479_v6  ;;  %v7495_v61 = vand.u32 15, %v7494_v38 }
 0x2c6   : > { %v3236_v0 = vsel %vm7468_vm4, %v3210_v53, %v3211_v20 }
 0x2cb   : > { %4229 = vmatmul.mubr.msk.bf16.gmra.mrb[20].mxu1 %vm7452_vm9, %v6542_v21  ;;  %v3302_v21 = vsel %vm7457_vm11, %v4511_v8, 0  ;;  %vm7465_vm9 = vmmov %vm7454_vm0 }
 0x2cc   : > { %4236 = vmatprep.mubr.msk.bf16.mxu1 %vm7453_vm2, %v3047_v18  ;;  %vm7466_vm2 = vmmov %vm7462_vm1 }
 0x2cd   : > { %v3237_v52 = vsel %vm7466_vm2, %v3209_v4, %v3210_v53  ;;  %vm7472_vm11 = vmmov %vm7454_vm0 }
 0x2ce   : > { %v3242_v19 = vsel %vm4982_vm8, %v3237_v52, 0.0  ;;  %vm7474_vm8 = vcmask 1041408   ;;  %vm7482_vm2 = vmmov %vm7454_vm0 }
 0x2cf   : > { %vm7486_vm4 = vmmov %vm7482_vm2 }
 0x2d3   : > { %4237 = vmatmul.mubr.msk.bf16.vlgmr.msra.gmra.mrb[8].mxu1 %vm7454_vm0, %v3048_v16  ;;  %v3420_v16 = vrot.slane %v7422_v39, 6 }
 0x2d4   : > { %4240 = vmatprep.mubr.msk.bf16.mxu1 %vm7455_vm14, %v3049_v40  ;;  %4253 = vmatpush3.bf16.msra.mxu1 %v4510_v14  ;;  %vm7467_vm14 = vmmov %vm7462_vm1  ;;  %v3257_v14 = vpack.c.bf16 %v3236_v0, %v3242_v19 }
 0x2d5   : > { %4449 = vmatprep.subr.msk.bf16.mxu1 %vm7456_vm5, %v4511_v8  ;;  %v3235_v37 = vsel %vm7467_vm14, %v3211_v20, %v3212_v24  ;;  %vm7470_vm5 = vmmov %vm7462_vm1  ;;  %v7484_v8 = vld [vmem:[#allocation8_spill] sm:$0xff] }
 0x2d6   : > { %v3234_v56 = vsel %vm7470_vm5, %v3212_v24, %v3213_v47  ;;  %v3244_v5 = vsel %vm5054_vm10, %v3235_v37, 0.0  ;;  %v3220_v47 = vrot.slane %v6561_v30, 7  ;;  %vm7476_vm10 = vmmov %vm7454_vm0  ;;  %v7485_v40 = vand.u32 15, %v7484_v8 }
 0x2d7   : > { %v3258_v17 = vpack.c.bf16 %v3234_v56, %v3244_v5  ;;  %vm7487_vm5 = vmmov %vm7482_vm2 }
 0x2d8   : > { %4255 = vmatpush3.bf16.msra.mxu1 %v3302_v21  ;;  %v3226_v41 = vsel %vm7462_vm1, %v3220_v47, %v3221_v22  ;;  %v3418_v22 = vrot.slane %v6017_v33, 6  ;;  %vm430_vm14 = vcmp.ge.s32.totalorder %v7485_v40, 2 }
 0x2d9   : > { %4272 = vmatprep.subr.bf16.mxu1 %v4512_v29 }
 0x2da   : > { %v3448_v44 = vsel %vm3433_vm7, %v3417_v3, %v3418_v22 }
 0x2db   : > { %4241 = vmatmul.mubr.msk.bf16.gmra.mrb[12].mxu1 %vm7458_vm12, %v3050_v15  ;;  %vm7473_vm12 = vmmov %vm7454_vm0 }
 0x2dc   : > { %4244 = vmatprep.mubr.msk.bf16.mxu1 %vm7459_vm3, %v3051_v49  ;;  %vm7475_vm3 = vmmov %vm7474_vm8  ;;  %v3429_v49 = vrot.slane %v6561_v30, 6 }
 0x2dd   : > { %v3544_v12 = vsel %vm7475_vm3, %v4513_v7, 0  ;;  %vm7492_vm3 = vmmov %vm7482_vm2 }
 0x2de   : > { %v3436_v30 = vsel %vm3433_vm7, %v3429_v49, %v3430_v63 }
 0x2e3   : > { %4245 = vmatmul.mubr.msk.bf16.gmra.mrb[16].mxu1 %vm7460_vm13, %v3052_v28  ;;  %v3256_v28 = vpack.c.bf16 %v3238_v34, %v3240_v23  ;;  %vm7477_vm13 = vmmov %vm7454_vm0 }
 0x2e4   : > { %4248 = vmatprep.mubr.msk.bf16.mxu1 %vm7461_vm15, %v3053_v58  ;;  %vm7478_vm15 = vmmov %vm7462_vm1 }
 0x2e5   : > { %v3227_v9 = vsel %vm7478_vm15, %v3219_v60, %v3220_v47  ;;  %v3419_v60 = vrot.slane %v7406_v57, 6  ;;  %v7489_v57 = vand.u32 15, %v7488_v55  ;;  %vm7496_vm15 = vmmov %vm7482_vm2 }
 0x2e6   : > { %v3252_v13 = vsel %vm7480_vm6, %v3227_v9, 0.0  ;;  %vm7497_vm1 = vmmov %vm7482_vm2 }
 0x2e7   : > { %v3262_v32 = vpack.c.bf16 %v3226_v41, %v3252_v13  ;;  %v3447_v33 = vsel %vm3433_vm7, %v3418_v22, %v3419_v60  ;;  %v3446_v39 = vsel %vm3433_vm7, %v3419_v60, %v3420_v16  ;;  %vm7498_vm6 = vmmov %vm7497_vm1 }
 0x2eb   : > { %4249 = vmatmul.mubr.msk.bf16.gmra.mrb[20].mxu1 %vm7465_vm9, %v3054_v11  ;;  %vm7481_vm9 = vmmov %vm7454_vm0 }
 0x2ec   : > { %4256 = vmatprep.mubr.msk.bf16.mxu1 %vm7454_vm0, %v3256_v28 }
 0x2f3   : > { %4257 = vmatmul.mubr.msk.bf16.vlgmr.msra.gmra.mrb[8].mxu1 %vm7472_vm11, %v3257_v14  ;;  %vm432_vm11 = vcmp.ge.s32.totalorder %v7489_v57, 2 }
 0x2f4   : > { %4260 = vmatprep.mubr.msk.bf16.mxu1 %vm7473_vm12, %v3258_v17  ;;  %4273 = vmatpush3.bf16.msra.mxu1 %v4512_v29  ;;  %vm7490_vm12 = vmmov %vm7482_vm2 }
 0x2f5   : > { %4450 = vmatprep.subr.msk.bf16.mxu1 %vm7474_vm8, %v4513_v7  ;;  %vm7491_vm8 = vmmov %vm7482_vm2 }
 0x2f8   : > { %4275 = vmatpush3.bf16.msra.mxu1 %v3544_v12 }
 0x2fb   : > { %4261 = vmatmul.mubr.msk.bf16.gmra.mrb[12].mxu1 %vm7476_vm10, %v6608_v2  ;;  %v7483_v2 = vand.u32 15, %v4914_v59  ;;  %vm7493_vm10 = vmmov %vm7482_vm2 }
 0x2fc   : > { %4264 = vmatprep.mubr.msk.bf16.mxu1 %vm7477_vm13, %v6620_v46  ;;  %v3449_v46 = vsel %vm3433_vm7, %v3432_v50, %v3417_v3  ;;  %v3484_v50 = vsel %vm430_vm14, %v3447_v33, 0.0  ;;  %vm440_vm13 = vcmp.ge.s32.totalorder %v7495_v61, 2 }
 0x2fd   : > { %vm428_vm0 = vcmp.ge.s32.totalorder %v7483_v2, 2  ;;  %v3499_v29 = vpack.c.bf16 %v3446_v39, %v3484_v50 }
 0x2fe   : > { %v3482_v36 = vsel %vm428_vm0, %v3449_v46, 0.0  ;;  %vm7502_vm0 = vmmov %vm7497_vm1 }
 0x2ff   : > { %v3498_v18 = vpack.c.bf16 %v3448_v44, %v3482_v36  ;;  %vm7503_vm14 = vmmov %vm7502_vm0 }
 0x303   : > { %4265 = vmatmul.mubr.msk.bf16.gmra.mrb[16].mxu1 %vm7481_vm9, %v6698_v1  ;;  %v3421_v1 = vrot.slane %v7365_v54, 6  ;;  %vm7500_vm9 = vmmov %vm7497_vm1 }
 0x304   : > { %4268 = vmatprep.mubr.msk.bf16.mxu1 %vm7482_vm2, %v3262_v32  ;;  %vm7501_vm2 = vmmov %vm7497_vm1 }
 0x305   : > { %v3445_v54 = vsel %vm3433_vm7, %v3420_v16, %v3421_v1 }
 0x306   : > { %v3486_v21 = vsel %vm432_vm11, %v3445_v54, 0.0  ;;  %vm7506_vm11 = vmmov %vm7502_vm0 }
 0x30b   : > { %4269 = vmatmul.mubr.msk.bf16.gmra.mrb[20].mxu1 %vm7486_vm4, %v6700_v25  ;;  %v3444_v25 = vsel %vm3433_vm7, %v3421_v1, %v3422_v62  ;;  %v3437_v62 = vsel %vm3433_vm7, %v3428_v51, %v3429_v49  ;;  %vm7499_vm7 = vmmov %vm7497_vm1 }
 0x30c   : > { %4276 = vmatprep.mubr.msk.bf16.mxu1 %vm7487_vm5, %v3498_v18  ;;  %v3500_v15 = vpack.c.bf16 %v3444_v25, %v3486_v21  ;;  %v3494_v58 = vsel %vm440_vm13, %v3437_v62, 0.0  ;;  %vm7504_vm4 = vmmov %vm7502_vm0 }
 0x30d   : > { %vm7505_vm5 = vmmov %vm7502_vm0 }
 0x30e   : > { %vm7511_vm13 = vmmov %vm7502_vm0 }
 0x313   : > { %4277 = vmatmul.mubr.msk.bf16.vlgmr.msra.gmra.mrb[8].mxu1 %vm7490_vm12, %v3499_v29  ;;  %vm7507_vm12 = vmmov %vm7502_vm0 }
 0x314   : > { %4280 = vmatprep.mubr.msk.bf16.mxu1 %vm7491_vm8, %v3500_v15  ;;  %vm7508_vm8 = vmmov %vm7502_vm0 }
 0x31b   : > { %4281 = vmatmul.mubr.msk.bf16.gmra.mrb[12].mxu1 %vm7492_vm3, %v6748_v26  ;;  %v3504_v26 = vpack.c.bf16 %v3436_v30, %v3494_v58  ;;  %vm7509_vm3 = vmmov %vm7502_vm0 }
 0x31c   : > { %4284 = vmatprep.mubr.msk.bf16.mxu1 %vm7493_vm10, %v6765_v42  ;;  %vm7510_vm10 = vmmov %vm7502_vm0 }
 0x323   : > { %4285 = vmatmul.mubr.msk.bf16.gmra.mrb[16].mxu1 %vm7496_vm15, %v6780_v45  ;;  %vm7512_vm15 = vmmov %vm7502_vm0 }
 0x324   : > { %4288 = vmatprep.mubr.msk.bf16.mxu1 %vm7497_vm1, %v3504_v26  ;;  %vm7513_vm1 = vmmov %vm7502_vm0 }
 0x32b   : > { %4289 = vmatmul.mubr.msk.bf16.gmra.mrb[20].mxu1 %vm7498_vm6, %v6798_v10  ;;  %vm7514_vm6 = vmmov %vm7502_vm0 }
 0x3e6   : > { %v4278_v48 = vpop.f32.mrb[8].mxu1 }
 0x3e7   : > { %v3668_v59 = vadd.f32 %v4278_v48, %v3955_v27  ;;  %v3580_v51 = vpop.f32.mrb[9].mxu1 }
 0x3e8   : > { %v3666_v42 = vadd.f32 %v3955_v27, %v3580_v51  ;;  %v4279_v63 = vpop.f32.mrb[10].mxu1 }
 0x3e9   : > { %3684 = vst.msk [vmem:[%s4708_s19 + $0x10] sm:$0xff] %vm7499_vm7, %v3668_v59  ;;  %v3669_v31 = vadd.f32 %v4279_v63, %v3955_v27  ;;  %v3583_v45 = vpop.f32.mrb[11].mxu1 }
 0x3ea   : > { %3682 = vst.msk [vmem:[%s4708_s19] sm:$0xff] %vm7500_vm9, %v3666_v42  ;;  %v3667_v10 = vadd.f32 %v3955_v27, %v3583_v45 }
 0x3eb   : > { %3685 = vst.msk [vmem:[%s4708_s19 + $0x18] sm:$0xff] %vm7501_vm2, %v3669_v31 }
 0x3ec   : > { %3683 = vst.msk [vmem:[%s4708_s19 + $0x8] sm:$0xff] %vm7502_vm0, %v3667_v10 }
 0x3ee   : > { %v4282_v4 = vpop.f32.mrb[12].mxu1 }
 0x3ef   : > { %v3672_v53 = vadd.f32 %v4282_v4, %v3955_v27  ;;  %v3596_v34 = vpop.f32.mrb[13].mxu1 }
 0x3f0   : > { %v3670_v35 = vadd.f32 %v3955_v27, %v3596_v34  ;;  %v4283_v23 = vpop.f32.mrb[14].mxu1 }
 0x3f1   : > { %3688 = vst.msk [vmem:[%s4708_s19 + $0x30] sm:$0xff] %vm7503_vm14, %v3672_v53  ;;  %v3673_v24 = vadd.f32 %v4283_v23, %v3955_v27  ;;  %v3599_v28 = vpop.f32.mrb[15].mxu1 }
 0x3f2   : > { %3686 = vst.msk [vmem:[%s4708_s19 + $0x20] sm:$0xff] %vm7504_vm4, %v3670_v35  ;;  %v3671_v20 = vadd.f32 %v3955_v27, %v3599_v28 }
 0x3f3   : > { %3689 = vst.msk [vmem:[%s4708_s19 + $0x38] sm:$0xff] %vm7505_vm5, %v3673_v24 }
 0x3f4   : > { %3687 = vst.msk [vmem:[%s4708_s19 + $0x28] sm:$0xff] %vm7506_vm11, %v3671_v20 }
 0x3f6   : > { %v4286_v52 = vpop.f32.mrb[16].mxu1 }
 0x3f7   : > { %v3676_v37 = vadd.f32 %v4286_v52, %v3955_v27  ;;  %v3612_v0 = vpop.f32.mrb[17].mxu1 }
 0x3f8   : > { %v3674_v43 = vadd.f32 %v3955_v27, %v3612_v0  ;;  %v4287_v19 = vpop.f32.mrb[18].mxu1 }
 0x3f9   : > { %3692 = vst.msk [vmem:[%s4708_s19 + $0x50] sm:$0xff] %vm7507_vm12, %v3676_v37  ;;  %v3677_v56 = vadd.f32 %v4287_v19, %v3955_v27  ;;  %v3615_v11 = vpop.f32.mrb[19].mxu1 }
 0x3fa   : > { %3690 = vst.msk [vmem:[%s4708_s19 + $0x40] sm:$0xff] %vm7508_vm8, %v3674_v43  ;;  %v3675_v5 = vadd.f32 %v3955_v27, %v3615_v11 }
 0x3fb   : > { %3693 = vst.msk [vmem:[%s4708_s19 + $0x58] sm:$0xff] %vm7509_vm3, %v3677_v56 }
 0x3fc   : > { %3691 = vst.msk [vmem:[%s4708_s19 + $0x48] sm:$0xff] %vm7510_vm10, %v3675_v5 }
 0x3fe   : > { %v4290_v14 = vpop.f32.mrb[20].mxu1 }
 0x3ff   : > { %v3680_v7 = vadd.f32 %v4290_v14, %v3955_v27  ;;  %v3628_v17 = vpop.f32.mrb[21].mxu1 }
 0x400   : > { %v3678_v12 = vadd.f32 %v3955_v27, %v3628_v17  ;;  %v4291_v47 = vpop.f32.mrb[22].mxu1 }
 0x401   : > { %3696 = vst.msk [vmem:[%s4708_s19 + $0x70] sm:$0xff] %vm7511_vm13, %v3680_v7  ;;  %v3681_v9 = vadd.f32 %v4291_v47, %v3955_v27  ;;  %v3631_v41 = vpop.f32.mrb[23].mxu1 }
 0x402   : > { %3694 = vst.msk [vmem:[%s4708_s19 + $0x60] sm:$0xff] %vm7512_vm15, %v3678_v12  ;;  %v3679_v6 = vadd.f32 %v3955_v27, %v3631_v41 }
 0x403   : > { %3697 = vst.msk [vmem:[%s4708_s19 + $0x78] sm:$0xff] %vm7513_vm1, %v3681_v9 }
 0x404   : > { %3695 = vst.msk [vmem:[%s4708_s19 + $0x68] sm:$0xff] %vm7514_vm6, %v3679_v6 }
 0x405 PF: > { %s17_s28 = sadd.s32 1, %s4618_s28   ;;  %s7515_s24 = smov %s4610_s26 }
 0x406   : > { %p14_p10 = scmp.ge.s32.totalorder %s17_s28, 6   ;;  %s7516_s25 = smov %s4614_s27 }
 0x407   : > { %s7517_s26 = smov %s7520_s29  ;;  %s7518_s27 = smov %s7524_s30 }
 0x408   :  { %16 = sbr.rel (!%p14_p10) target bundleno = 3 (0x3), region = 95 }

</bundles_post_ra>
